<compile_context>
chip_gen: v6e
topology: v6e:2x2x1
jax: 0.10.0
libtpu: 0.0.40
codegen_flags: <defaults>
</compile_context>

<pallas_src>
import functools

import jax
import jax.numpy as jnp
import numpy as np
from jax import lax
from jax.experimental import pallas as pl
from jax.experimental.pallas import tpu as pltpu

LN_EPS = 1e-5
_WCT_RESIDENT_MAX_BYTES = 8 << 20      # keep full Wc^T resident if <= 8 MiB


def _round_up(n, m):
    return ((n + m - 1) // m) * m


def _mixvpr_kernel(x_ref, gam_ref, bet_ref, w1t_ref, b1_ref, w2t_ref, b2_ref,
                   wrt_ref, wct_ref, bfold_ref, o_ref, *,
                   mix_depth, hw, tc, wct_resident):
    c_tile = pl.program_id(1)
    hw_pad = x_ref.shape[-1]

    x = x_ref[...].astype(jnp.float32)                     # (tc, HWp), f32
    inv_hw = 1.0 / hw

    # Lane-validity mask for the zero-padded HW tail (built once, reused per
    # depth); only the variance sum actually needs it for exactness.
    if hw_pad != hw:
        lane = lax.broadcasted_iota(jnp.int32, (1, hw_pad), 1)
        valid = lane < hw
    else:
        valid = None

    # ---- FeatureMixer stack (static unroll over mix_depth) ----
    # NOTE: the two lane reductions per depth are XLU work sharing the vex
    # slots with vmatmul; verify with a bundle dump before further LN opts.
    for d in range(mix_depth):
        mean = jnp.sum(x, axis=-1, keepdims=True) * inv_hw  # (tc, 1)
        xc = x - mean
        if valid is not None:
            xc = jnp.where(valid, xc, 0.0)                   # zero pad lanes
        # Centered (two-pass) variance: robust for non-centered activations.
        var = jnp.sum(xc * xc, axis=-1, keepdims=True) * inv_hw
        xn = xc * lax.rsqrt(var + LN_EPS) * gam_ref[d] + bet_ref[d]

        h = jnp.dot(xn.astype(jnp.bfloat16), w1t_ref[d],
                    preferred_element_type=jnp.float32) + b1_ref[d]
        h = jnp.maximum(h, 0.0)                              # ReLU (tc, Hp)
        y = jnp.dot(h.astype(jnp.bfloat16), w2t_ref[d],
                    preferred_element_type=jnp.float32) + b2_ref[d]
        x = x + y                                            # residual (f32)

    # ---- reassociated projections: row_proj first, then channel_proj ----
    # xr[c, r] = sum_n x[c, n] * Wr[r, n]   (pre-transposed Wr: no big vxpose)
    xr = jnp.dot(x.astype(jnp.bfloat16), wrt_ref[...],
                 preferred_element_type=jnp.float32)         # (tc, Rp)

    if wct_resident:
        c0 = pl.multiple_of(c_tile * tc, tc)
        wct_tile = wct_ref[pl.ds(c0, tc), :]                 # (tc, out_C)
    else:
        wct_tile = wct_ref[...]

    # part[r, o] = sum_c xr[c, r] * Wc[o, c]  (transposes only the tiny xr)
    part = lax.dot_general(xr.astype(jnp.bfloat16), wct_tile,
                           (((0,), (0,)), ((), ())),
                           preferred_element_type=jnp.float32)  # (Rp, out_C)

    @pl.when(c_tile == 0)
    def _():
        # Folded projection bias: bc (through Wr) + br, precomputed in f32.
        o_ref[...] = bfold_ref[...]

    # Accumulate over C tiles; the output block stays resident across the
    # "arbitrary" grid axis and is written back when the batch index changes.
    o_ref[...] += part


def _row_tile(n_rows, max_tile=512):
    """Largest divisor of n_rows <= max_tile, preferring x256 / x128 / x16."""
    if n_rows <= max_tile:
        return n_rows
    for align in (256, 128, 16, 8):
        t = (max_tile // align) * align
        while t >= align:
            if n_rows % t == 0:
                return t
            t -= align
    return n_rows


def _vmem_limit_bytes(kparams, *, x_bytes, tc, hwp, hp, rp, out_C,
                      single_buffer_weights, wct_resident):
    """Derive a per-generation VMEM budget instead of hard-coding one."""
    gam, bet, w1t, b1p, w2t, b2p, wrt, wct, bfold = kparams
    resident = [gam, bet, w1t, b1p, w2t, b2p, wrt, bfold]
    if wct_resident:
        resident.append(wct)
    wbuf = 1 if single_buffer_weights else 2
    weights = wbuf * sum(int(a.size) * a.dtype.itemsize for a in resident)
    if not wct_resident:
        weights += 2 * tc * out_C * 2          # streamed Wc^T tile, x2 buffers
    pipeline = 2 * tc * hwp * x_bytes + 2 * rp * out_C * 4
    interm = ((2 * tc * hwp + tc * hp + tc * rp + rp * out_C) * 4
              + (tc * hwp + tc * hp) * 2)
    need = weights + pipeline + 2 * interm + (4 << 20)
    try:
        cap = int(getattr(pltpu.get_tpu_info(), "vmem_capacity_bytes", 64 << 20))
    except Exception:
        cap = 64 << 20                          # v7x per-TC (most conservative)
    # TODO(synk): if the resident weight stack alone nears ~cap/2 (large hw or
    # mlp_ratio on v7x), stream per-depth mixer weights via a depth grid axis.
    return max(32 << 20, min(need, cap - (2 << 20)))


def mixvpr_forward(x_nchw, kparams, *, out_rows=None, max_row_tile=512,
                   cast_input_bf16=False, single_buffer_weights=True):
    """x_nchw: (B, C, H, W).  Returns (B, out_channels, out_rows)."""
    B, C, H, W = x_nchw.shape
    hw = H * W
    gam, bet, w1t, b1p, w2t, b2p, wrt, wct, bfold = kparams
    D, hwp, hp = w1t.shape
    rp, out_C = bfold.shape

    x = x_nchw.reshape(B, C, hw)                       # == x.flatten(2)
    if hwp != hw:                                      # zero-pad lanes to x128
        x = jnp.pad(x, ((0, 0), (0, 0), (0, hwp - hw)))
    if cast_input_bf16:                                # v6e knob: halves input DMA
        x = x.astype(jnp.bfloat16)

    tc = _row_tile(C, max_row_tile)
    nc = C // tc
    wct_resident = int(wct.size) * wct.dtype.itemsize <= _WCT_RESIDENT_MAX_BYTES

    kernel = functools.partial(_mixvpr_kernel, mix_depth=D, hw=hw, tc=tc,
                               wct_resident=wct_resident)

    def const_spec(a):
        idx = lambda b, c, nd=a.ndim: (0,) * nd
        if single_buffer_weights:
            try:   # constant-index block: one buffer (halves weight VMEM, v7x)
                return pl.BlockSpec(a.shape, idx, pipeline_mode=pl.Buffered(1))
            except Exception:
                pass
        return pl.BlockSpec(a.shape, idx)

    if wct_resident:
        wct_spec = const_spec(wct)          # resident; sliced per C tile in-kernel
    else:
        wct_spec = pl.BlockSpec((tc, out_C), lambda b, c: (c, 0))

    vmem_bytes = _vmem_limit_bytes(
        kparams, x_bytes=x.dtype.itemsize, tc=tc, hwp=hwp, hp=hp, rp=rp,
        out_C=out_C, single_buffer_weights=single_buffer_weights,
        wct_resident=wct_resident)

    out_t = pl.pallas_call(
        kernel,
        out_shape=jax.ShapeDtypeStruct((B, rp, out_C), jnp.float32),
        grid_spec=pltpu.PrefetchScalarGridSpec(
            num_scalar_prefetch=0,
            grid=(B, nc),
            in_specs=[
                pl.BlockSpec((pl.Squeezed(), tc, hwp), lambda b, c: (b, c, 0)),
                const_spec(gam), const_spec(bet),
                const_spec(w1t), const_spec(b1p),
                const_spec(w2t), const_spec(b2p),
                const_spec(wrt),
                wct_spec,
                const_spec(bfold),
            ],
            out_specs=pl.BlockSpec((pl.Squeezed(), rp, out_C),
                                   lambda b, c: (b, 0, 0)),
        ),
        # TODO(synk): for B == 1 on v7x (2 TensorCores) add a leading size-2
        # "parallel" axis that splits the C reduction (partials summed in the
        # wrapper) so both cores are used.
        compiler_params=pltpu.CompilerParams(
            dimension_semantics=("parallel", "arbitrary"),
            vmem_limit_bytes=vmem_bytes),
    )(x, gam, bet, w1t, b1p, w2t, b2p, wrt, wct, bfold)

    # Layout plumbing only: kernel stores lane-dense (B, out_rows_pad, out_C).
    out = jnp.transpose(out_t, (0, 2, 1))
    if out_rows is not None and out_rows != rp:
        out = out[:, :, :out_rows]
    return out


def init_torch_params(key, *, in_channels, hw, hidden, mix_depth,
                      out_channels, out_rows):
    """Deterministic synthetic parameters in PyTorch (nn.Linear) layout."""
    ks = jax.random.split(key, 2 * mix_depth + 4)

    def tn(k, shape, std=0.02):
        return std * jax.random.truncated_normal(k, -2.0, 2.0, shape,
                                                 jnp.float32)

    return {
        "ln_g": jnp.ones((mix_depth, hw), jnp.float32),
        "ln_b": jnp.zeros((mix_depth, hw), jnp.float32),
        "w1": jnp.stack([tn(ks[2 * d], (hidden, hw)) for d in range(mix_depth)]),
        "b1": jnp.zeros((mix_depth, hidden), jnp.float32),
        "w2": jnp.stack([tn(ks[2 * d + 1], (hw, hidden)) for d in range(mix_depth)]),
        "b2": jnp.zeros((mix_depth, hw), jnp.float32),
        # channel_proj / row_proj (plain nn.Linear -> non-zero biases exercised)
        "wc": tn(ks[-4], (out_channels, in_channels)),
        "bc": 0.1 * jax.random.normal(ks[-3], (out_channels,), jnp.float32),
        "wr": tn(ks[-2], (out_rows, hw)),
        "br": 0.1 * jax.random.normal(ks[-1], (out_rows,), jnp.float32),
    }


def prepare_params(p):
    """Pad / transpose / cast PyTorch-layout params into the kernel layout.

    All padding is exact: padded gamma/beta/bias entries and padded weight
    rows/columns are zero, so padded lanes / hidden units / output rows
    contribute nothing to the result.
    """
    D, hidden, hw = p["w1"].shape
    out_C, C = p["wc"].shape
    R = p["br"].shape[0]
    hwp = _round_up(hw, 128)            # lane-pad the HW axis
    hp = _round_up(max(hidden, 128), 128)
    rp = _round_up(max(R, 8), 8)
    f32 = jnp.float32

    gam = jnp.zeros((D, hwp), f32).at[:, :hw].set(p["ln_g"])
    bet = jnp.zeros((D, hwp), f32).at[:, :hw].set(p["ln_b"])

    w1t = jnp.zeros((D, hwp, hp), f32).at[:, :hw, :hidden].set(
        jnp.transpose(p["w1"], (0, 2, 1)))
    b1p = jnp.zeros((D, hp), f32).at[:, :hidden].set(p["b1"])
    w2t = jnp.zeros((D, hp, hwp), f32).at[:, :hidden, :hw].set(
        jnp.transpose(p["w2"], (0, 2, 1)))
    b2p = jnp.zeros((D, hwp), f32).at[:, :hw].set(p["b2"])

    # Row projection pre-transposed to (HWp, Rp): the kernel contracts the
    # activation's lane dim directly (no implicit XLU transpose).
    wrt = jnp.zeros((hwp, rp), f32).at[:hw, :R].set(jnp.transpose(p["wr"]))

    # Channel projection weight in (C, out_C) so rows tile along C.
    wct = jnp.transpose(p["wc"])

    # Channel bias folded exactly through the row projection (f32):
    #   bfold[r, o] = bc[o] * sum_n Wr[r, n] + br[r]
    bfold = jnp.zeros((rp, out_C), f32).at[:R, :].set(
        p["bc"][None, :] * jnp.sum(p["wr"], axis=1)[:, None] + p["br"][:, None])

    return (gam, bet,
            w1t.astype(jnp.bfloat16), b1p,
            w2t.astype(jnp.bfloat16), b2p,
            wrt.astype(jnp.bfloat16),
            wct.astype(jnp.bfloat16),
            bfold)


def mixvpr_reference_f32(x_nchw, p):
    """Exact PyTorch-module math in f32 (original projection association)."""
    B, C, H, W = x_nchw.shape
    x = x_nchw.reshape(B, C, H * W).astype(jnp.float32)
    for d in range(p["w1"].shape[0]):
        mean = jnp.mean(x, axis=-1, keepdims=True)
        var = jnp.mean((x - mean) ** 2, axis=-1, keepdims=True)
        xn = (x - mean) * lax.rsqrt(var + LN_EPS) * p["ln_g"][d] + p["ln_b"][d]
        h = jnp.maximum(jnp.einsum("bcn,hn->bch", xn, p["w1"][d]) + p["b1"][d], 0.0)
        x = x + jnp.einsum("bch,nh->bcn", h, p["w2"][d]) + p["b2"][d]
    xc = jnp.einsum("oc,bcn->bon", p["wc"], x) + p["bc"][None, :, None]
    return jnp.einsum("bon,rn->bor", xc, p["wr"]) + p["br"][None, None, :]


def mixvpr_reference_bf16(x_nchw, p):
    """Mirrors the kernel's bf16-operand / f32-accum math & reassoc. proj."""
    B, C, H, W = x_nchw.shape
    x = x_nchw.reshape(B, C, H * W).astype(jnp.float32)
    for d in range(p["w1"].shape[0]):
        mean = jnp.mean(x, axis=-1, keepdims=True)
        xc = x - mean
        var = jnp.mean(xc * xc, axis=-1, keepdims=True)
        xn = xc * lax.rsqrt(var + LN_EPS) * p["ln_g"][d] + p["ln_b"][d]
        h = jnp.einsum("bcn,hn->bch", xn.astype(jnp.bfloat16),
                       p["w1"][d].astype(jnp.bfloat16),
                       preferred_element_type=jnp.float32) + p["b1"][d]
        h = jnp.maximum(h, 0.0)
        x = x + jnp.einsum("bch,nh->bcn", h.astype(jnp.bfloat16),
                           p["w2"][d].astype(jnp.bfloat16),
                           preferred_element_type=jnp.float32) + p["b2"][d]
    xr = jnp.einsum("bcn,rn->bcr", x.astype(jnp.bfloat16),
                    p["wr"].astype(jnp.bfloat16),
                    preferred_element_type=jnp.float32)
    part = jnp.einsum("bcr,oc->bro", xr.astype(jnp.bfloat16),
                      p["wc"].astype(jnp.bfloat16),
                      preferred_element_type=jnp.float32)
    bfold = (p["bc"][None, :] * jnp.sum(p["wr"], axis=1)[:, None]
             + p["br"][:, None])
    return jnp.transpose(part + bfold[None], (0, 2, 1))


if __name__ == "__main__":
    # Small but representative MixVPR config: C=256 channels, 4x4 feature map
    # (hw=16 -> lane-padded to 128), mix_depth=2, out_channels=128, out_rows=4.
    # max_row_tile=128 forces nc=2 so the C-accumulation + resident-Wc^T slice
    # path is exercised.
    B, C, H, W = 2, 256, 4, 4
    hw = H * W
    mix_depth, mlp_ratio = 2, 1
    hidden = int(hw * mlp_ratio)
    out_channels, out_rows = 128, 4

    key = jax.random.PRNGKey(0)
    kx, kp = jax.random.split(key)
    x = jax.random.normal(kx, (B, C, H, W), jnp.float32)

    tparams = init_torch_params(kp, in_channels=C, hw=hw, hidden=hidden,
                                mix_depth=mix_depth, out_channels=out_channels,
                                out_rows=out_rows)
    kparams = prepare_params(tparams)

    def run(single_buffer):
        fwd = jax.jit(functools.partial(
            mixvpr_forward, out_rows=out_rows, max_row_tile=128,
            single_buffer_weights=single_buffer))
        return jax.block_until_ready(fwd(x, kparams))

    try:
        out = run(True)      # single-buffered resident weights (v7x VMEM win)
    except Exception:
        out = run(False)     # fallback if pl.Buffered(1) is unsupported here
    assert out.shape == (B, out_channels, out_rows)

    # Tight check vs. a reference mirroring the kernel's bf16/f32 arithmetic.
    ref_bf16 = jax.block_until_ready(mixvpr_reference_bf16(x, tparams))
    np.testing.assert_allclose(np.asarray(out), np.asarray(ref_bf16),
                               rtol=2e-3, atol=5e-4)

    # Looser check vs. the exact f32 PyTorch-module math (bf16 MXU operands).
    ref_f32 = jax.block_until_ready(mixvpr_reference_f32(x, tparams))
    np.testing.assert_allclose(np.asarray(out), np.asarray(ref_f32),
                               rtol=5e-2, atol=3e-3)

    print("KERNEL_OK")
</pallas_src>

<mosaic_0001>
module attributes {stable_mosaic.version = 11 : i64} {
  func.func @_mixvpr_kernel(%arg0: i32, %arg1: i32, %arg2: memref<1x128x128xf32, #tpu.memory_space<vmem>>, %arg3: memref<2x128xf32, #tpu.memory_space<vmem>>, %arg4: memref<2x128xf32, #tpu.memory_space<vmem>>, %arg5: memref<2x128x128xbf16, #tpu.memory_space<vmem>>, %arg6: memref<2x128xf32, #tpu.memory_space<vmem>>, %arg7: memref<2x128x128xbf16, #tpu.memory_space<vmem>>, %arg8: memref<2x128xf32, #tpu.memory_space<vmem>>, %arg9: memref<128x8xbf16, #tpu.memory_space<vmem>>, %arg10: memref<256x128xbf16, #tpu.memory_space<vmem>>, %arg11: memref<8x128xf32, #tpu.memory_space<vmem>>, %arg12: memref<1x8x128xf32, #tpu.memory_space<vmem>>) attributes {dimension_semantics = [#tpu.dimension_semantics<parallel>, #tpu.dimension_semantics<arbitrary>], iteration_bounds = array<i64: 2, 2>, scalar_prefetch = 0 : i64, scratch_operands = 0 : i64, tpu.core_type = #tpu.core_type<tc>, window_params = [{transform_indices = @transform_0, window_bounds = array<i64: 1, 128, 128>}, {pipeline_mode = #tpu.pipeline_mode<synchronous>, transform_indices = @transform_1, window_bounds = array<i64: 2, 128>}, {pipeline_mode = #tpu.pipeline_mode<synchronous>, transform_indices = @transform_2, window_bounds = array<i64: 2, 128>}, {pipeline_mode = #tpu.pipeline_mode<synchronous>, transform_indices = @transform_3, window_bounds = array<i64: 2, 128, 128>}, {pipeline_mode = #tpu.pipeline_mode<synchronous>, transform_indices = @transform_4, window_bounds = array<i64: 2, 128>}, {pipeline_mode = #tpu.pipeline_mode<synchronous>, transform_indices = @transform_5, window_bounds = array<i64: 2, 128, 128>}, {pipeline_mode = #tpu.pipeline_mode<synchronous>, transform_indices = @transform_6, window_bounds = array<i64: 2, 128>}, {pipeline_mode = #tpu.pipeline_mode<synchronous>, transform_indices = @transform_7, window_bounds = array<i64: 128, 8>}, {pipeline_mode = #tpu.pipeline_mode<synchronous>, transform_indices = @transform_8, window_bounds = array<i64: 256, 128>}, {pipeline_mode = #tpu.pipeline_mode<synchronous>, transform_indices = @transform_9, window_bounds = array<i64: 8, 128>}, {transform_indices = @transform_10, window_bounds = array<i64: 1, 8, 128>}]} {
    %c0 = arith.constant 0 : index
    %c0_0 = arith.constant 0 : index
    %c0_1 = arith.constant 0 : index
    %0 = vector.load %arg2[%c0, %c0_0, %c0_1] : memref<1x128x128xf32, #tpu.memory_space<vmem>>, vector<1x128x128xf32>
    %1 = vector.shape_cast %0 : vector<1x128x128xf32> to vector<128x128xf32>
    %2 = tpu.iota {dimensions = array<i32: 1>} : vector<1x128xi32>
    %c16_i32 = arith.constant 16 : i32
    %3 = vector.broadcast %c16_i32 : i32 to vector<1x128xi32>
    %4 = arith.cmpi slt, %2, %3 : vector<1x128xi32>
    %cst = arith.constant dense<0.000000e+00> : vector<128xf32>
    %5 = vector.multi_reduction <add>, %1, %cst [1] : vector<128x128xf32> to vector<128xf32>
    %6 = vector.shape_cast %5 : vector<128xf32> to vector<128x1xf32>
    %cst_2 = arith.constant 6.250000e-02 : f32
    %7 = vector.broadcast %cst_2 : f32 to vector<128x1xf32>
    %8 = arith.mulf %6, %7 : vector<128x1xf32>
    %9 = vector.broadcast %8 : vector<128x1xf32> to vector<128x128xf32>
    %10 = arith.subf %1, %9 : vector<128x128xf32>
    %cst_3 = arith.constant 0.000000e+00 : f32
    %11 = vector.shape_cast %4 : vector<1x128xi1> to vector<1x128xi1>
    %12 = vector.broadcast %11 : vector<1x128xi1> to vector<128x128xi1>
    %13 = vector.broadcast %cst_3 : f32 to vector<128x128xf32>
    %14 = arith.select %12, %10, %13 : vector<128x128xi1>, vector<128x128xf32>
    %15 = arith.mulf %14, %14 : vector<128x128xf32>
    %cst_4 = arith.constant dense<0.000000e+00> : vector<128xf32>
    %16 = vector.multi_reduction <add>, %15, %cst_4 [1] : vector<128x128xf32> to vector<128xf32>
    %17 = vector.shape_cast %16 : vector<128xf32> to vector<128x1xf32>
    %cst_5 = arith.constant 6.250000e-02 : f32
    %18 = vector.broadcast %cst_5 : f32 to vector<128x1xf32>
    %19 = arith.mulf %17, %18 : vector<128x1xf32>
    %cst_6 = arith.constant 9.99999974E-6 : f32
    %20 = vector.broadcast %cst_6 : f32 to vector<128x1xf32>
    %21 = arith.addf %19, %20 : vector<128x1xf32>
    %22 = math.rsqrt %21 : vector<128x1xf32>
    %23 = vector.broadcast %22 : vector<128x1xf32> to vector<128x128xf32>
    %24 = arith.mulf %14, %23 : vector<128x128xf32>
    %c0_7 = arith.constant 0 : index
    %c0_8 = arith.constant 0 : index
    %25 = vector.load %arg3[%c0_7, %c0_8] : memref<2x128xf32, #tpu.memory_space<vmem>>, vector<1x128xf32>
    %26 = vector.shape_cast %25 : vector<1x128xf32> to vector<128xf32>
    %27 = vector.shape_cast %26 : vector<128xf32> to vector<1x128xf32>
    %28 = vector.broadcast %27 : vector<1x128xf32> to vector<128x128xf32>
    %29 = arith.mulf %24, %28 : vector<128x128xf32>
    %c0_9 = arith.constant 0 : index
    %c0_10 = arith.constant 0 : index
    %30 = vector.load %arg4[%c0_9, %c0_10] : memref<2x128xf32, #tpu.memory_space<vmem>>, vector<1x128xf32>
    %31 = vector.shape_cast %30 : vector<1x128xf32> to vector<128xf32>
    %32 = vector.shape_cast %31 : vector<128xf32> to vector<1x128xf32>
    %33 = vector.broadcast %32 : vector<1x128xf32> to vector<128x128xf32>
    %34 = arith.addf %29, %33 : vector<128x128xf32>
    %35 = arith.truncf %34 : vector<128x128xf32> to vector<128x128xbf16>
    %c0_11 = arith.constant 0 : index
    %c0_12 = arith.constant 0 : index
    %c0_13 = arith.constant 0 : index
    %36 = vector.load %arg5[%c0_11, %c0_12, %c0_13] : memref<2x128x128xbf16, #tpu.memory_space<vmem>>, vector<1x128x128xbf16>
    %37 = vector.shape_cast %36 : vector<1x128x128xbf16> to vector<128x128xbf16>
    %cst_14 = arith.constant dense<0.000000e+00> : vector<128x128xf32>
    %38 = tpu.matmul %35, %37, %cst_14 {dimension_numbers = #tpu.dot_dimension_numbers<[1], [0], [0], [1], [0, 0, 1, 1], [], []>} : vector<128x128xbf16>, vector<128x128xbf16>, vector<128x128xf32> -> vector<128x128xf32>
    %c0_15 = arith.constant 0 : index
    %c0_16 = arith.constant 0 : index
    %39 = vector.load %arg6[%c0_15, %c0_16] : memref<2x128xf32, #tpu.memory_space<vmem>>, vector<1x128xf32>
    %40 = vector.shape_cast %39 : vector<1x128xf32> to vector<128xf32>
    %41 = vector.shape_cast %40 : vector<128xf32> to vector<1x128xf32>
    %42 = vector.broadcast %41 : vector<1x128xf32> to vector<128x128xf32>
    %43 = arith.addf %38, %42 : vector<128x128xf32>
    %cst_17 = arith.constant 0.000000e+00 : f32
    %44 = vector.broadcast %cst_17 : f32 to vector<128x128xf32>
    %45 = arith.maximumf %43, %44 : vector<128x128xf32>
    %46 = arith.truncf %45 : vector<128x128xf32> to vector<128x128xbf16>
    %c0_18 = arith.constant 0 : index
    %c0_19 = arith.constant 0 : index
    %c0_20 = arith.constant 0 : index
    %47 = vector.load %arg7[%c0_18, %c0_19, %c0_20] : memref<2x128x128xbf16, #tpu.memory_space<vmem>>, vector<1x128x128xbf16>
    %48 = vector.shape_cast %47 : vector<1x128x128xbf16> to vector<128x128xbf16>
    %cst_21 = arith.constant dense<0.000000e+00> : vector<128x128xf32>
    %49 = tpu.matmul %46, %48, %cst_21 {dimension_numbers = #tpu.dot_dimension_numbers<[1], [0], [0], [1], [0, 0, 1, 1], [], []>} : vector<128x128xbf16>, vector<128x128xbf16>, vector<128x128xf32> -> vector<128x128xf32>
    %c0_22 = arith.constant 0 : index
    %c0_23 = arith.constant 0 : index
    %50 = vector.load %arg8[%c0_22, %c0_23] : memref<2x128xf32, #tpu.memory_space<vmem>>, vector<1x128xf32>
    %51 = vector.shape_cast %50 : vector<1x128xf32> to vector<128xf32>
    %52 = vector.shape_cast %51 : vector<128xf32> to vector<1x128xf32>
    %53 = vector.broadcast %52 : vector<1x128xf32> to vector<128x128xf32>
    %54 = arith.addf %49, %53 : vector<128x128xf32>
    %55 = arith.addf %1, %54 : vector<128x128xf32>
    %cst_24 = arith.constant dense<0.000000e+00> : vector<128xf32>
    %56 = vector.multi_reduction <add>, %55, %cst_24 [1] : vector<128x128xf32> to vector<128xf32>
    %57 = vector.shape_cast %56 : vector<128xf32> to vector<128x1xf32>
    %cst_25 = arith.constant 6.250000e-02 : f32
    %58 = vector.broadcast %cst_25 : f32 to vector<128x1xf32>
    %59 = arith.mulf %57, %58 : vector<128x1xf32>
    %60 = vector.broadcast %59 : vector<128x1xf32> to vector<128x128xf32>
    %61 = arith.subf %55, %60 : vector<128x128xf32>
    %cst_26 = arith.constant 0.000000e+00 : f32
    %62 = vector.shape_cast %4 : vector<1x128xi1> to vector<1x128xi1>
    %63 = vector.broadcast %62 : vector<1x128xi1> to vector<128x128xi1>
    %64 = vector.broadcast %cst_26 : f32 to vector<128x128xf32>
    %65 = arith.select %63, %61, %64 : vector<128x128xi1>, vector<128x128xf32>
    %66 = arith.mulf %65, %65 : vector<128x128xf32>
    %cst_27 = arith.constant dense<0.000000e+00> : vector<128xf32>
    %67 = vector.multi_reduction <add>, %66, %cst_27 [1] : vector<128x128xf32> to vector<128xf32>
    %68 = vector.shape_cast %67 : vector<128xf32> to vector<128x1xf32>
    %cst_28 = arith.constant 6.250000e-02 : f32
    %69 = vector.broadcast %cst_28 : f32 to vector<128x1xf32>
    %70 = arith.mulf %68, %69 : vector<128x1xf32>
    %cst_29 = arith.constant 9.99999974E-6 : f32
    %71 = vector.broadcast %cst_29 : f32 to vector<128x1xf32>
    %72 = arith.addf %70, %71 : vector<128x1xf32>
    %73 = math.rsqrt %72 : vector<128x1xf32>
    %74 = vector.broadcast %73 : vector<128x1xf32> to vector<128x128xf32>
    %75 = arith.mulf %65, %74 : vector<128x128xf32>
    %c1 = arith.constant 1 : index
    %c0_30 = arith.constant 0 : index
    %76 = vector.load %arg3[%c1, %c0_30] : memref<2x128xf32, #tpu.memory_space<vmem>>, vector<1x128xf32>
    %77 = vector.shape_cast %76 : vector<1x128xf32> to vector<128xf32>
    %78 = vector.shape_cast %77 : vector<128xf32> to vector<1x128xf32>
    %79 = vector.broadcast %78 : vector<1x128xf32> to vector<128x128xf32>
    %80 = arith.mulf %75, %79 : vector<128x128xf32>
    %c1_31 = arith.constant 1 : index
    %c0_32 = arith.constant 0 : index
    %81 = vector.load %arg4[%c1_31, %c0_32] : memref<2x128xf32, #tpu.memory_space<vmem>>, vector<1x128xf32>
    %82 = vector.shape_cast %81 : vector<1x128xf32> to vector<128xf32>
    %83 = vector.shape_cast %82 : vector<128xf32> to vector<1x128xf32>
    %84 = vector.broadcast %83 : vector<1x128xf32> to vector<128x128xf32>
    %85 = arith.addf %80, %84 : vector<128x128xf32>
    %86 = arith.truncf %85 : vector<128x128xf32> to vector<128x128xbf16>
    %c1_33 = arith.constant 1 : index
    %c0_34 = arith.constant 0 : index
    %c0_35 = arith.constant 0 : index
    %87 = vector.load %arg5[%c1_33, %c0_34, %c0_35] : memref<2x128x128xbf16, #tpu.memory_space<vmem>>, vector<1x128x128xbf16>
    %88 = vector.shape_cast %87 : vector<1x128x128xbf16> to vector<128x128xbf16>
    %cst_36 = arith.constant dense<0.000000e+00> : vector<128x128xf32>
    %89 = tpu.matmul %86, %88, %cst_36 {dimension_numbers = #tpu.dot_dimension_numbers<[1], [0], [0], [1], [0, 0, 1, 1], [], []>} : vector<128x128xbf16>, vector<128x128xbf16>, vector<128x128xf32> -> vector<128x128xf32>
    %c1_37 = arith.constant 1 : index
    %c0_38 = arith.constant 0 : index
    %90 = vector.load %arg6[%c1_37, %c0_38] : memref<2x128xf32, #tpu.memory_space<vmem>>, vector<1x128xf32>
    %91 = vector.shape_cast %90 : vector<1x128xf32> to vector<128xf32>
    %92 = vector.shape_cast %91 : vector<128xf32> to vector<1x128xf32>
    %93 = vector.broadcast %92 : vector<1x128xf32> to vector<128x128xf32>
    %94 = arith.addf %89, %93 : vector<128x128xf32>
    %cst_39 = arith.constant 0.000000e+00 : f32
    %95 = vector.broadcast %cst_39 : f32 to vector<128x128xf32>
    %96 = arith.maximumf %94, %95 : vector<128x128xf32>
    %97 = arith.truncf %96 : vector<128x128xf32> to vector<128x128xbf16>
    %c1_40 = arith.constant 1 : index
    %c0_41 = arith.constant 0 : index
    %c0_42 = arith.constant 0 : index
    %98 = vector.load %arg7[%c1_40, %c0_41, %c0_42] : memref<2x128x128xbf16, #tpu.memory_space<vmem>>, vector<1x128x128xbf16>
    %99 = vector.shape_cast %98 : vector<1x128x128xbf16> to vector<128x128xbf16>
    %cst_43 = arith.constant dense<0.000000e+00> : vector<128x128xf32>
    %100 = tpu.matmul %97, %99, %cst_43 {dimension_numbers = #tpu.dot_dimension_numbers<[1], [0], [0], [1], [0, 0, 1, 1], [], []>} : vector<128x128xbf16>, vector<128x128xbf16>, vector<128x128xf32> -> vector<128x128xf32>
    %c1_44 = arith.constant 1 : index
    %c0_45 = arith.constant 0 : index
    %101 = vector.load %arg8[%c1_44, %c0_45] : memref<2x128xf32, #tpu.memory_space<vmem>>, vector<1x128xf32>
    %102 = vector.shape_cast %101 : vector<1x128xf32> to vector<128xf32>
    %103 = vector.shape_cast %102 : vector<128xf32> to vector<1x128xf32>
    %104 = vector.broadcast %103 : vector<1x128xf32> to vector<128x128xf32>
    %105 = arith.addf %100, %104 : vector<128x128xf32>
    %106 = arith.addf %55, %105 : vector<128x128xf32>
    %107 = arith.truncf %106 : vector<128x128xf32> to vector<128x128xbf16>
    %c0_46 = arith.constant 0 : index
    %c0_47 = arith.constant 0 : index
    %108 = vector.load %arg9[%c0_46, %c0_47] : memref<128x8xbf16, #tpu.memory_space<vmem>>, vector<128x8xbf16>
    %cst_48 = arith.constant dense<0.000000e+00> : vector<128x8xf32>
    %109 = tpu.matmul %107, %108, %cst_48 {dimension_numbers = #tpu.dot_dimension_numbers<[1], [0], [0], [1], [0, 0, 1, 1], [], []>} : vector<128x128xbf16>, vector<128x8xbf16>, vector<128x8xf32> -> vector<128x8xf32>
    %c128_i32 = arith.constant 128 : i32
    %110 = arith.muli %arg1, %c128_i32 : i32
    %111 = tpu.assume_multiple %110, 128 : i32
    %112 = arith.index_cast %111 : i32 to index
    %c0_49 = arith.constant 0 : index
    %113 = vector.load %arg10[%112, %c0_49] : memref<256x128xbf16, #tpu.memory_space<vmem>>, vector<128x128xbf16>
    %114 = arith.truncf %109 : vector<128x8xf32> to vector<128x8xbf16>
    %cst_50 = arith.constant dense<0.000000e+00> : vector<8x128xf32>
    %115 = tpu.matmul %114, %113, %cst_50 {dimension_numbers = #tpu.dot_dimension_numbers<[0], [0], [1], [1], [0, 1, 1, 1], [], []>} : vector<128x8xbf16>, vector<128x128xbf16>, vector<8x128xf32> -> vector<8x128xf32>
    %c0_i32 = arith.constant 0 : i32
    %116 = arith.cmpi eq, %arg1, %c0_i32 : i32
    %117 = arith.extui %116 : i1 to i32
    %c0_i32_51 = arith.constant 0 : i32
    %118 = arith.cmpi ne, %117, %c0_i32_51 : i32
    scf.if %118 {
      %c0_58 = arith.constant 0 : index
      %c0_59 = arith.constant 0 : index
      %125 = vector.load %arg11[%c0_58, %c0_59] : memref<8x128xf32, #tpu.memory_space<vmem>>, vector<8x128xf32>
      %c0_60 = arith.constant 0 : index
      %c0_61 = arith.constant 0 : index
      %c0_62 = arith.constant 0 : index
      %126 = vector.load %arg12[%c0_60, %c0_61, %c0_62] : memref<1x8x128xf32, #tpu.memory_space<vmem>>, vector<1x8x128xf32>
      %127 = vector.shape_cast %126 : vector<1x8x128xf32> to vector<8x128xf32>
      %128 = vector.shape_cast %125 : vector<8x128xf32> to vector<1x8x128xf32>
      tpu.vector_store %arg12[%c0_60, %c0_61, %c0_62], %128 {strides = array<i32>} : memref<1x8x128xf32, #tpu.memory_space<vmem>>, vector<1x8x128xf32>,
    } else {
    }
    %c0_52 = arith.constant 0 : index
    %c0_53 = arith.constant 0 : index
    %c0_54 = arith.constant 0 : index
    %119 = vector.load %arg12[%c0_52, %c0_53, %c0_54] : memref<1x8x128xf32, #tpu.memory_space<vmem>>, vector<1x8x128xf32>
    %120 = vector.shape_cast %119 : vector<1x8x128xf32> to vector<8x128xf32>
    %121 = arith.addf %120, %115 : vector<8x128xf32>
    %c0_55 = arith.constant 0 : index
    %c0_56 = arith.constant 0 : index
    %c0_57 = arith.constant 0 : index
    %122 = vector.load %arg12[%c0_55, %c0_56, %c0_57] : memref<1x8x128xf32, #tpu.memory_space<vmem>>, vector<1x8x128xf32>
    %123 = vector.shape_cast %122 : vector<1x8x128xf32> to vector<8x128xf32>
    %124 = vector.shape_cast %121 : vector<8x128xf32> to vector<1x8x128xf32>
    tpu.vector_store %arg12[%c0_55, %c0_56, %c0_57], %124 {strides = array<i32>} : memref<1x8x128xf32, #tpu.memory_space<vmem>>, vector<1x8x128xf32>,
    return
  }
  func.func @transform_0(%arg0: i32, %arg1: i32) -> (i32, i32, i32) {
    %c0_i32 = arith.constant 0 : i32
    %c0_i32_0 = arith.constant 0 : i32
    return %arg0, %arg1, %c0_i32 : i32, i32, i32
  }
  func.func @transform_1(%arg0: i32, %arg1: i32) -> (i32, i32) {
    %c0_i32 = arith.constant 0 : i32
    %c0_i32_0 = arith.constant 0 : i32
    %c0_i32_1 = arith.constant 0 : i32
    return %c0_i32, %c0_i32_0 : i32, i32
  }
  func.func @transform_2(%arg0: i32, %arg1: i32) -> (i32, i32) {
    %c0_i32 = arith.constant 0 : i32
    %c0_i32_0 = arith.constant 0 : i32
    %c0_i32_1 = arith.constant 0 : i32
    return %c0_i32, %c0_i32_0 : i32, i32
  }
  func.func @transform_3(%arg0: i32, %arg1: i32) -> (i32, i32, i32) {
    %c0_i32 = arith.constant 0 : i32
    %c0_i32_0 = arith.constant 0 : i32
    %c0_i32_1 = arith.constant 0 : i32
    %c0_i32_2 = arith.constant 0 : i32
    return %c0_i32, %c0_i32_0, %c0_i32_1 : i32, i32, i32
  }
  func.func @transform_4(%arg0: i32, %arg1: i32) -> (i32, i32) {
    %c0_i32 = arith.constant 0 : i32
    %c0_i32_0 = arith.constant 0 : i32
    %c0_i32_1 = arith.constant 0 : i32
    return %c0_i32, %c0_i32_0 : i32, i32
  }
  func.func @transform_5(%arg0: i32, %arg1: i32) -> (i32, i32, i32) {
    %c0_i32 = arith.constant 0 : i32
    %c0_i32_0 = arith.constant 0 : i32
    %c0_i32_1 = arith.constant 0 : i32
    %c0_i32_2 = arith.constant 0 : i32
    return %c0_i32, %c0_i32_0, %c0_i32_1 : i32, i32, i32
  }
  func.func @transform_6(%arg0: i32, %arg1: i32) -> (i32, i32) {
    %c0_i32 = arith.constant 0 : i32
    %c0_i32_0 = arith.constant 0 : i32
    %c0_i32_1 = arith.constant 0 : i32
    return %c0_i32, %c0_i32_0 : i32, i32
  }
  func.func @transform_7(%arg0: i32, %arg1: i32) -> (i32, i32) {
    %c0_i32 = arith.constant 0 : i32
    %c0_i32_0 = arith.constant 0 : i32
    %c0_i32_1 = arith.constant 0 : i32
    return %c0_i32, %c0_i32_0 : i32, i32
  }
  func.func @transform_8(%arg0: i32, %arg1: i32) -> (i32, i32) {
    %c0_i32 = arith.constant 0 : i32
    %c0_i32_0 = arith.constant 0 : i32
    %c0_i32_1 = arith.constant 0 : i32
    return %c0_i32, %c0_i32_0 : i32, i32
  }
  func.func @transform_9(%arg0: i32, %arg1: i32) -> (i32, i32) {
    %c0_i32 = arith.constant 0 : i32
    %c0_i32_0 = arith.constant 0 : i32
    %c0_i32_1 = arith.constant 0 : i32
    return %c0_i32, %c0_i32_0 : i32, i32
  }
  func.func @transform_10(%arg0: i32, %arg1: i32) -> (i32, i32, i32) {
    %c0_i32 = arith.constant 0 : i32
    %c0_i32_0 = arith.constant 0 : i32
    %c0_i32_1 = arith.constant 0 : i32
    return %arg0, %c0_i32, %c0_i32_0 : i32, i32, i32
  }
}

module attributes {stable_mosaic.version = 11 : i64} {
  func.func @_mixvpr_kernel(%arg0: i32, %arg1: i32, %arg2: memref<1x128x128xf32, #tpu.memory_space<vmem>>, %arg3: memref<2x128xf32, #tpu.memory_space<vmem>>, %arg4: memref<2x128xf32, #tpu.memory_space<vmem>>, %arg5: memref<2x128x128xbf16, #tpu.memory_space<vmem>>, %arg6: memref<2x128xf32, #tpu.memory_space<vmem>>, %arg7: memref<2x128x128xbf16, #tpu.memory_space<vmem>>, %arg8: memref<2x128xf32, #tpu.memory_space<vmem>>, %arg9: memref<128x8xbf16, #tpu.memory_space<vmem>>, %arg10: memref<256x128xbf16, #tpu.memory_space<vmem>>, %arg11: memref<8x128xf32, #tpu.memory_space<vmem>>, %arg12: memref<1x8x128xf32, #tpu.memory_space<vmem>>) attributes {dimension_semantics = [#tpu.dimension_semantics<parallel>, #tpu.dimension_semantics<arbitrary>], iteration_bounds = array<i64: 2, 2>, scalar_prefetch = 0 : i64, scratch_operands = 0 : i64, tpu.core_type = #tpu.core_type<tc>, window_params = [{transform_indices = @transform_0, window_bounds = array<i64: 1, 128, 128>}, {pipeline_mode = #tpu.pipeline_mode<synchronous>, transform_indices = @transform_1, window_bounds = array<i64: 2, 128>}, {pipeline_mode = #tpu.pipeline_mode<synchronous>, transform_indices = @transform_2, window_bounds = array<i64: 2, 128>}, {pipeline_mode = #tpu.pipeline_mode<synchronous>, transform_indices = @transform_3, window_bounds = array<i64: 2, 128, 128>}, {pipeline_mode = #tpu.pipeline_mode<synchronous>, transform_indices = @transform_4, window_bounds = array<i64: 2, 128>}, {pipeline_mode = #tpu.pipeline_mode<synchronous>, transform_indices = @transform_5, window_bounds = array<i64: 2, 128, 128>}, {pipeline_mode = #tpu.pipeline_mode<synchronous>, transform_indices = @transform_6, window_bounds = array<i64: 2, 128>}, {pipeline_mode = #tpu.pipeline_mode<synchronous>, transform_indices = @transform_7, window_bounds = array<i64: 128, 8>}, {pipeline_mode = #tpu.pipeline_mode<synchronous>, transform_indices = @transform_8, window_bounds = array<i64: 256, 128>}, {pipeline_mode = #tpu.pipeline_mode<synchronous>, transform_indices = @transform_9, window_bounds = array<i64: 8, 128>}, {transform_indices = @transform_10, window_bounds = array<i64: 1, 8, 128>}]} {
    %c0 = arith.constant 0 : index
    %c0_0 = arith.constant 0 : index
    %c0_1 = arith.constant 0 : index
    %0 = vector.load %arg2[%c0, %c0_0, %c0_1] : memref<1x128x128xf32, #tpu.memory_space<vmem>>, vector<1x128x128xf32>
    %1 = vector.shape_cast %0 : vector<1x128x128xf32> to vector<128x128xf32>
    %2 = tpu.iota {dimensions = array<i32: 1>} : vector<1x128xi32>
    %c16_i32 = arith.constant 16 : i32
    %3 = vector.broadcast %c16_i32 : i32 to vector<1x128xi32>
    %4 = arith.cmpi slt, %2, %3 : vector<1x128xi32>
    %cst = arith.constant dense<0.000000e+00> : vector<128xf32>
    %5 = vector.multi_reduction <add>, %1, %cst [1] : vector<128x128xf32> to vector<128xf32>
    %6 = vector.shape_cast %5 : vector<128xf32> to vector<128x1xf32>
    %cst_2 = arith.constant 6.250000e-02 : f32
    %7 = vector.broadcast %cst_2 : f32 to vector<128x1xf32>
    %8 = arith.mulf %6, %7 : vector<128x1xf32>
    %9 = vector.broadcast %8 : vector<128x1xf32> to vector<128x128xf32>
    %10 = arith.subf %1, %9 : vector<128x128xf32>
    %cst_3 = arith.constant 0.000000e+00 : f32
    %11 = vector.shape_cast %4 : vector<1x128xi1> to vector<1x128xi1>
    %12 = vector.broadcast %11 : vector<1x128xi1> to vector<128x128xi1>
    %13 = vector.broadcast %cst_3 : f32 to vector<128x128xf32>
    %14 = arith.select %12, %10, %13 : vector<128x128xi1>, vector<128x128xf32>
    %15 = arith.mulf %14, %14 : vector<128x128xf32>
    %cst_4 = arith.constant dense<0.000000e+00> : vector<128xf32>
    %16 = vector.multi_reduction <add>, %15, %cst_4 [1] : vector<128x128xf32> to vector<128xf32>
    %17 = vector.shape_cast %16 : vector<128xf32> to vector<128x1xf32>
    %cst_5 = arith.constant 6.250000e-02 : f32
    %18 = vector.broadcast %cst_5 : f32 to vector<128x1xf32>
    %19 = arith.mulf %17, %18 : vector<128x1xf32>
    %cst_6 = arith.constant 9.99999974E-6 : f32
    %20 = vector.broadcast %cst_6 : f32 to vector<128x1xf32>
    %21 = arith.addf %19, %20 : vector<128x1xf32>
    %22 = math.rsqrt %21 : vector<128x1xf32>
    %23 = vector.broadcast %22 : vector<128x1xf32> to vector<128x128xf32>
    %24 = arith.mulf %14, %23 : vector<128x128xf32>
    %c0_7 = arith.constant 0 : index
    %c0_8 = arith.constant 0 : index
    %25 = vector.load %arg3[%c0_7, %c0_8] : memref<2x128xf32, #tpu.memory_space<vmem>>, vector<1x128xf32>
    %26 = vector.shape_cast %25 : vector<1x128xf32> to vector<128xf32>
    %27 = vector.shape_cast %26 : vector<128xf32> to vector<1x128xf32>
    %28 = vector.broadcast %27 : vector<1x128xf32> to vector<128x128xf32>
    %29 = arith.mulf %24, %28 : vector<128x128xf32>
    %c0_9 = arith.constant 0 : index
    %c0_10 = arith.constant 0 : index
    %30 = vector.load %arg4[%c0_9, %c0_10] : memref<2x128xf32, #tpu.memory_space<vmem>>, vector<1x128xf32>
    %31 = vector.shape_cast %30 : vector<1x128xf32> to vector<128xf32>
    %32 = vector.shape_cast %31 : vector<128xf32> to vector<1x128xf32>
    %33 = vector.broadcast %32 : vector<1x128xf32> to vector<128x128xf32>
    %34 = arith.addf %29, %33 : vector<128x128xf32>
    %35 = arith.truncf %34 : vector<128x128xf32> to vector<128x128xbf16>
    %c0_11 = arith.constant 0 : index
    %c0_12 = arith.constant 0 : index
    %c0_13 = arith.constant 0 : index
    %36 = vector.load %arg5[%c0_11, %c0_12, %c0_13] : memref<2x128x128xbf16, #tpu.memory_space<vmem>>, vector<1x128x128xbf16>
    %37 = vector.shape_cast %36 : vector<1x128x128xbf16> to vector<128x128xbf16>
    %cst_14 = arith.constant dense<0.000000e+00> : vector<128x128xf32>
    %38 = tpu.matmul %35, %37, %cst_14 {dimension_numbers = #tpu.dot_dimension_numbers<[1], [0], [0], [1], [0, 0, 1, 1], [], []>} : vector<128x128xbf16>, vector<128x128xbf16>, vector<128x128xf32> -> vector<128x128xf32>
    %c0_15 = arith.constant 0 : index
    %c0_16 = arith.constant 0 : index
    %39 = vector.load %arg6[%c0_15, %c0_16] : memref<2x128xf32, #tpu.memory_space<vmem>>, vector<1x128xf32>
    %40 = vector.shape_cast %39 : vector<1x128xf32> to vector<128xf32>
    %41 = vector.shape_cast %40 : vector<128xf32> to vector<1x128xf32>
    %42 = vector.broadcast %41 : vector<1x128xf32> to vector<128x128xf32>
    %43 = arith.addf %38, %42 : vector<128x128xf32>
    %cst_17 = arith.constant 0.000000e+00 : f32
    %44 = vector.broadcast %cst_17 : f32 to vector<128x128xf32>
    %45 = arith.maximumf %43, %44 : vector<128x128xf32>
    %46 = arith.truncf %45 : vector<128x128xf32> to vector<128x128xbf16>
    %c0_18 = arith.constant 0 : index
    %c0_19 = arith.constant 0 : index
    %c0_20 = arith.constant 0 : index
    %47 = vector.load %arg7[%c0_18, %c0_19, %c0_20] : memref<2x128x128xbf16, #tpu.memory_space<vmem>>, vector<1x128x128xbf16>
    %48 = vector.shape_cast %47 : vector<1x128x128xbf16> to vector<128x128xbf16>
    %cst_21 = arith.constant dense<0.000000e+00> : vector<128x128xf32>
    %49 = tpu.matmul %46, %48, %cst_21 {dimension_numbers = #tpu.dot_dimension_numbers<[1], [0], [0], [1], [0, 0, 1, 1], [], []>} : vector<128x128xbf16>, vector<128x128xbf16>, vector<128x128xf32> -> vector<128x128xf32>
    %c0_22 = arith.constant 0 : index
    %c0_23 = arith.constant 0 : index
    %50 = vector.load %arg8[%c0_22, %c0_23] : memref<2x128xf32, #tpu.memory_space<vmem>>, vector<1x128xf32>
    %51 = vector.shape_cast %50 : vector<1x128xf32> to vector<128xf32>
    %52 = vector.shape_cast %51 : vector<128xf32> to vector<1x128xf32>
    %53 = vector.broadcast %52 : vector<1x128xf32> to vector<128x128xf32>
    %54 = arith.addf %49, %53 : vector<128x128xf32>
    %55 = arith.addf %1, %54 : vector<128x128xf32>
    %cst_24 = arith.constant dense<0.000000e+00> : vector<128xf32>
    %56 = vector.multi_reduction <add>, %55, %cst_24 [1] : vector<128x128xf32> to vector<128xf32>
    %57 = vector.shape_cast %56 : vector<128xf32> to vector<128x1xf32>
    %cst_25 = arith.constant 6.250000e-02 : f32
    %58 = vector.broadcast %cst_25 : f32 to vector<128x1xf32>
    %59 = arith.mulf %57, %58 : vector<128x1xf32>
    %60 = vector.broadcast %59 : vector<128x1xf32> to vector<128x128xf32>
    %61 = arith.subf %55, %60 : vector<128x128xf32>
    %cst_26 = arith.constant 0.000000e+00 : f32
    %62 = vector.shape_cast %4 : vector<1x128xi1> to vector<1x128xi1>
    %63 = vector.broadcast %62 : vector<1x128xi1> to vector<128x128xi1>
    %64 = vector.broadcast %cst_26 : f32 to vector<128x128xf32>
    %65 = arith.select %63, %61, %64 : vector<128x128xi1>, vector<128x128xf32>
    %66 = arith.mulf %65, %65 : vector<128x128xf32>
    %cst_27 = arith.constant dense<0.000000e+00> : vector<128xf32>
    %67 = vector.multi_reduction <add>, %66, %cst_27 [1] : vector<128x128xf32> to vector<128xf32>
    %68 = vector.shape_cast %67 : vector<128xf32> to vector<128x1xf32>
    %cst_28 = arith.constant 6.250000e-02 : f32
    %69 = vector.broadcast %cst_28 : f32 to vector<128x1xf32>
    %70 = arith.mulf %68, %69 : vector<128x1xf32>
    %cst_29 = arith.constant 9.99999974E-6 : f32
    %71 = vector.broadcast %cst_29 : f32 to vector<128x1xf32>
    %72 = arith.addf %70, %71 : vector<128x1xf32>
    %73 = math.rsqrt %72 : vector<128x1xf32>
    %74 = vector.broadcast %73 : vector<128x1xf32> to vector<128x128xf32>
    %75 = arith.mulf %65, %74 : vector<128x128xf32>
    %c1 = arith.constant 1 : index
    %c0_30 = arith.constant 0 : index
    %76 = vector.load %arg3[%c1, %c0_30] : memref<2x128xf32, #tpu.memory_space<vmem>>, vector<1x128xf32>
    %77 = vector.shape_cast %76 : vector<1x128xf32> to vector<128xf32>
    %78 = vector.shape_cast %77 : vector<128xf32> to vector<1x128xf32>
    %79 = vector.broadcast %78 : vector<1x128xf32> to vector<128x128xf32>
    %80 = arith.mulf %75, %79 : vector<128x128xf32>
    %c1_31 = arith.constant 1 : index
    %c0_32 = arith.constant 0 : index
    %81 = vector.load %arg4[%c1_31, %c0_32] : memref<2x128xf32, #tpu.memory_space<vmem>>, vector<1x128xf32>
    %82 = vector.shape_cast %81 : vector<1x128xf32> to vector<128xf32>
    %83 = vector.shape_cast %82 : vector<128xf32> to vector<1x128xf32>
    %84 = vector.broadcast %83 : vector<1x128xf32> to vector<128x128xf32>
    %85 = arith.addf %80, %84 : vector<128x128xf32>
    %86 = arith.truncf %85 : vector<128x128xf32> to vector<128x128xbf16>
    %c1_33 = arith.constant 1 : index
    %c0_34 = arith.constant 0 : index
    %c0_35 = arith.constant 0 : index
    %87 = vector.load %arg5[%c1_33, %c0_34, %c0_35] : memref<2x128x128xbf16, #tpu.memory_space<vmem>>, vector<1x128x128xbf16>
    %88 = vector.shape_cast %87 : vector<1x128x128xbf16> to vector<128x128xbf16>
    %cst_36 = arith.constant dense<0.000000e+00> : vector<128x128xf32>
    %89 = tpu.matmul %86, %88, %cst_36 {dimension_numbers = #tpu.dot_dimension_numbers<[1], [0], [0], [1], [0, 0, 1, 1], [], []>} : vector<128x128xbf16>, vector<128x128xbf16>, vector<128x128xf32> -> vector<128x128xf32>
    %c1_37 = arith.constant 1 : index
    %c0_38 = arith.constant 0 : index
    %90 = vector.load %arg6[%c1_37, %c0_38] : memref<2x128xf32, #tpu.memory_space<vmem>>, vector<1x128xf32>
    %91 = vector.shape_cast %90 : vector<1x128xf32> to vector<128xf32>
    %92 = vector.shape_cast %91 : vector<128xf32> to vector<1x128xf32>
    %93 = vector.broadcast %92 : vector<1x128xf32> to vector<128x128xf32>
    %94 = arith.addf %89, %93 : vector<128x128xf32>
    %cst_39 = arith.constant 0.000000e+00 : f32
    %95 = vector.broadcast %cst_39 : f32 to vector<128x128xf32>
    %96 = arith.maximumf %94, %95 : vector<128x128xf32>
    %97 = arith.truncf %96 : vector<128x128xf32> to vector<128x128xbf16>
    %c1_40 = arith.constant 1 : index
    %c0_41 = arith.constant 0 : index
    %c0_42 = arith.constant 0 : index
    %98 = vector.load %arg7[%c1_40, %c0_41, %c0_42] : memref<2x128x128xbf16, #tpu.memory_space<vmem>>, vector<1x128x128xbf16>
    %99 = vector.shape_cast %98 : vector<1x128x128xbf16> to vector<128x128xbf16>
    %cst_43 = arith.constant dense<0.000000e+00> : vector<128x128xf32>
    %100 = tpu.matmul %97, %99, %cst_43 {dimension_numbers = #tpu.dot_dimension_numbers<[1], [0], [0], [1], [0, 0, 1, 1], [], []>} : vector<128x128xbf16>, vector<128x128xbf16>, vector<128x128xf32> -> vector<128x128xf32>
    %c1_44 = arith.constant 1 : index
    %c0_45 = arith.constant 0 : index
    %101 = vector.load %arg8[%c1_44, %c0_45] : memref<2x128xf32, #tpu.memory_space<vmem>>, vector<1x128xf32>
    %102 = vector.shape_cast %101 : vector<1x128xf32> to vector<128xf32>
    %103 = vector.shape_cast %102 : vector<128xf32> to vector<1x128xf32>
    %104 = vector.broadcast %103 : vector<1x128xf32> to vector<128x128xf32>
    %105 = arith.addf %100, %104 : vector<128x128xf32>
    %106 = arith.addf %55, %105 : vector<128x128xf32>
    %107 = arith.truncf %106 : vector<128x128xf32> to vector<128x128xbf16>
    %c0_46 = arith.constant 0 : index
    %c0_47 = arith.constant 0 : index
    %108 = vector.load %arg9[%c0_46, %c0_47] : memref<128x8xbf16, #tpu.memory_space<vmem>>, vector<128x8xbf16>
    %cst_48 = arith.constant dense<0.000000e+00> : vector<128x8xf32>
    %109 = tpu.matmul %107, %108, %cst_48 {dimension_numbers = #tpu.dot_dimension_numbers<[1], [0], [0], [1], [0, 0, 1, 1], [], []>} : vector<128x128xbf16>, vector<128x8xbf16>, vector<128x8xf32> -> vector<128x8xf32>
    %c128_i32 = arith.constant 128 : i32
    %110 = arith.muli %arg1, %c128_i32 : i32
    %111 = tpu.assume_multiple %110, 128 : i32
    %112 = arith.index_cast %111 : i32 to index
    %c0_49 = arith.constant 0 : index
    %113 = vector.load %arg10[%112, %c0_49] : memref<256x128xbf16, #tpu.memory_space<vmem>>, vector<128x128xbf16>
    %114 = arith.truncf %109 : vector<128x8xf32> to vector<128x8xbf16>
    %cst_50 = arith.constant dense<0.000000e+00> : vector<8x128xf32>
    %115 = tpu.matmul %114, %113, %cst_50 {dimension_numbers = #tpu.dot_dimension_numbers<[0], [0], [1], [1], [0, 1, 1, 1], [], []>} : vector<128x8xbf16>, vector<128x128xbf16>, vector<8x128xf32> -> vector<8x128xf32>
    %c0_i32 = arith.constant 0 : i32
    %116 = arith.cmpi eq, %arg1, %c0_i32 : i32
    %117 = arith.extui %116 : i1 to i32
    %c0_i32_51 = arith.constant 0 : i32
    %118 = arith.cmpi ne, %117, %c0_i32_51 : i32
    scf.if %118 {
      %c0_58 = arith.constant 0 : index
      %c0_59 = arith.constant 0 : index
      %125 = vector.load %arg11[%c0_58, %c0_59] : memref<8x128xf32, #tpu.memory_space<vmem>>, vector<8x128xf32>
      %c0_60 = arith.constant 0 : index
      %c0_61 = arith.constant 0 : index
      %c0_62 = arith.constant 0 : index
      %126 = vector.load %arg12[%c0_60, %c0_61, %c0_62] : memref<1x8x128xf32, #tpu.memory_space<vmem>>, vector<1x8x128xf32>
      %127 = vector.shape_cast %126 : vector<1x8x128xf32> to vector<8x128xf32>
      %128 = vector.shape_cast %125 : vector<8x128xf32> to vector<1x8x128xf32>
      tpu.vector_store %arg12[%c0_60, %c0_61, %c0_62], %128 {strides = array<i32>} : memref<1x8x128xf32, #tpu.memory_space<vmem>>, vector<1x8x128xf32>,
    } else {
    }
    %c0_52 = arith.constant 0 : index
    %c0_53 = arith.constant 0 : index
    %c0_54 = arith.constant 0 : index
    %119 = vector.load %arg12[%c0_52, %c0_53, %c0_54] : memref<1x8x128xf32, #tpu.memory_space<vmem>>, vector<1x8x128xf32>
    %120 = vector.shape_cast %119 : vector<1x8x128xf32> to vector<8x128xf32>
    %121 = arith.addf %120, %115 : vector<8x128xf32>
    %c0_55 = arith.constant 0 : index
    %c0_56 = arith.constant 0 : index
    %c0_57 = arith.constant 0 : index
    %122 = vector.load %arg12[%c0_55, %c0_56, %c0_57] : memref<1x8x128xf32, #tpu.memory_space<vmem>>, vector<1x8x128xf32>
    %123 = vector.shape_cast %122 : vector<1x8x128xf32> to vector<8x128xf32>
    %124 = vector.shape_cast %121 : vector<8x128xf32> to vector<1x8x128xf32>
    tpu.vector_store %arg12[%c0_55, %c0_56, %c0_57], %124 {strides = array<i32>} : memref<1x8x128xf32, #tpu.memory_space<vmem>>, vector<1x8x128xf32>,
    return
  }
  func.func @transform_0(%arg0: i32, %arg1: i32) -> (i32, i32, i32) {
    %c0_i32 = arith.constant 0 : i32
    %c0_i32_0 = arith.constant 0 : i32
    return %arg0, %arg1, %c0_i32 : i32, i32, i32
  }
  func.func @transform_1(%arg0: i32, %arg1: i32) -> (i32, i32) {
    %c0_i32 = arith.constant 0 : i32
    %c0_i32_0 = arith.constant 0 : i32
    %c0_i32_1 = arith.constant 0 : i32
    return %c0_i32, %c0_i32_0 : i32, i32
  }
  func.func @transform_2(%arg0: i32, %arg1: i32) -> (i32, i32) {
    %c0_i32 = arith.constant 0 : i32
    %c0_i32_0 = arith.constant 0 : i32
    %c0_i32_1 = arith.constant 0 : i32
    return %c0_i32, %c0_i32_0 : i32, i32
  }
  func.func @transform_3(%arg0: i32, %arg1: i32) -> (i32, i32, i32) {
    %c0_i32 = arith.constant 0 : i32
    %c0_i32_0 = arith.constant 0 : i32
    %c0_i32_1 = arith.constant 0 : i32
    %c0_i32_2 = arith.constant 0 : i32
    return %c0_i32, %c0_i32_0, %c0_i32_1 : i32, i32, i32
  }
  func.func @transform_4(%arg0: i32, %arg1: i32) -> (i32, i32) {
    %c0_i32 = arith.constant 0 : i32
    %c0_i32_0 = arith.constant 0 : i32
    %c0_i32_1 = arith.constant 0 : i32
    return %c0_i32, %c0_i32_0 : i32, i32
  }
  func.func @transform_5(%arg0: i32, %arg1: i32) -> (i32, i32, i32) {
    %c0_i32 = arith.constant 0 : i32
    %c0_i32_0 = arith.constant 0 : i32
    %c0_i32_1 = arith.constant 0 : i32
    %c0_i32_2 = arith.constant 0 : i32
    return %c0_i32, %c0_i32_0, %c0_i32_1 : i32, i32, i32
  }
  func.func @transform_6(%arg0: i32, %arg1: i32) -> (i32, i32) {
    %c0_i32 = arith.constant 0 : i32
    %c0_i32_0 = arith.constant 0 : i32
    %c0_i32_1 = arith.constant 0 : i32
    return %c0_i32, %c0_i32_0 : i32, i32
  }
  func.func @transform_7(%arg0: i32, %arg1: i32) -> (i32, i32) {
    %c0_i32 = arith.constant 0 : i32
    %c0_i32_0 = arith.constant 0 : i32
    %c0_i32_1 = arith.constant 0 : i32
    return %c0_i32, %c0_i32_0 : i32, i32
  }
  func.func @transform_8(%arg0: i32, %arg1: i32) -> (i32, i32) {
    %c0_i32 = arith.constant 0 : i32
    %c0_i32_0 = arith.constant 0 : i32
    %c0_i32_1 = arith.constant 0 : i32
    return %c0_i32, %c0_i32_0 : i32, i32
  }
  func.func @transform_9(%arg0: i32, %arg1: i32) -> (i32, i32) {
    %c0_i32 = arith.constant 0 : i32
    %c0_i32_0 = arith.constant 0 : i32
    %c0_i32_1 = arith.constant 0 : i32
    return %c0_i32, %c0_i32_0 : i32, i32
  }
  func.func @transform_10(%arg0: i32, %arg1: i32) -> (i32, i32, i32) {
    %c0_i32 = arith.constant 0 : i32
    %c0_i32_0 = arith.constant 0 : i32
    %c0_i32_1 = arith.constant 0 : i32
    return %arg0, %c0_i32, %c0_i32_0 : i32, i32, i32
  }
}

</mosaic_0001>

<bundles_post_ra>
// kernel: mixvpr_forward.1
= control target key start
LH: loop header
LB: loop body
LE: loop exit
PB: predicated region body
PF: predicated region fallthrough
CT: control target
= control target key end

     0   :  { %s2643_s13 = smov 0   ;;  %s2645_s14 = smov 0   ;;  %s3313_s0 = inlined_call_operand.vmem [shape: f32[2,256,128], index: 0, kind: input, shape index: {}]   ;;  %s3314_s1 = inlined_call_operand.vmem [shape: f32[2,128], index: 1, kind: input, shape index: {}]   ;;  %s3315_s2 = inlined_call_operand.vmem [shape: f32[2,128], index: 2, kind: input, shape index: {}]   ;;  %s3316_s3 = inlined_call_operand.vmem [shape: bf16[2,128,128], index: 3, kind: input, shape index: {}]   ;;  %s3317_s4 = inlined_call_operand.vmem [shape: f32[2,128], index: 4, kind: input, shape index: {}]   ;;  %s3318_s5 = inlined_call_operand.vmem [shape: bf16[2,128,128], index: 5, kind: input, shape index: {}]   ;;  %s3319_s6 = inlined_call_operand.vmem [shape: f32[2,128], index: 6, kind: input, shape index: {}]   ;;  %s3320_s7 = inlined_call_operand.vmem [shape: bf16[128,8], index: 7, kind: input, shape index: {}]   ;;  %s3321_s8 = inlined_call_operand.vmem [shape: bf16[256,128], index: 8, kind: input, shape index: {}]   ;;  %s3322_s9 = inlined_call_operand.vmem [shape: f32[8,128], index: 9, kind: input, shape index: {}]   ;;  %s3323_s10 = inlined_call_operand.vmem [shape: f32[2,8,128], index: 10, kind: output, shape index: {}]  }
   0x1   :  { %s2647_s15 = smov 0   ;;  %s2649_s16 = smov 0  }
   0x2   :  { %s2651_s17 = smov 0  }
   0x3 LB: > { %s29_s18 = sadd.s32 1, %s2576_s15  ;;  %s32_s19 = sadd.s32 1, %s2580_s16  ;;  %s2584_s17 = sphi %s2651_s17, %s20_s17   ;;  %s2580_s16 = sphi %s2649_s16, %s3327_s16   ;;  %s2576_s15 = sphi %s2647_s15, %s3326_s15   ;;  %s2572_s14 = sphi %s2645_s14, %s3325_s14   ;;  %s2568_s13 = sphi %s2643_s13, %s3324_s13  }
   0x4   : > { %p30_p0 = scmp.ge.s32.totalorder %s29_s18, 2  ;;  %p2025_p1 = scmp.ge.s32.totalorder %s2584_s17, 1 }
   0x5   : > { %p331_p2 = scmp.lt.s32.totalorder %s2584_s17, 5 }
   0x6   : > { %s3329_s18 = smov (%p30_p0, %s29_s18), 0  ;;  %s3331_s19 = smov (!%p30_p0, %s32_s19), %s2580_s16 }
   0x7   : > { %p332_p3 = pnand %p2025_p1, %p331_p2  ;;  %p34_p4 = scmp.ge.s32.totalorder %s3331_s19, 2 }
   0x8   : > { %s2026_s20 = sshll.u32 (!%p332_p3), %s2568_s13, 4  ;;  %p373_p5 = scmp.lt.s32.totalorder (!%p332_p3), %s2572_s14, 1 }
   0x9   : > { %s3333_s19 = smov (%p34_p4, %s3331_s19), 0  ;;  %335 = sbr.rel (%p332_p3) target bundleno = 1984 (0x7c0), region = 60 }
   0xa   : > { %p375_p6 = scmp.lt.s32.totalorder (!%p332_p3), %s2026_s20, 31  ;;  %p2120_p7 = scmp.ne.s32.totalorder (!%p332_p3), %s2568_s13, 0 }
   0xe   : > { %s3335_s14 = smov (!%p373_p5, %s2572_s14), 1  ;;  %s3337_s20 = smov (!%p375_p6, %s2026_s20), 31  ;;  %v403_v16 = vlaneseq  ;;  %v2434_v61 = vld [vmem:[%s3316_s3 + $0x38] sm:$0xff]   ;;  %vm2587_vm1 = vmmov 0  }
   0xf   : > { %s2027_s21 = sshll.u32 %s3335_s14, 5  ;;  %s2029_s22 = sshll.u32 %s3335_s14, 3  ;;  %2212 = vmatprep.subr.bf16.mxu0 %v2434_v61 }
  0x10   : > { %s378_s23 = sadd.s32 %s2027_s21, %s3337_s20  ;;  %s2679_s26 = scalar_lea.vmem %s3323_s10, %s2029_s22  ;;  %v2732_v17 = vand.u32 127, %v403_v16  ;;  %2213 = vmatpush3.bf16.msra.mxu0 %v2434_v61 }
  0x11   : > { %s2028_s27 = sshll.u32 %s378_s23, 3  ;;  %s2110_s22 = sshll.u32 %s2568_s13, 7 }
  0x12   : > { %s380_s30 = scalar_lea.vmem %s3313_s0, %s2028_s27  ;;  %vm405_vm0 = vcmp.lt.s32.totalorder %v2732_v17, 16  ;;  %v2457_v17 = vld [vmem:[%s3316_s3 + $0x40] sm:$0xff]   ;;  %s1808_s23 = sshra.s32 %s2110_s22, 3 }
  0x13   : > { %v2684_v0 = vld [vmem:[%s380_s30] sm:$0xff]  ;;  %v2686_v1 = vld [vmem:[%s380_s30 + $0x10] sm:$0xff]  ;;  %v2690_v2 = vld [vmem:[%s380_s30 + $0x8] sm:$0xff]  ;;  %s2111_s24 = sshll.u32 %s1808_s23, 2 }
  0x14   : > { %406 = vadd.xlane.f32.xlu0 %v2684_v0  ;;  %410 = vadd.xlane.f32.xlu1 %v2686_v1  ;;  %v2692_v3 = vld [vmem:[%s380_s30 + $0x18] sm:$0xff]  ;;  %v2694_v4 = vld [vmem:[%s380_s30 + $0x20] sm:$0xff]  ;;  %v2698_v5 = vld [vmem:[%s380_s30 + $0x28] sm:$0xff]  ;;  %s1811_s28 = scalar_lea.vmem %s3321_s8, %s2111_s24 }
  0x15   : > { %v2700_v6 = vld [vmem:[%s380_s30 + $0x30] sm:$0xff]  ;;  %v2702_v7 = vld [vmem:[%s380_s30 + $0x38] sm:$0xff]  ;;  %v2706_v8 = vld [vmem:[%s380_s30 + $0x40] sm:$0xff] }
  0x16   : > { %v2710_v9 = vld [vmem:[%s380_s30 + $0x48] sm:$0xff]  ;;  %v2712_v10 = vld [vmem:[%s380_s30 + $0x50] sm:$0xff]  ;;  %v2714_v11 = vld [vmem:[%s380_s30 + $0x58] sm:$0xff] }
  0x17   : > { %v2718_v12 = vld [vmem:[%s380_s30 + $0x60] sm:$0xff]  ;;  %v2720_v13 = vld [vmem:[%s380_s30 + $0x68] sm:$0xff]  ;;  %v2724_v14 = vld [vmem:[%s380_s30 + $0x70] sm:$0xff] }
  0x18   : > { %408 = vadd.xlane.f32.xlu0 %v2690_v2  ;;  %412 = vadd.xlane.f32.xlu1 %v2692_v3  ;;  %v2728_v15 = vld [vmem:[%s380_s30 + $0x78] sm:$0xff] }
  0x1c   : > { %414 = vadd.xlane.f32.xlu0 %v2694_v4  ;;  %416 = vadd.xlane.f32.xlu1 %v2698_v5 }
  0x20   : > { %418 = vadd.xlane.f32.xlu0 %v2700_v6  ;;  %420 = vadd.xlane.f32.xlu1 %v2702_v7 }
  0x24   : > { %422 = vadd.xlane.f32.xlu0 %v2706_v8  ;;  %424 = vadd.xlane.f32.xlu1 %v2710_v9 }
  0x28   : > { %426 = vadd.xlane.f32.xlu0 %v2712_v10  ;;  %428 = vadd.xlane.f32.xlu1 %v2714_v11 }
  0x2c   : > { %430 = vadd.xlane.f32.xlu0 %v2718_v12  ;;  %432 = vadd.xlane.f32.xlu1 %v2720_v13 }
  0x30   : > { %434 = vadd.xlane.f32.xlu0 %v2724_v14  ;;  %436 = vadd.xlane.f32.xlu1 %v2728_v15 }
  0x9d   : > { %v407_v18 = vpop.xlane.xlu0 %406  ;;  %v411_v19 = vpop.xlane.xlu1 %410 }
  0x9e   : > { %v438_v20 = vmul.f32 0.0625, %v407_v18  ;;  %v440_v21 = vmul.f32 0.0625, %v411_v19 }
  0xa0   : > { %v454_v22 = vsub.f32 %v2684_v0, %v438_v20  ;;  %v456_v23 = vsub.f32 %v2686_v1, %v440_v21 }
  0xa1   : > { %v409_v24 = vpop.xlane.xlu0 %408  ;;  %v413_v25 = vpop.xlane.xlu1 %412 }
  0xa2   : > { %v439_v26 = vmul.f32 0.0625, %v409_v24  ;;  %v441_v27 = vmul.f32 0.0625, %v413_v25  ;;  %v2739_v28 = vsel %vm405_vm0, %v454_v22, 0.0  ;;  %v2743_v29 = vsel %vm405_vm0, %v456_v23, 0.0 }
  0xa3   : > { %v488_v30 = vmul.f32 %v2739_v28, %v2739_v28  ;;  %v490_v35 = vmul.f32 %v2743_v29, %v2743_v29 }
  0xa4   : > { %v455_v31 = vsub.f32 %v2690_v2, %v439_v26  ;;  %v457_v32 = vsub.f32 %v2692_v3, %v441_v27  ;;  %v2435_v27 = vld [vmem:[%s3316_s3 + $0x30] sm:$0xff]  }
  0xa5   : > { %504 = vadd.xlane.f32.xlu0 %v488_v30  ;;  %v415_v33 = vpop.xlane.xlu0 %414  ;;  %v417_v34 = vpop.xlane.xlu1 %416  ;;  %2214 = vmatprep.subr.bf16.mxu0 %v2435_v27 }
  0xa6   : > { %v442_v36 = vmul.f32 0.0625, %v415_v33  ;;  %v443_v37 = vmul.f32 0.0625, %v417_v34  ;;  %v2753_v38 = vsel %vm405_vm0, %v455_v31, 0.0  ;;  %v2757_v39 = vsel %vm405_vm0, %v457_v32, 0.0  ;;  %2215 = vmatpush3.bf16.msra.mxu0 %v2435_v27 }
  0xa7   : > { %v489_v40 = vmul.f32 %v2753_v38, %v2753_v38  ;;  %v491_v45 = vmul.f32 %v2757_v39, %v2757_v39 }
  0xa8   : > { %v458_v41 = vsub.f32 %v2694_v4, %v442_v36  ;;  %v459_v42 = vsub.f32 %v2698_v5, %v443_v37 }
  0xa9   : > { %508 = vadd.xlane.f32.xlu0 %v490_v35  ;;  %506 = vadd.xlane.f32.xlu1 %v489_v40  ;;  %v419_v43 = vpop.xlane.xlu0 %418  ;;  %v421_v44 = vpop.xlane.xlu1 %420 }
  0xaa   : > { %v444_v46 = vmul.f32 0.0625, %v419_v43  ;;  %v445_v47 = vmul.f32 0.0625, %v421_v44  ;;  %v2767_v48 = vsel %vm405_vm0, %v458_v41, 0.0  ;;  %v2771_v49 = vsel %vm405_vm0, %v459_v42, 0.0  ;;  %v2436_v42 = vld [vmem:[%s3316_s3 + $0x28] sm:$0xff]  }
  0xab   : > { %v492_v50 = vmul.f32 %v2767_v48, %v2767_v48  ;;  %v493_v55 = vmul.f32 %v2771_v49, %v2771_v49  ;;  %2216 = vmatprep.subr.bf16.mxu0 %v2436_v42 }
  0xac   : > { %v460_v51 = vsub.f32 %v2700_v6, %v444_v46  ;;  %v461_v52 = vsub.f32 %v2702_v7, %v445_v47  ;;  %2217 = vmatpush3.bf16.msra.mxu0 %v2436_v42 }
  0xad   : > { %510 = vadd.xlane.f32.xlu1 %v491_v45  ;;  %512 = vadd.xlane.f32.xlu0 %v492_v50  ;;  %v423_v53 = vpop.xlane.xlu0 %422  ;;  %v425_v54 = vpop.xlane.xlu1 %424 }
  0xae   : > { %v446_v56 = vmul.f32 0.0625, %v423_v53  ;;  %v447_v57 = vmul.f32 0.0625, %v425_v54  ;;  %v2781_v58 = vsel %vm405_vm0, %v460_v51, 0.0  ;;  %v2785_v59 = vsel %vm405_vm0, %v461_v52, 0.0 }
  0xaf   : > { %v494_v60 = vmul.f32 %v2781_v58, %v2781_v58  ;;  %v495_v19 = vmul.f32 %v2785_v59, %v2785_v59 }
  0xb0   : > { %v462_v62 = vsub.f32 %v2706_v8, %v446_v56  ;;  %v463_v63 = vsub.f32 %v2710_v9, %v447_v57 }
  0xb1   : > { %514 = vadd.xlane.f32.xlu1 %v493_v55  ;;  %516 = vadd.xlane.f32.xlu0 %v494_v60  ;;  %v427_v16 = vpop.xlane.xlu0 %426  ;;  %v429_v18 = vpop.xlane.xlu1 %428  ;;  %v2437_v55 = vld [vmem:[%s3316_s3 + $0x20] sm:$0xff]  }
  0xb2   : > { %v448_v20 = vmul.f32 0.0625, %v427_v16  ;;  %v449_v21 = vmul.f32 0.0625, %v429_v18  ;;  %v2798_v22 = vsel %vm405_vm0, %v462_v62, 0.0  ;;  %v2802_v23 = vsel %vm405_vm0, %v463_v63, 0.0  ;;  %2218 = vmatprep.subr.bf16.mxu0 %v2437_v55  ;;  %v2438_v62 = vld [vmem:[%s3316_s3 + $0x18] sm:$0xff]   ;;  %v2439_v16 = vld [vmem:[%s3316_s3 + $0x10] sm:$0xff]  }
  0xb3   : > { %v496_v24 = vmul.f32 %v2798_v22, %v2798_v22  ;;  %v497_v32 = vmul.f32 %v2802_v23, %v2802_v23  ;;  %2219 = vmatpush3.bf16.msra.mxu0 %v2437_v55  ;;  %v2440_v18 = vld [vmem:[%s3316_s3 + $0x8] sm:$0xff]  }
  0xb4   : > { %v464_v25 = vsub.f32 %v2712_v10, %v448_v20  ;;  %v465_v26 = vsub.f32 %v2714_v11, %v449_v21  ;;  %2220 = vmatprep.subr.bf16.mxu0 %v2438_v62  ;;  %v2442_v20 = vld [vmem:[%s3318_s5 + $0x38] sm:$0xff]   ;;  %v2443_v21 = vld [vmem:[%s3318_s5 + $0x30] sm:$0xff]  }
  0xb5   : > { %518 = vadd.xlane.f32.xlu1 %v495_v19  ;;  %520 = vadd.xlane.f32.xlu0 %v496_v24  ;;  %v431_v30 = vpop.xlane.xlu0 %430  ;;  %v433_v31 = vpop.xlane.xlu1 %432  ;;  %v2441_v19 = vld [vmem:[%s3316_s3] sm:$0xff]   ;;  %v2444_v24 = vld [vmem:[%s3318_s5 + $0x28] sm:$0xff]  }
  0xb6   : > { %v450_v33 = vmul.f32 0.0625, %v431_v30  ;;  %v451_v34 = vmul.f32 0.0625, %v433_v31  ;;  %v2815_v35 = vsel %vm405_vm0, %v464_v25, 0.0  ;;  %v2819_v36 = vsel %vm405_vm0, %v465_v26, 0.0  ;;  %2244 = vmatprep.subr.bf16.mxu1 %v2442_v20  ;;  %v2445_v25 = vld [vmem:[%s3318_s5 + $0x20] sm:$0xff]   ;;  %v2446_v26 = vld [vmem:[%s3318_s5 + $0x18] sm:$0xff]  }
  0xb7   : > { %v498_v37 = vmul.f32 %v2815_v35, %v2815_v35  ;;  %v499_v45 = vmul.f32 %v2819_v36, %v2819_v36  ;;  %2221 = vmatpush3.bf16.msra.mxu0 %v2438_v62  ;;  %2245 = vmatpush3.bf16.msra.mxu1 %v2442_v20 }
  0xb8   : > { %v466_v40 = vsub.f32 %v2718_v12, %v450_v33  ;;  %v467_v41 = vsub.f32 %v2720_v13, %v451_v34  ;;  %2222 = vmatprep.subr.bf16.mxu0 %v2439_v16  ;;  %2246 = vmatprep.subr.bf16.mxu1 %v2443_v21 }
  0xb9   : > { %522 = vadd.xlane.f32.xlu1 %v497_v32  ;;  %524 = vadd.xlane.f32.xlu0 %v498_v37  ;;  %v435_v43 = vpop.xlane.xlu0 %434  ;;  %v437_v44 = vpop.xlane.xlu1 %436 }
  0xba   : > { %v452_v46 = vmul.f32 0.0625, %v435_v43  ;;  %v453_v47 = vmul.f32 0.0625, %v437_v44  ;;  %v2832_v50 = vsel %vm405_vm0, %v466_v40, 0.0  ;;  %v2836_v51 = vsel %vm405_vm0, %v467_v41, 0.0 }
  0xbb   : > { %v500_v52 = vmul.f32 %v2832_v50, %v2832_v50  ;;  %v501_v56 = vmul.f32 %v2836_v51, %v2836_v51  ;;  %2223 = vmatpush3.bf16.msra.mxu0 %v2439_v16  ;;  %2247 = vmatpush3.bf16.msra.mxu1 %v2443_v21 }
  0xbc   : > { %v468_v53 = vsub.f32 %v2724_v14, %v452_v46  ;;  %v469_v54 = vsub.f32 %v2728_v15, %v453_v47  ;;  %2224 = vmatprep.subr.bf16.mxu0 %v2440_v18  ;;  %2248 = vmatprep.subr.bf16.mxu1 %v2444_v24 }
  0xbd   : > { %526 = vadd.xlane.f32.xlu1 %v499_v45  ;;  %528 = vadd.xlane.f32.xlu0 %v500_v52 }
  0xbe   : > { %v2849_v57 = vsel %vm405_vm0, %v468_v53, 0.0  ;;  %v2853_v60 = vsel %vm405_vm0, %v469_v54, 0.0 }
  0xbf   : > { %v502_v61 = vmul.f32 %v2849_v57, %v2849_v57  ;;  %v503_v63 = vmul.f32 %v2853_v60, %v2853_v60  ;;  %2225 = vmatpush3.bf16.msra.mxu0 %v2440_v18  ;;  %2249 = vmatpush3.bf16.msra.mxu1 %v2444_v24 }
  0xc0   : > { %2226 = vmatprep.subr.bf16.mxu0 %v2441_v19  ;;  %2250 = vmatprep.subr.bf16.mxu1 %v2445_v25 }
  0xc1   : > { %530 = vadd.xlane.f32.xlu1 %v501_v56  ;;  %532 = vadd.xlane.f32.xlu0 %v502_v61 }
  0xc3   : > { %2227 = vmatpush3.bf16.msra.mxu0 %v2441_v19  ;;  %2251 = vmatpush3.bf16.msra.mxu1 %v2445_v25  ;;  %v2890_v25 = vld [vmem:[%s3314_s1] ss:$0 sm:$0xff] }
  0xc4   : > { %2252 = vmatprep.subr.bf16.mxu1 %v2446_v26 }
  0xc5   : > { %534 = vadd.xlane.f32.xlu1 %v503_v63 }
  0xc7   : > { %2253 = vmatpush3.bf16.msra.mxu1 %v2446_v26 }
 0x12e   : > { %v505_v27 = vpop.xlane.xlu0 %504 }
 0x12f   : > { %v536_v30 = vmul.f32 0.0625, %v505_v27 }
 0x131   : > { %v552_v31 = vadd.f32 1e-05, %v536_v30 }
 0x132   : > { %v507_v32 = vpop.xlane.xlu1 %506  ;;  %v509_v33 = vpop.xlane.xlu0 %508 }
 0x133   : > { %2482 = vrsqrt.f32 %v552_v31  ;;  %v537_v34 = vmul.f32 0.0625, %v507_v32  ;;  %v538_v37 = vmul.f32 0.0625, %v509_v33 }
 0x135   : > { %v553_v40 = vadd.f32 1e-05, %v537_v34  ;;  %v554_v41 = vadd.f32 1e-05, %v538_v37 }
 0x136   : > { %v511_v42 = vpop.xlane.xlu1 %510  ;;  %v513_v43 = vpop.xlane.xlu0 %512 }
 0x137   : > { %2484 = vrsqrt.f32 %v553_v40  ;;  %v539_v44 = vmul.f32 0.0625, %v511_v42  ;;  %v540_v45 = vmul.f32 0.0625, %v513_v43 }
 0x138   : > { %2486 = vrsqrt.f32 %v554_v41 }
 0x139   : > { %v555_v46 = vadd.f32 1e-05, %v539_v44  ;;  %v556_v47 = vadd.f32 1e-05, %v540_v45 }
 0x13a   : > { %v515_v52 = vpop.xlane.xlu1 %514  ;;  %v517_v53 = vpop.xlane.xlu0 %516 }
 0x13b   : > { %2488 = vrsqrt.f32 %v555_v46  ;;  %v541_v54 = vmul.f32 0.0625, %v515_v52  ;;  %v542_v55 = vmul.f32 0.0625, %v517_v53 }
 0x13c   : > { %2490 = vrsqrt.f32 %v556_v47 }
 0x13d   : > { %v557_v56 = vadd.f32 1e-05, %v541_v54  ;;  %v558_v61 = vadd.f32 1e-05, %v542_v55 }
 0x13e   : > { %v519_v62 = vpop.xlane.xlu1 %518  ;;  %v521_v63 = vpop.xlane.xlu0 %520 }
 0x13f   : > { %2492 = vrsqrt.f32 %v557_v56  ;;  %v543_v16 = vmul.f32 0.0625, %v519_v62  ;;  %v544_v18 = vmul.f32 0.0625, %v521_v63 }
 0x140   : > { %v2483_v19 = vpop.eup %2482  ;;  %2494 = vrsqrt.f32 %v558_v61 }
 0x141   : > { %v559_v20 = vadd.f32 1e-05, %v543_v16  ;;  %v560_v21 = vadd.f32 1e-05, %v544_v18  ;;  %v584_v24 = vmul.f32 %v2483_v19, %v2739_v28  ;;  %v2897_v28 = vld [vmem:[%s3315_s2] ss:$0 sm:$0xff] }
 0x142   : > { %v523_v26 = vpop.xlane.xlu1 %522  ;;  %v525_v27 = vpop.xlane.xlu0 %524 }
 0x143   : > { %2496 = vrsqrt.f32 %v559_v20  ;;  %v545_v30 = vmul.f32 0.0625, %v523_v26  ;;  %v546_v31 = vmul.f32 0.0625, %v525_v27  ;;  %v605_v33 = vmul.f32 %v2890_v25, %v584_v24 }
 0x144   : > { %v2485_v32 = vpop.eup %2484  ;;  %2498 = vrsqrt.f32 %v560_v21 }
 0x145   : > { %v2487_v34 = vpop.eup %2486  ;;  %v561_v37 = vadd.f32 1e-05, %v545_v30  ;;  %v562_v40 = vadd.f32 1e-05, %v546_v31  ;;  %v585_v41 = vmul.f32 %v2485_v32, %v2753_v38  ;;  %v626_v53 = vadd.f32 %v2897_v28, %v605_v33 }
 0x146   : > { %v527_v42 = vpop.xlane.xlu1 %526  ;;  %v529_v43 = vpop.xlane.xlu0 %528  ;;  %v586_v44 = vmul.f32 %v2487_v34, %v2743_v29 }
 0x147   : > { %2500 = vrsqrt.f32 %v561_v37  ;;  %v547_v45 = vmul.f32 0.0625, %v527_v42  ;;  %v548_v46 = vmul.f32 0.0625, %v529_v43  ;;  %v606_v47 = vmul.f32 %v2890_v25, %v585_v41 }
 0x148   : > { %v2489_v52 = vpop.eup %2488  ;;  %2502 = vrsqrt.f32 %v562_v40  ;;  %v607_v29 = vmul.f32 %v2890_v25, %v586_v44 }
 0x149   : > { %v2491_v54 = vpop.eup %2490  ;;  %v563_v38 = vadd.f32 1e-05, %v547_v45  ;;  %v564_v55 = vadd.f32 1e-05, %v548_v46  ;;  %v627_v56 = vadd.f32 %v2897_v28, %v606_v47  ;;  %v587_v61 = vmul.f32 %v2489_v52, %v2757_v39 }
 0x14a   : > { %v531_v62 = vpop.xlane.xlu1 %530  ;;  %v533_v63 = vpop.xlane.xlu0 %532  ;;  %v588_v16 = vmul.f32 %v2491_v54, %v2767_v48  ;;  %v628_v33 = vadd.f32 %v2897_v28, %v607_v29 }
 0x14b   : > { %2504 = vrsqrt.f32 %v563_v38  ;;  %v549_v18 = vmul.f32 0.0625, %v531_v62  ;;  %v550_v19 = vmul.f32 0.0625, %v533_v63  ;;  %v642_v20 = vpack.c.bf16 %v627_v56, %v626_v53 }
 0x14c   : > { %v2493_v21 = vpop.eup %2492  ;;  %2506 = vrsqrt.f32 %v564_v55  ;;  %v608_v24 = vmul.f32 %v2890_v25, %v587_v61  ;;  %v609_v26 = vmul.f32 %v2890_v25, %v588_v16 }
 0x14d   : > { %v2495_v27 = vpop.eup %2494  ;;  %v565_v30 = vadd.f32 1e-05, %v549_v18  ;;  %v566_v31 = vadd.f32 1e-05, %v550_v19  ;;  %2228 = vmatprep.mubr.bf16.mxu0 %v642_v20  ;;  %v589_v39 = vmul.f32 %v2493_v21, %v2771_v49 }
 0x14e   : > { %v535_v32 = vpop.xlane.xlu1 %534  ;;  %v629_v48 = vadd.f32 %v2897_v28, %v608_v24  ;;  %v590_v34 = vmul.f32 %v2495_v27, %v2781_v58  ;;  %v630_v43 = vadd.f32 %v2897_v28, %v609_v26 }
 0x14f   : > { %2508 = vrsqrt.f32 %v565_v30  ;;  %v551_v37 = vmul.f32 0.0625, %v535_v32  ;;  %v610_v40 = vmul.f32 %v2890_v25, %v589_v39 }
 0x150   : > { %v2497_v41 = vpop.eup %2496  ;;  %2510 = vrsqrt.f32 %v566_v31  ;;  %v643_v42 = vpack.c.bf16 %v629_v48, %v628_v33  ;;  %v611_v47 = vmul.f32 %v2890_v25, %v590_v34 }
 0x151   : > { %v2499_v44 = vpop.eup %2498  ;;  %v567_v45 = vadd.f32 1e-05, %v551_v37  ;;  %v631_v49 = vadd.f32 %v2897_v28, %v610_v40  ;;  %v591_v46 = vmul.f32 %v2497_v41, %v2785_v59 }
 0x152   : > { %2229 = vmatmul.mubr.bf16.vlgmr.msra.gmra.mxu0 %v643_v42  ;;  %v592_v58 = vmul.f32 %v2499_v44, %v2798_v22  ;;  %v632_v55 = vadd.f32 %v2897_v28, %v611_v47 }
 0x153   : > { %2512 = vrsqrt.f32 %v567_v45  ;;  %v644_v52 = vpack.c.bf16 %v631_v49, %v630_v43  ;;  %v612_v53 = vmul.f32 %v2890_v25, %v591_v46  ;;  %v2447_v45 = vld [vmem:[%s3318_s5 + $0x10] sm:$0xff]   ;;  %v2032_v46 = vld [vmem:[%s3317_s4] ss:$0 sm:$0xff] }
 0x154   : > { %v2501_v54 = vpop.eup %2500  ;;  %v613_v59 = vmul.f32 %v2890_v25, %v592_v58  ;;  %2254 = vmatprep.subr.bf16.mxu1 %v2447_v45 }
 0x155   : > { %v2503_v38 = vpop.eup %2502  ;;  %2232 = vmatprep.mubr.bf16.mxu0 %v644_v52  ;;  %v633_v56 = vadd.f32 %v2897_v28, %v612_v53  ;;  %v593_v61 = vmul.f32 %v2501_v54, %v2802_v23  ;;  %2255 = vmatpush3.bf16.msra.mxu1 %v2447_v45 }
 0x156   : > { %v594_v62 = vmul.f32 %v2503_v38, %v2815_v35  ;;  %v634_v18 = vadd.f32 %v2897_v28, %v613_v59 }
 0x157   : > { %v645_v63 = vpack.c.bf16 %v633_v56, %v632_v55  ;;  %v614_v22 = vmul.f32 %v2890_v25, %v593_v61 }
 0x158   : > { %v2505_v29 = vpop.eup %2504  ;;  %v615_v21 = vmul.f32 %v2890_v25, %v594_v62 }
 0x159   : > { %v2507_v16 = vpop.eup %2506  ;;  %v635_v19 = vadd.f32 %v2897_v28, %v614_v22  ;;  %v595_v20 = vmul.f32 %v2505_v29, %v2819_v36 }
 0x15a   : > { %2233 = vmatmul.mubr.bf16.gmra.mxu0 %v645_v63  ;;  %v596_v23 = vmul.f32 %v2507_v16, %v2832_v50  ;;  %v636_v30 = vadd.f32 %v2897_v28, %v615_v21 }
 0x15b   : > { %v646_v24 = vpack.c.bf16 %v635_v19, %v634_v18  ;;  %v616_v26 = vmul.f32 %v2890_v25, %v595_v20 }
 0x15c   : > { %v2509_v35 = vpop.eup %2508  ;;  %v617_v32 = vmul.f32 %v2890_v25, %v596_v23 }
 0x15d   : > { %v2511_v27 = vpop.eup %2510  ;;  %2236 = vmatprep.mubr.bf16.mxu0 %v646_v24  ;;  %v637_v31 = vadd.f32 %v2897_v28, %v616_v26  ;;  %v597_v39 = vmul.f32 %v2509_v35, %v2836_v51 }
 0x15e   : > { %v598_v36 = vmul.f32 %v2511_v27, %v2849_v57  ;;  %v638_v34 = vadd.f32 %v2897_v28, %v617_v32 }
 0x15f   : > { %v647_v33 = vpack.c.bf16 %v637_v31, %v636_v30  ;;  %v618_v48 = vmul.f32 %v2890_v25, %v597_v39 }
 0x160   : > { %v2513_v50 = vpop.eup %2512  ;;  %v619_v41 = vmul.f32 %v2890_v25, %v598_v36 }
 0x161   : > { %v639_v37 = vadd.f32 %v2897_v28, %v618_v48  ;;  %v599_v40 = vmul.f32 %v2513_v50, %v2853_v60  ;;  %v2448_v60 = vld [vmem:[%s3318_s5 + $0x8] sm:$0xff]  }
 0x162   : > { %2237 = vmatmul.mubr.bf16.gmra.mxu0 %v647_v33  ;;  %v640_v43 = vadd.f32 %v2897_v28, %v619_v41  ;;  %2256 = vmatprep.subr.bf16.mxu1 %v2448_v60 }
 0x163   : > { %v648_v42 = vpack.c.bf16 %v639_v37, %v638_v34  ;;  %v620_v51 = vmul.f32 %v2890_v25, %v599_v40  ;;  %2257 = vmatpush3.bf16.msra.mxu1 %v2448_v60  ;;  %v2449_v25 = vld [vmem:[%s3318_s5] sm:$0xff]  }
 0x164   : > { %2258 = vmatprep.subr.bf16.mxu1 %v2449_v25 }
 0x165   : > { %2240 = vmatprep.mubr.bf16.mxu0 %v648_v42  ;;  %v641_v57 = vadd.f32 %v2897_v28, %v620_v51 }
 0x167   : > { %v649_v44 = vpack.c.bf16 %v641_v57, %v640_v43  ;;  %2259 = vmatpush3.bf16.msra.mxu1 %v2449_v25 }
 0x16a   : > { %2241 = vmatmul.mubr.bf16.gmra.mxu0 %v649_v44 }
 0x212   : > { %v2230_v28 = vpop.f32.mrf.mxu0 }
 0x213   : > { %v762_v53 = vadd.f32 %v2230_v28, %v2032_v46 }
 0x214   : > { %v753_v49 = vpop.f32.mrf.mxu0 }
 0x215   : > { %v754_v58 = vadd.f32 %v2032_v46, %v753_v49  ;;  %v818_v62 = vmax.f32 %v762_v53, 0.0 }
 0x216   : > { %v2231_v47 = vpop.f32.mrf.mxu0 }
 0x217   : > { %v765_v52 = vadd.f32 %v2231_v47, %v2032_v46  ;;  %v816_v61 = vmax.f32 %v754_v58, 0.0 }
 0x218   : > { %v756_v54 = vpop.f32.mrf.mxu0 }
 0x219   : > { %v757_v38 = vadd.f32 %v2032_v46, %v756_v54  ;;  %v819_v55 = vmax.f32 %v765_v52, 0.0 }
 0x21a   : > { %v2234_v56 = vpop.f32.mrf.mxu0 }
 0x21b   : > { %v817_v59 = vmax.f32 %v757_v38, 0.0  ;;  %v833_v29 = vpack.c.bf16 %v819_v55, %v818_v62  ;;  %v778_v20 = vadd.f32 %v2234_v56, %v2032_v46 }
 0x21c   : > { %v769_v63 = vpop.f32.mrf.mxu0 }
 0x21d   : > { %v832_v22 = vpack.c.bf16 %v817_v59, %v816_v61  ;;  %v770_v18 = vadd.f32 %v2032_v46, %v769_v63  ;;  %v822_v30 = vmax.f32 %v778_v20, 0.0  ;;  %v2041_v59 = vld [vmem:[%s3319_s6] ss:$0 sm:$0xff] }
 0x21e   : > { %v2235_v16 = vpop.f32.mrf.mxu0 }
 0x21f   : > { %v781_v19 = vadd.f32 %v2235_v16, %v2032_v46  ;;  %2260 = vmatprep.mubr.bf16.mxu1 %v832_v22  ;;  %v820_v35 = vmax.f32 %v770_v18, 0.0 }
 0x220   : > { %v772_v21 = vpop.f32.mrf.mxu0  ;;  %2261 = vmatmul.mubr.bf16.vlgmr.msra.gmra.mxu1 %v833_v29 }
 0x221   : > { %v773_v23 = vadd.f32 %v2032_v46, %v772_v21  ;;  %v823_v24 = vmax.f32 %v781_v19, 0.0 }
 0x222   : > { %v2238_v26 = vpop.f32.mrf.mxu0 }
 0x223   : > { %v821_v27 = vmax.f32 %v773_v23, 0.0  ;;  %v835_v32 = vpack.c.bf16 %v823_v24, %v822_v30  ;;  %v794_v50 = vadd.f32 %v2238_v26, %v2032_v46 }
 0x224   : > { %v785_v31 = vpop.f32.mrf.mxu0 }
 0x225   : > { %v834_v39 = vpack.c.bf16 %v821_v27, %v820_v35  ;;  %v786_v33 = vadd.f32 %v2032_v46, %v785_v31  ;;  %v826_v43 = vmax.f32 %v794_v50, 0.0 }
 0x226   : > { %v2239_v36 = vpop.f32.mrf.mxu0 }
 0x227   : > { %v797_v48 = vadd.f32 %v2239_v36, %v2032_v46  ;;  %2264 = vmatprep.mubr.bf16.mxu1 %v834_v39  ;;  %v824_v42 = vmax.f32 %v786_v33, 0.0 }
 0x228   : > { %v788_v34 = vpop.f32.mrf.mxu0  ;;  %2265 = vmatmul.mubr.bf16.gmra.mxu1 %v835_v32 }
 0x229   : > { %v789_v37 = vadd.f32 %v2032_v46, %v788_v34  ;;  %v827_v40 = vmax.f32 %v797_v48, 0.0 }
 0x22a   : > { %v2242_v41 = vpop.f32.mrf.mxu0 }
 0x22b   : > { %v825_v51 = vmax.f32 %v789_v37, 0.0  ;;  %v837_v45 = vpack.c.bf16 %v827_v40, %v826_v43  ;;  %v810_v49 = vadd.f32 %v2242_v41, %v2032_v46 }
 0x22c   : > { %v801_v57 = vpop.f32.mrf.mxu0 }
 0x22d   : > { %v836_v44 = vpack.c.bf16 %v825_v51, %v824_v42  ;;  %v802_v25 = vadd.f32 %v2032_v46, %v801_v57  ;;  %v830_v38 = vmax.f32 %v810_v49, 0.0 }
 0x22e   : > { %v2243_v60 = vpop.f32.mrf.mxu0 }
 0x22f   : > { %v813_v28 = vadd.f32 %v2243_v60, %v2032_v46  ;;  %2268 = vmatprep.mubr.bf16.mxu1 %v836_v44  ;;  %v828_v53 = vmax.f32 %v802_v25, 0.0 }
 0x230   : > { %v804_v47 = vpop.f32.mrf.mxu0  ;;  %2269 = vmatmul.mubr.bf16.gmra.mxu1 %v837_v45 }
 0x231   : > { %v805_v58 = vadd.f32 %v2032_v46, %v804_v47  ;;  %v831_v52 = vmax.f32 %v813_v28, 0.0 }
 0x233   : > { %v829_v54 = vmax.f32 %v805_v58, 0.0  ;;  %v839_v56 = vpack.c.bf16 %v831_v52, %v830_v38 }
 0x235   : > { %v838_v55 = vpack.c.bf16 %v829_v54, %v828_v53 }
 0x237   : > { %2272 = vmatprep.mubr.bf16.mxu1 %v838_v55 }
 0x238   : > { %2273 = vmatmul.mubr.bf16.gmra.mxu1 %v839_v56 }
 0x2e0   : > { %v2262_v61 = vpop.f32.mrf.mxu1 }
 0x2e1   : > { %v952_v29 = vadd.f32 %v2262_v61, %v2041_v59 }
 0x2e2   : > { %v943_v62 = vpop.f32.mrf.mxu1 }
 0x2e3   : > { %v944_v63 = vadd.f32 %v2041_v59, %v943_v62  ;;  %v2964_v20 = vadd.f32 %v952_v29, %v2686_v1 }
 0x2e4   : > { %v2263_v22 = vpop.f32.mrf.mxu1 }
 0x2e5   : > { %v2960_v16 = vadd.f32 %v944_v63, %v2684_v0  ;;  %v955_v21 = vadd.f32 %v2263_v22, %v2041_v59 }
 0x2e6   : > { %v946_v46 = vpop.f32.mrf.mxu1 }
 0x2e7   : > { %v947_v18 = vadd.f32 %v2041_v59, %v946_v46  ;;  %1022 = vadd.xlane.f32.xlu0 %v2960_v16  ;;  %v2972_v35 = vadd.f32 %v955_v21, %v2692_v3 }
 0x2e8   : > { %v2266_v19 = vpop.f32.mrf.mxu1 }
 0x2e9   : > { %v2967_v23 = vadd.f32 %v947_v18, %v2690_v2  ;;  %v968_v27 = vadd.f32 %v2266_v19, %v2041_v59 }
 0x2ea   : > { %v959_v24 = vpop.f32.mrf.mxu1 }
 0x2eb   : > { %v960_v26 = vadd.f32 %v2041_v59, %v959_v24  ;;  %1024 = vadd.xlane.f32.xlu1 %v2967_v23  ;;  %1026 = vadd.xlane.f32.xlu0 %v2964_v20  ;;  %v2980_v39 = vadd.f32 %v968_v27, %v2700_v6 }
 0x2ec   : > { %v2267_v0 = vpop.f32.mrf.mxu1 }
 0x2ed   : > { %v2975_v30 = vadd.f32 %v960_v26, %v2694_v4  ;;  %v971_v32 = vadd.f32 %v2267_v0, %v2041_v59 }
 0x2ee   : > { %v962_v1 = vpop.f32.mrf.mxu1 }
 0x2ef   : > { %v963_v31 = vadd.f32 %v2041_v59, %v962_v1  ;;  %1028 = vadd.xlane.f32.xlu1 %v2972_v35  ;;  %1030 = vadd.xlane.f32.xlu0 %v2975_v30  ;;  %v2988_v48 = vadd.f32 %v971_v32, %v2702_v7 }
 0x2f0   : > { %v2270_v2 = vpop.f32.mrf.mxu1 }
 0x2f1   : > { %v2983_v36 = vadd.f32 %v963_v31, %v2698_v5  ;;  %v984_v50 = vadd.f32 %v2270_v2, %v2041_v59 }
 0x2f2   : > { %v975_v3 = vpop.f32.mrf.mxu1 }
 0x2f3   : > { %v976_v33 = vadd.f32 %v2041_v59, %v975_v3  ;;  %1032 = vadd.xlane.f32.xlu1 %v2983_v36  ;;  %1034 = vadd.xlane.f32.xlu0 %v2980_v39  ;;  %v2996_v40 = vadd.f32 %v984_v50, %v2712_v10 }
 0x2f4   : > { %v2271_v4 = vpop.f32.mrf.mxu1 }
 0x2f5   : > { %v2991_v34 = vadd.f32 %v976_v33, %v2706_v8  ;;  %v987_v41 = vadd.f32 %v2271_v4, %v2041_v59 }
 0x2f6   : > { %v978_v6 = vpop.f32.mrf.mxu1 }
 0x2f7   : > { %v979_v37 = vadd.f32 %v2041_v59, %v978_v6  ;;  %1036 = vadd.xlane.f32.xlu1 %v2988_v48  ;;  %1038 = vadd.xlane.f32.xlu0 %v2991_v34  ;;  %v3004_v43 = vadd.f32 %v987_v41, %v2714_v11  ;;  %v2450_v41 = vld [vmem:[%s3316_s3 + $0x78] sm:$0xff]  }
 0x2f8   : > { %v2274_v5 = vpop.f32.mrf.mxu1  ;;  %2276 = vmatprep.subr.bf16.mxu0 %v2450_v41 }
 0x2f9   : > { %v2999_v42 = vadd.f32 %v979_v37, %v2710_v9  ;;  %v1000_v57 = vadd.f32 %v2274_v5, %v2041_v59  ;;  %2277 = vmatpush3.bf16.msra.mxu0 %v2450_v41 }
 0x2fa   : > { %v991_v7 = vpop.f32.mrf.mxu1 }
 0x2fb   : > { %v992_v51 = vadd.f32 %v2041_v59, %v991_v7  ;;  %1040 = vadd.xlane.f32.xlu1 %v2999_v42  ;;  %1042 = vadd.xlane.f32.xlu0 %v2996_v40  ;;  %v3012_v9 = vadd.f32 %v1000_v57, %v2724_v14 }
 0x2fc   : > { %v2275_v8 = vpop.f32.mrf.mxu1 }
 0x2fd   : > { %v3007_v44 = vadd.f32 %v992_v51, %v2718_v12  ;;  %v1003_v60 = vadd.f32 %v2275_v8, %v2041_v59 }
 0x2fe   : > { %v994_v10 = vpop.f32.mrf.mxu1 }
 0x2ff   : > { %v995_v45 = vadd.f32 %v2041_v59, %v994_v10  ;;  %1044 = vadd.xlane.f32.xlu1 %v3004_v43  ;;  %1046 = vadd.xlane.f32.xlu0 %v3007_v44  ;;  %v3020_v11 = vadd.f32 %v1003_v60, %v2728_v15 }
 0x301   : > { %v3015_v25 = vadd.f32 %v995_v45, %v2720_v13 }
 0x303   : > { %1048 = vadd.xlane.f32.xlu1 %v3015_v25  ;;  %1050 = vadd.xlane.f32.xlu0 %v3012_v9 }
 0x307   : > { %1052 = vadd.xlane.f32.xlu1 %v3020_v11 }
 0x370   : > { %v1023_v12 = vpop.xlane.xlu0 %1022 }
 0x371   : > { %v1054_v28 = vmul.f32 0.0625, %v1023_v12 }
 0x373   : > { %v1070_v49 = vsub.f32 %v2960_v16, %v1054_v28 }
 0x374   : > { %v1025_v47 = vpop.xlane.xlu1 %1024  ;;  %v1027_v14 = vpop.xlane.xlu0 %1026 }
 0x375   : > { %v1055_v58 = vmul.f32 0.0625, %v1025_v47  ;;  %v1056_v52 = vmul.f32 0.0625, %v1027_v14  ;;  %v3026_v13 = vsel %vm405_vm0, %v1070_v49, 0.0 }
 0x376   : > { %v1102_v53 = vmul.f32 %v3026_v13, %v3026_v13 }
 0x377   : > { %v1071_v15 = vsub.f32 %v2967_v23, %v1055_v58  ;;  %v1072_v54 = vsub.f32 %v2964_v20, %v1056_v52  ;;  %v2451_v58 = vld [vmem:[%s3316_s3 + $0x70] sm:$0xff]  }
 0x378   : > { %v1029_v38 = vpop.xlane.xlu1 %1028  ;;  %1118 = vadd.xlane.f32.xlu0 %v1102_v53  ;;  %v1031_v55 = vpop.xlane.xlu0 %1030  ;;  %2278 = vmatprep.subr.bf16.mxu0 %v2451_v58 }
 0x379   : > { %v1057_v56 = vmul.f32 0.0625, %v1029_v38  ;;  %v1058_v61 = vmul.f32 0.0625, %v1031_v55  ;;  %v3034_v59 = vsel %vm405_vm0, %v1071_v15, 0.0  ;;  %v3038_v62 = vsel %vm405_vm0, %v1072_v54, 0.0  ;;  %2279 = vmatpush3.bf16.msra.mxu0 %v2451_v58  ;;  %v2461_v58 = vld [vmem:[%s3318_s5 + $0x60] sm:$0xff]  }
 0x37a   : > { %v1103_v63 = vmul.f32 %v3034_v59, %v3034_v59  ;;  %v1104_v22 = vmul.f32 %v3038_v62, %v3038_v62 }
 0x37b   : > { %v1073_v29 = vsub.f32 %v2972_v35, %v1057_v56  ;;  %v1074_v46 = vsub.f32 %v2975_v30, %v1058_v61 }
 0x37c   : > { %v1033_v18 = vpop.xlane.xlu1 %1032  ;;  %1120 = vadd.xlane.f32.xlu1 %v1103_v63  ;;  %1122 = vadd.xlane.f32.xlu0 %v1104_v22  ;;  %v1035_v19 = vpop.xlane.xlu0 %1034 }
 0x37d   : > { %v1059_v21 = vmul.f32 0.0625, %v1033_v18  ;;  %v1060_v24 = vmul.f32 0.0625, %v1035_v19  ;;  %v3048_v26 = vsel %vm405_vm0, %v1073_v29, 0.0  ;;  %v3052_v0 = vsel %vm405_vm0, %v1074_v46, 0.0  ;;  %v2452_v29 = vld [vmem:[%s3316_s3 + $0x68] sm:$0xff]  }
 0x37e   : > { %v1105_v27 = vmul.f32 %v3048_v26, %v3048_v26  ;;  %v1106_v1 = vmul.f32 %v3052_v0, %v3052_v0  ;;  %2280 = vmatprep.subr.bf16.mxu0 %v2452_v29 }
 0x37f   : > { %v1075_v31 = vsub.f32 %v2983_v36, %v1059_v21  ;;  %v1076_v2 = vsub.f32 %v2980_v39, %v1060_v24  ;;  %2281 = vmatpush3.bf16.msra.mxu0 %v2452_v29 }
 0x380   : > { %v1037_v32 = vpop.xlane.xlu1 %1036  ;;  %1124 = vadd.xlane.f32.xlu1 %v1105_v27  ;;  %1126 = vadd.xlane.f32.xlu0 %v1106_v1  ;;  %v1039_v3 = vpop.xlane.xlu0 %1038 }
 0x381   : > { %v1061_v33 = vmul.f32 0.0625, %v1037_v32  ;;  %v1062_v4 = vmul.f32 0.0625, %v1039_v3  ;;  %v3062_v50 = vsel %vm405_vm0, %v1075_v31, 0.0  ;;  %v3066_v6 = vsel %vm405_vm0, %v1076_v2, 0.0  ;;  %v2453_v3 = vld [vmem:[%s3316_s3 + $0x60] sm:$0xff]  }
 0x382   : > { %v1107_v37 = vmul.f32 %v3062_v50, %v3062_v50  ;;  %v1108_v5 = vmul.f32 %v3066_v6, %v3066_v6  ;;  %2282 = vmatprep.subr.bf16.mxu0 %v2453_v3 }
 0x383   : > { %v1077_v7 = vsub.f32 %v2988_v48, %v1061_v33  ;;  %v1078_v51 = vsub.f32 %v2991_v34, %v1062_v4  ;;  %2283 = vmatpush3.bf16.msra.mxu0 %v2453_v3 }
 0x384   : > { %v1041_v8 = vpop.xlane.xlu1 %1040  ;;  %1128 = vadd.xlane.f32.xlu1 %v1107_v37  ;;  %1130 = vadd.xlane.f32.xlu0 %v1108_v5  ;;  %v1043_v57 = vpop.xlane.xlu0 %1042 }
 0x385   : > { %v1063_v10 = vmul.f32 0.0625, %v1041_v8  ;;  %v1064_v45 = vmul.f32 0.0625, %v1043_v57  ;;  %v3079_v60 = vsel %vm405_vm0, %v1077_v7, 0.0  ;;  %v3083_v12 = vsel %vm405_vm0, %v1078_v51, 0.0  ;;  %v2454_v8 = vld [vmem:[%s3316_s3 + $0x58] sm:$0xff]  }
 0x386   : > { %v1109_v28 = vmul.f32 %v3079_v60, %v3079_v60  ;;  %v1110_v49 = vmul.f32 %v3083_v12, %v3083_v12  ;;  %2284 = vmatprep.subr.bf16.mxu0 %v2454_v8 }
 0x387   : > { %v1079_v47 = vsub.f32 %v2999_v42, %v1063_v10  ;;  %v1080_v14 = vsub.f32 %v2996_v40, %v1064_v45  ;;  %2285 = vmatpush3.bf16.msra.mxu0 %v2454_v8  ;;  %v2455_v45 = vld [vmem:[%s3316_s3 + $0x50] sm:$0xff]  }
 0x388   : > { %v1045_v52 = vpop.xlane.xlu1 %1044  ;;  %1132 = vadd.xlane.f32.xlu1 %v1109_v28  ;;  %1134 = vadd.xlane.f32.xlu0 %v1110_v49  ;;  %v1047_v53 = vpop.xlane.xlu0 %1046  ;;  %v2456_v28 = vld [vmem:[%s3316_s3 + $0x48] sm:$0xff]   ;;  %v2458_v49 = vld [vmem:[%s3318_s5 + $0x78] sm:$0xff]  }
 0x389   : > { %v1065_v15 = vmul.f32 0.0625, %v1045_v52  ;;  %v1066_v54 = vmul.f32 0.0625, %v1047_v53  ;;  %v3096_v38 = vsel %vm405_vm0, %v1079_v47, 0.0  ;;  %v3100_v55 = vsel %vm405_vm0, %v1080_v14, 0.0  ;;  %2286 = vmatprep.subr.bf16.mxu0 %v2455_v45  ;;  %v2459_v47 = vld [vmem:[%s3318_s5 + $0x70] sm:$0xff]   ;;  %2308 = vmatprep.subr.bf16.mxu1 %v2458_v49  ;;  %v2460_v14 = vld [vmem:[%s3318_s5 + $0x68] sm:$0xff]  }
 0x38a   : > { %v1111_v56 = vmul.f32 %v3096_v38, %v3096_v38  ;;  %v1112_v61 = vmul.f32 %v3100_v55, %v3100_v55  ;;  %2309 = vmatpush3.bf16.msra.mxu1 %v2458_v49  ;;  %v2462_v52 = vld [vmem:[%s3318_s5 + $0x58] sm:$0xff]  }
 0x38b   : > { %v1081_v63 = vsub.f32 %v3004_v43, %v1065_v15  ;;  %v1082_v22 = vsub.f32 %v3007_v44, %v1066_v54  ;;  %2287 = vmatpush3.bf16.msra.mxu0 %v2455_v45  ;;  %2310 = vmatprep.subr.bf16.mxu1 %v2459_v47 }
 0x38c   : > { %1136 = vadd.xlane.f32.xlu1 %v1111_v56  ;;  %v1049_v46 = vpop.xlane.xlu1 %1048  ;;  %1138 = vadd.xlane.f32.xlu0 %v1112_v61  ;;  %v1051_v18 = vpop.xlane.xlu0 %1050 }
 0x38d   : > { %v1067_v19 = vmul.f32 0.0625, %v1049_v46  ;;  %v1068_v21 = vmul.f32 0.0625, %v1051_v18  ;;  %v3113_v24 = vsel %vm405_vm0, %v1081_v63, 0.0  ;;  %v3117_v27 = vsel %vm405_vm0, %v1082_v22, 0.0  ;;  %2288 = vmatprep.subr.bf16.mxu0 %v2456_v28 }
 0x38e   : > { %v1113_v1 = vmul.f32 %v3113_v24, %v3113_v24  ;;  %v1114_v31 = vmul.f32 %v3117_v27, %v3117_v27  ;;  %2311 = vmatpush3.bf16.msra.mxu1 %v2459_v47 }
 0x38f   : > { %v1083_v2 = vsub.f32 %v3015_v25, %v1067_v19  ;;  %v1084_v32 = vsub.f32 %v3012_v9, %v1068_v21  ;;  %2289 = vmatpush3.bf16.msra.mxu0 %v2456_v28  ;;  %2312 = vmatprep.subr.bf16.mxu1 %v2460_v14 }
 0x390   : > { %1140 = vadd.xlane.f32.xlu1 %v1113_v1  ;;  %v1053_v33 = vpop.xlane.xlu1 %1052  ;;  %1142 = vadd.xlane.f32.xlu0 %v1114_v31 }
 0x391   : > { %v1069_v4 = vmul.f32 0.0625, %v1053_v33  ;;  %v3130_v37 = vsel %vm405_vm0, %v1083_v2, 0.0  ;;  %v3134_v5 = vsel %vm405_vm0, %v1084_v32, 0.0  ;;  %2290 = vmatprep.subr.bf16.mxu0 %v2457_v17 }
 0x392   : > { %v1115_v41 = vmul.f32 %v3130_v37, %v3130_v37  ;;  %v1116_v7 = vmul.f32 %v3134_v5, %v3134_v5  ;;  %2313 = vmatpush3.bf16.msra.mxu1 %v2460_v14  ;;  %v3178_v14 = vld [vmem:[%s3314_s1 + $0x1] ss:$0 sm:$0xff] }
 0x393   : > { %v1085_v51 = vsub.f32 %v3020_v11, %v1069_v4  ;;  %2291 = vmatpush3.bf16.msra.mxu0 %v2457_v17  ;;  %2314 = vmatprep.subr.bf16.mxu1 %v2461_v58 }
 0x394   : > { %1144 = vadd.xlane.f32.xlu1 %v1115_v41  ;;  %1146 = vadd.xlane.f32.xlu0 %v1116_v7 }
 0x395   : > { %v3146_v57 = vsel %vm405_vm0, %v1085_v51, 0.0 }
 0x396   : > { %v1117_v10 = vmul.f32 %v3146_v57, %v3146_v57  ;;  %2315 = vmatpush3.bf16.msra.mxu1 %v2461_v58 }
 0x397   : > { %2316 = vmatprep.subr.bf16.mxu1 %v2462_v52 }
 0x398   : > { %1148 = vadd.xlane.f32.xlu1 %v1117_v10 }
 0x39a   : > { %2317 = vmatpush3.bf16.msra.mxu1 %v2462_v52 }
 0x401   : > { %v1119_v53 = vpop.xlane.xlu0 %1118 }
 0x402   : > { %v1150_v15 = vmul.f32 0.0625, %v1119_v53 }
 0x404   : > { %v1166_v54 = vadd.f32 1e-05, %v1150_v15 }
 0x405   : > { %v1121_v56 = vpop.xlane.xlu1 %1120  ;;  %v1123_v61 = vpop.xlane.xlu0 %1122 }
 0x406   : > { %2514 = vrsqrt.f32 %v1166_v54  ;;  %v1151_v63 = vmul.f32 0.0625, %v1121_v56  ;;  %v1152_v22 = vmul.f32 0.0625, %v1123_v61 }
 0x408   : > { %v1167_v29 = vadd.f32 1e-05, %v1151_v63  ;;  %v1168_v46 = vadd.f32 1e-05, %v1152_v22 }
 0x409   : > { %v1125_v18 = vpop.xlane.xlu1 %1124  ;;  %v1127_v19 = vpop.xlane.xlu0 %1126 }
 0x40a   : > { %2516 = vrsqrt.f32 %v1167_v29  ;;  %v1153_v21 = vmul.f32 0.0625, %v1125_v18  ;;  %v1154_v1 = vmul.f32 0.0625, %v1127_v19 }
 0x40b   : > { %2518 = vrsqrt.f32 %v1168_v46 }
 0x40c   : > { %v1169_v31 = vadd.f32 1e-05, %v1153_v21  ;;  %v1170_v2 = vadd.f32 1e-05, %v1154_v1 }
 0x40d   : > { %v1129_v32 = vpop.xlane.xlu1 %1128  ;;  %v1131_v3 = vpop.xlane.xlu0 %1130 }
 0x40e   : > { %2520 = vrsqrt.f32 %v1169_v31  ;;  %v1155_v33 = vmul.f32 0.0625, %v1129_v32  ;;  %v1156_v4 = vmul.f32 0.0625, %v1131_v3 }
 0x40f   : > { %2522 = vrsqrt.f32 %v1170_v2 }
 0x410   : > { %v1171_v41 = vadd.f32 1e-05, %v1155_v33  ;;  %v1172_v7 = vadd.f32 1e-05, %v1156_v4 }
 0x411   : > { %v1133_v51 = vpop.xlane.xlu1 %1132  ;;  %v1135_v8 = vpop.xlane.xlu0 %1134 }
 0x412   : > { %2524 = vrsqrt.f32 %v1171_v41  ;;  %v1157_v10 = vmul.f32 0.0625, %v1133_v51  ;;  %v1158_v45 = vmul.f32 0.0625, %v1135_v8 }
 0x413   : > { %v2515_v28 = vpop.eup %2514  ;;  %2526 = vrsqrt.f32 %v1172_v7 }
 0x414   : > { %v1173_v17 = vadd.f32 1e-05, %v1157_v10  ;;  %v1174_v49 = vadd.f32 1e-05, %v1158_v45  ;;  %v1198_v47 = vmul.f32 %v2515_v28, %v3026_v13  ;;  %v3185_v13 = vld [vmem:[%s3315_s2 + $0x1] ss:$0 sm:$0xff] }
 0x415   : > { %v1137_v58 = vpop.xlane.xlu1 %1136  ;;  %v1139_v52 = vpop.xlane.xlu0 %1138 }
 0x416   : > { %2528 = vrsqrt.f32 %v1173_v17  ;;  %v1159_v53 = vmul.f32 0.0625, %v1137_v58  ;;  %v1160_v15 = vmul.f32 0.0625, %v1139_v52  ;;  %v1219_v56 = vmul.f32 %v3178_v14, %v1198_v47 }
 0x417   : > { %v2517_v54 = vpop.eup %2516  ;;  %2530 = vrsqrt.f32 %v1174_v49 }
 0x418   : > { %v2519_v61 = vpop.eup %2518  ;;  %v1175_v63 = vadd.f32 1e-05, %v1159_v53  ;;  %v1176_v22 = vadd.f32 1e-05, %v1160_v15  ;;  %v1199_v29 = vmul.f32 %v2517_v54, %v3034_v59  ;;  %v1240_v32 = vadd.f32 %v3185_v13, %v1219_v56 }
 0x419   : > { %v1200_v46 = vmul.f32 %v2519_v61, %v3038_v62  ;;  %v1141_v18 = vpop.xlane.xlu1 %1140  ;;  %v1143_v19 = vpop.xlane.xlu0 %1142 }
 0x41a   : > { %2532 = vrsqrt.f32 %v1175_v63  ;;  %v1161_v21 = vmul.f32 0.0625, %v1141_v18  ;;  %v1162_v1 = vmul.f32 0.0625, %v1143_v19  ;;  %v1220_v31 = vmul.f32 %v3178_v14, %v1199_v29 }
 0x41b   : > { %v2521_v2 = vpop.eup %2520  ;;  %2534 = vrsqrt.f32 %v1176_v22  ;;  %v1221_v51 = vmul.f32 %v3178_v14, %v1200_v46 }
 0x41c   : > { %v2523_v3 = vpop.eup %2522  ;;  %v1201_v59 = vmul.f32 %v2521_v2, %v3048_v26  ;;  %v1177_v33 = vadd.f32 1e-05, %v1161_v21  ;;  %v1178_v4 = vadd.f32 1e-05, %v1162_v1  ;;  %v1241_v41 = vadd.f32 %v3185_v13, %v1220_v31 }
 0x41d   : > { %v1145_v7 = vpop.xlane.xlu1 %1144  ;;  %v1147_v62 = vpop.xlane.xlu0 %1146  ;;  %v1202_v8 = vmul.f32 %v2523_v3, %v3052_v0  ;;  %v1242_v54 = vadd.f32 %v3185_v13, %v1221_v51 }
 0x41e   : > { %2536 = vrsqrt.f32 %v1177_v33  ;;  %v1163_v10 = vmul.f32 0.0625, %v1145_v7  ;;  %v1164_v45 = vmul.f32 0.0625, %v1147_v62  ;;  %v1256_v28 = vpack.c.bf16 %v1241_v41, %v1240_v32 }
 0x41f   : > { %v2525_v17 = vpop.eup %2524  ;;  %2538 = vrsqrt.f32 %v1178_v4  ;;  %v1222_v49 = vmul.f32 %v3178_v14, %v1201_v59  ;;  %v1223_v26 = vmul.f32 %v3178_v14, %v1202_v8 }
 0x420   : > { %v2527_v47 = vpop.eup %2526  ;;  %v1179_v58 = vadd.f32 1e-05, %v1163_v10  ;;  %v1180_v52 = vadd.f32 1e-05, %v1164_v45  ;;  %2292 = vmatprep.mubr.bf16.mxu0 %v1256_v28  ;;  %v1203_v53 = vmul.f32 %v2525_v17, %v3062_v50 }
 0x421   : > { %v1149_v15 = vpop.xlane.xlu1 %1148  ;;  %v1243_v0 = vadd.f32 %v3185_v13, %v1222_v49  ;;  %v1204_v56 = vmul.f32 %v2527_v47, %v3066_v6  ;;  %v1244_v46 = vadd.f32 %v3185_v13, %v1223_v26 }
 0x422   : > { %2540 = vrsqrt.f32 %v1179_v58  ;;  %v1165_v61 = vmul.f32 0.0625, %v1149_v15  ;;  %v1224_v63 = vmul.f32 %v3178_v14, %v1203_v53 }
 0x423   : > { %v2529_v22 = vpop.eup %2528  ;;  %2542 = vrsqrt.f32 %v1180_v52  ;;  %v1257_v29 = vpack.c.bf16 %v1243_v0, %v1242_v54  ;;  %v1225_v1 = vmul.f32 %v3178_v14, %v1204_v56 }
 0x424   : > { %v2531_v18 = vpop.eup %2530  ;;  %v1181_v19 = vadd.f32 1e-05, %v1165_v61  ;;  %v1245_v50 = vadd.f32 %v3185_v13, %v1224_v63  ;;  %v1205_v21 = vmul.f32 %v2529_v22, %v3079_v60 }
 0x425   : > { %2293 = vmatmul.mubr.bf16.vlgmr.msra.gmra.mxu0 %v1257_v29  ;;  %v1206_v6 = vmul.f32 %v2531_v18, %v3083_v12  ;;  %v1246_v59 = vadd.f32 %v3185_v13, %v1225_v1  ;;  %v2463_v18 = vld [vmem:[%s3318_s5 + $0x50] sm:$0xff]   ;;  %v2470_v1 = vld [vmem:[%s3320_s7 + $0x18] sm:$0xff]  }
 0x426   : > { %2544 = vrsqrt.f32 %v1181_v19  ;;  %v1258_v31 = vpack.c.bf16 %v1245_v50, %v1244_v46  ;;  %v1226_v2 = vmul.f32 %v3178_v14, %v1205_v21  ;;  %2318 = vmatprep.subr.bf16.mxu1 %v2463_v18  ;;  %v2467_v19 = vld [vmem:[%s3320_s7 + $0x30] sm:$0xff]   ;;  %v2468_v50 = vld [vmem:[%s3320_s7 + $0x28] sm:$0xff]   ;;  %v2469_v21 = vld [vmem:[%s3320_s7 + $0x20] sm:$0xff]  }
 0x427   : > { %v2533_v32 = vpop.eup %2532  ;;  %v1227_v60 = vmul.f32 %v3178_v14, %v1206_v6  ;;  %2319 = vmatpush3.bf16.msra.mxu1 %v2463_v18 }
 0x428   : > { %v2535_v3 = vpop.eup %2534  ;;  %2296 = vmatprep.mubr.bf16.mxu0 %v1258_v31  ;;  %v1247_v33 = vadd.f32 %v3185_v13, %v1226_v2  ;;  %v1207_v4 = vmul.f32 %v2533_v32, %v3096_v38  ;;  %v2068_v2 = vld [vmem:[%s3317_s4 + $0x1] ss:$0 sm:$0xff] }
 0x429   : > { %v1208_v41 = vmul.f32 %v2535_v3, %v3100_v55  ;;  %v1248_v8 = vadd.f32 %v3185_v13, %v1227_v60 }
 0x42a   : > { %v1259_v7 = vpack.c.bf16 %v1247_v33, %v1246_v59  ;;  %v1228_v12 = vmul.f32 %v3178_v14, %v1207_v4 }
 0x42b   : > { %v2537_v62 = vpop.eup %2536  ;;  %v1229_v28 = vmul.f32 %v3178_v14, %v1208_v41 }
 0x42c   : > { %v2539_v51 = vpop.eup %2538  ;;  %v1249_v10 = vadd.f32 %v3185_v13, %v1228_v12  ;;  %v1209_v45 = vmul.f32 %v2537_v62, %v3113_v24 }
 0x42d   : > { %2297 = vmatmul.mubr.bf16.gmra.mxu0 %v1259_v7  ;;  %v1210_v38 = vmul.f32 %v2539_v51, %v3117_v27  ;;  %v1250_v47 = vadd.f32 %v3185_v13, %v1229_v28 }
 0x42e   : > { %v1260_v17 = vpack.c.bf16 %v1249_v10, %v1248_v8  ;;  %v1230_v49 = vmul.f32 %v3178_v14, %v1209_v45 }
 0x42f   : > { %v2541_v55 = vpop.eup %2540  ;;  %v1231_v53 = vmul.f32 %v3178_v14, %v1210_v38 }
 0x430   : > { %v2543_v26 = vpop.eup %2542  ;;  %2300 = vmatprep.mubr.bf16.mxu0 %v1260_v17  ;;  %v1251_v58 = vadd.f32 %v3185_v13, %v1230_v49  ;;  %v1211_v52 = vmul.f32 %v2541_v55, %v3130_v37 }
 0x431   : > { %v1212_v24 = vmul.f32 %v2543_v26, %v3134_v5  ;;  %v1252_v0 = vadd.f32 %v3185_v13, %v1231_v53 }
 0x432   : > { %v1261_v15 = vpack.c.bf16 %v1251_v58, %v1250_v47  ;;  %v1232_v54 = vmul.f32 %v3178_v14, %v1211_v52 }
 0x433   : > { %v2545_v27 = vpop.eup %2544  ;;  %v1233_v63 = vmul.f32 %v3178_v14, %v1212_v24 }
 0x434   : > { %v1253_v56 = vadd.f32 %v3185_v13, %v1232_v54  ;;  %v1213_v61 = vmul.f32 %v2545_v27, %v3146_v57  ;;  %v2464_v57 = vld [vmem:[%s3318_s5 + $0x48] sm:$0xff]  }
 0x435   : > { %2301 = vmatmul.mubr.bf16.gmra.mxu0 %v1261_v15  ;;  %v1254_v29 = vadd.f32 %v3185_v13, %v1233_v63  ;;  %2320 = vmatprep.subr.bf16.mxu1 %v2464_v57 }
 0x436   : > { %v1262_v22 = vpack.c.bf16 %v1253_v56, %v1252_v0  ;;  %v1234_v37 = vmul.f32 %v3178_v14, %v1213_v61  ;;  %2321 = vmatpush3.bf16.msra.mxu1 %v2464_v57  ;;  %v2465_v14 = vld [vmem:[%s3318_s5 + $0x40] sm:$0xff]  }
 0x437   : > { %2322 = vmatprep.subr.bf16.mxu1 %v2465_v14 }
 0x438   : > { %2304 = vmatprep.mubr.bf16.mxu0 %v1262_v22  ;;  %v1255_v5 = vadd.f32 %v3185_v13, %v1234_v37  ;;  %v2466_v13 = vld [vmem:[%s3320_s7 + $0x38] sm:$0xff]  }
 0x439   : > { %2340 = vmatprep.subr.bf16.mxu0 %v2466_v13 }
 0x43a   : > { %v1263_v46 = vpack.c.bf16 %v1255_v5, %v1254_v29  ;;  %2323 = vmatpush3.bf16.msra.mxu1 %v2465_v14  ;;  %2341 = vmatpush3.bf16.msra.mxu0 %v2466_v13 }
 0x43b   : > { %2342 = vmatprep.subr.bf16.mxu0 %v2467_v19 }
 0x43d   : > { %2305 = vmatmul.mubr.bf16.gmra.mxu0 %v1263_v46 }
 0x43e   : > { %2343 = vmatpush3.bf16.msra.mxu0 %v2467_v19 }
 0x43f   : > { %2344 = vmatprep.subr.bf16.mxu0 %v2468_v50 }
 0x442   : > { %2345 = vmatpush3.bf16.msra.mxu0 %v2468_v50 }
 0x443   : > { %2346 = vmatprep.subr.bf16.mxu0 %v2469_v21 }
 0x446   : > { %2347 = vmatpush3.bf16.msra.mxu0 %v2469_v21 }
 0x447   : > { %2348 = vmatprep.subr.bf16.mxu0 %v2470_v1 }
 0x44a   : > { %2349 = vmatpush3.bf16.msra.mxu0 %v2470_v1 }
 0x4e5   : > { %v2294_v6 = vpop.f32.mrf.mxu0 }
 0x4e6   : > { %v1377_v33 = vadd.f32 %v2294_v6, %v2068_v2 }
 0x4e7   : > { %v1368_v31 = vpop.f32.mrf.mxu0 }
 0x4e8   : > { %v1369_v3 = vadd.f32 %v2068_v2, %v1368_v31  ;;  %v1433_v51 = vmax.f32 %v1377_v33, 0.0 }
 0x4e9   : > { %v2295_v32 = vpop.f32.mrf.mxu0 }
 0x4ea   : > { %v1380_v59 = vadd.f32 %v2295_v32, %v2068_v2  ;;  %v1431_v12 = vmax.f32 %v1369_v3, 0.0 }
 0x4eb   : > { %v1371_v4 = vpop.f32.mrf.mxu0 }
 0x4ec   : > { %v1372_v60 = vadd.f32 %v2068_v2, %v1371_v4  ;;  %v1434_v41 = vmax.f32 %v1380_v59, 0.0 }
 0x4ed   : > { %v2298_v7 = vpop.f32.mrf.mxu0 }
 0x4ee   : > { %v1432_v62 = vmax.f32 %v1372_v60, 0.0  ;;  %v1448_v45 = vpack.c.bf16 %v1434_v41, %v1433_v51  ;;  %v1393_v49 = vadd.f32 %v2298_v7, %v2068_v2  ;;  %v2471_v7 = vld [vmem:[%s3320_s7 + $0x10] sm:$0xff]  }
 0x4ef   : > { %v1384_v8 = vpop.f32.mrf.mxu0  ;;  %2350 = vmatprep.subr.bf16.mxu0 %v2471_v7 }
 0x4f0   : > { %v1447_v10 = vpack.c.bf16 %v1432_v62, %v1431_v12  ;;  %v1385_v38 = vadd.f32 %v2068_v2, %v1384_v8  ;;  %v1437_v24 = vmax.f32 %v1393_v49, 0.0  ;;  %2351 = vmatpush3.bf16.msra.mxu0 %v2471_v7  ;;  %v2472_v12 = vld [vmem:[%s3320_s7 + $0x8] sm:$0xff]   ;;  %v2093_v8 = vld [vmem:[%s3319_s6 + $0x1] ss:$0 sm:$0xff]  ;;  %v2586_v7 = vmov 0.0  }
 0x4f1   : > { %v2299_v28 = vpop.f32.mrf.mxu0  ;;  %2352 = vmatprep.subr.bf16.mxu0 %v2472_v12  ;;  %2372 = vmatprep.subr.bf16.mxu1 %v2586_v7 }
 0x4f2   : > { %v1396_v17 = vadd.f32 %v2299_v28, %v2068_v2  ;;  %2324 = vmatprep.mubr.bf16.mxu1 %v1447_v10  ;;  %v1435_v52 = vmax.f32 %v1385_v38, 0.0 }
 0x4f3   : > { %v1387_v55 = vpop.f32.mrf.mxu0  ;;  %2325 = vmatmul.mubr.bf16.vlgmr.msra.gmra.mxu1 %v1448_v45 }
 0x4f4   : > { %v1388_v26 = vadd.f32 %v2068_v2, %v1387_v55  ;;  %v1438_v47 = vmax.f32 %v1396_v17, 0.0  ;;  %2353 = vmatpush3.bf16.msra.mxu0 %v2472_v12  ;;  %v2478_v12 = vld [vmem:[%s1811_s28 + $0x18] sm:$0xff]  }
 0x4f5   : > { %v2302_v58 = vpop.f32.mrf.mxu0 }
 0x4f6   : > { %v1436_v53 = vmax.f32 %v1388_v26, 0.0  ;;  %v1450_v27 = vpack.c.bf16 %v1438_v47, %v1437_v24  ;;  %v1409_v63 = vadd.f32 %v2302_v58, %v2068_v2 }
 0x4f7   : > { %v1400_v15 = vpop.f32.mrf.mxu0 }
 0x4f8   : > { %v1449_v54 = vpack.c.bf16 %v1436_v53, %v1435_v52  ;;  %v1401_v56 = vadd.f32 %v2068_v2, %v1400_v15  ;;  %v1441_v57 = vmax.f32 %v1409_v63, 0.0 }
 0x4f9   : > { %v2303_v0 = vpop.f32.mrf.mxu0 }
 0x4fa   : > { %v1412_v61 = vadd.f32 %v2303_v0, %v2068_v2  ;;  %2328 = vmatprep.mubr.bf16.mxu1 %v1449_v54  ;;  %v1439_v46 = vmax.f32 %v1401_v56, 0.0 }
 0x4fb   : > { %v1403_v22 = vpop.f32.mrf.mxu0  ;;  %2329 = vmatmul.mubr.bf16.gmra.mxu1 %v1450_v27 }
 0x4fc   : > { %v1404_v37 = vadd.f32 %v2068_v2, %v1403_v22  ;;  %v1442_v29 = vmax.f32 %v1412_v61, 0.0 }
 0x4fd   : > { %v2306_v5 = vpop.f32.mrf.mxu0 }
 0x4fe   : > { %v1440_v18 = vmax.f32 %v1404_v37, 0.0  ;;  %v1452_v19 = vpack.c.bf16 %v1442_v29, %v1441_v57  ;;  %v1425_v6 = vadd.f32 %v2306_v5, %v2068_v2 }
 0x4ff   : > { %v1416_v14 = vpop.f32.mrf.mxu0 }
 0x500   : > { %v1451_v13 = vpack.c.bf16 %v1440_v18, %v1439_v46  ;;  %v1417_v21 = vadd.f32 %v2068_v2, %v1416_v14  ;;  %v1445_v4 = vmax.f32 %v1425_v6, 0.0 }
 0x501   : > { %v2307_v50 = vpop.f32.mrf.mxu0 }
 0x502   : > { %v1428_v1 = vadd.f32 %v2307_v50, %v2068_v2  ;;  %2332 = vmatprep.mubr.bf16.mxu1 %v1451_v13  ;;  %v1443_v59 = vmax.f32 %v1417_v21, 0.0 }
 0x503   : > { %v1419_v31 = vpop.f32.mrf.mxu0  ;;  %2333 = vmatmul.mubr.bf16.gmra.mxu1 %v1452_v19 }
 0x504   : > { %v1420_v32 = vadd.f32 %v2068_v2, %v1419_v31  ;;  %v1446_v3 = vmax.f32 %v1428_v1, 0.0  ;;  %v2473_v2 = vld [vmem:[%s3320_s7] sm:$0xff]  }
 0x505   : > { %2354 = vmatprep.subr.bf16.mxu0 %v2473_v2 }
 0x506   : > { %v1444_v33 = vmax.f32 %v1420_v32, 0.0  ;;  %v1454_v41 = vpack.c.bf16 %v1446_v3, %v1445_v4  ;;  %2355 = vmatpush3.bf16.msra.mxu0 %v2473_v2  ;;  %v2479_v2 = vld [vmem:[%s1811_s28 + $0x10] sm:$0xff]  }
 0x508   : > { %v1453_v60 = vpack.c.bf16 %v1444_v33, %v1443_v59 }
 0x50a   : > { %2336 = vmatprep.mubr.bf16.mxu1 %v1453_v60 }
 0x50b   : > { %2337 = vmatmul.mubr.bf16.gmra.mxu1 %v1454_v41 }
 0x50c   : > { %2388 = vmatprep.mubr.msk.bf16.mxu1 %vm2587_vm1, %v2586_v7 }
 0x5b3   : > { %v2326_v62 = vpop.f32.mrf.mxu1 }
 0x5b4   : > { %v1568_v38 = vadd.f32 %v2326_v62, %v2093_v8  ;;  %v2480_v62 = vld [vmem:[%s1811_s28 + $0x8] sm:$0xff]  }
 0x5b5   : > { %v1559_v51 = vpop.f32.mrf.mxu1 }
 0x5b6   : > { %v1560_v45 = vadd.f32 %v2093_v8, %v1559_v51  ;;  %v1624_v52 = vadd.f32 %v1568_v38, %v2964_v20  ;;  %v2481_v51 = vld [vmem:[%s1811_s28] sm:$0xff]  }
 0x5b7   : > { %v2327_v10 = vpop.f32.mrf.mxu1 }
 0x5b8   : > { %v1571_v28 = vadd.f32 %v2327_v10, %v2093_v8  ;;  %v1622_v47 = vadd.f32 %v1560_v45, %v2960_v16 }
 0x5b9   : > { %v1562_v17 = vpop.f32.mrf.mxu1 }
 0x5ba   : > { %v1563_v49 = vadd.f32 %v2093_v8, %v1562_v17  ;;  %v1625_v55 = vadd.f32 %v1571_v28, %v2972_v35 }
 0x5bb   : > { %v2330_v26 = vpop.f32.mrf.mxu1 }
 0x5bc   : > { %v1623_v58 = vadd.f32 %v1563_v49, %v2967_v23  ;;  %v1639_v15 = vpack.c.bf16 %v1625_v55, %v1624_v52  ;;  %v1584_v56 = vadd.f32 %v2330_v26, %v2093_v8 }
 0x5bd   : > { %v1575_v53 = vpop.f32.mrf.mxu1 }
 0x5be   : > { %v1638_v24 = vpack.c.bf16 %v1623_v58, %v1622_v47  ;;  %v1576_v27 = vadd.f32 %v2093_v8, %v1575_v53  ;;  %v1628_v20 = vadd.f32 %v1584_v56, %v2980_v39 }
 0x5bf   : > { %v2331_v54 = vpop.f32.mrf.mxu1 }
 0x5c0   : > { %v1587_v0 = vadd.f32 %v2331_v54, %v2093_v8  ;;  %2356 = vmatprep.mubr.bf16.mxu0 %v1638_v24  ;;  %v1626_v16 = vadd.f32 %v1576_v27, %v2975_v30 }
 0x5c1   : > { %v1578_v61 = vpop.f32.mrf.mxu1  ;;  %2357 = vmatmul.mubr.bf16.vlgmr.msra.gmra.mxu0 %v1639_v15 }
 0x5c2   : > { %v1579_v63 = vadd.f32 %v2093_v8, %v1578_v61  ;;  %v1629_v35 = vadd.f32 %v1587_v0, %v2988_v48 }
 0x5c3   : > { %v2334_v22 = vpop.f32.mrf.mxu1 }
 0x5c4   : > { %v1627_v23 = vadd.f32 %v1579_v63, %v2983_v36  ;;  %v1641_v46 = vpack.c.bf16 %v1629_v35, %v1628_v20  ;;  %v1600_v14 = vadd.f32 %v2334_v22, %v2093_v8 }
 0x5c5   : > { %v1591_v37 = vpop.f32.mrf.mxu1 }
 0x5c6   : > { %v1640_v29 = vpack.c.bf16 %v1627_v23, %v1626_v16  ;;  %v1592_v18 = vadd.f32 %v2093_v8, %v1591_v37  ;;  %v1632_v39 = vadd.f32 %v1600_v14, %v2996_v40 }
 0x5c7   : > { %v2335_v5 = vpop.f32.mrf.mxu1 }
 0x5c8   : > { %v1603_v57 = vadd.f32 %v2335_v5, %v2093_v8  ;;  %2360 = vmatprep.mubr.bf16.mxu0 %v1640_v29  ;;  %v1630_v30 = vadd.f32 %v1592_v18, %v2991_v34 }
 0x5c9   : > { %v1594_v13 = vpop.f32.mrf.mxu1  ;;  %2361 = vmatmul.mubr.bf16.gmra.mxu0 %v1641_v46 }
 0x5ca   : > { %v1595_v19 = vadd.f32 %v2093_v8, %v1594_v13  ;;  %v1633_v48 = vadd.f32 %v1603_v57, %v3004_v43 }
 0x5cb   : > { %v2338_v50 = vpop.f32.mrf.mxu1 }
 0x5cc   : > { %v1631_v36 = vadd.f32 %v1595_v19, %v2999_v42  ;;  %v1643_v31 = vpack.c.bf16 %v1633_v48, %v1632_v39  ;;  %v1616_v59 = vadd.f32 %v2338_v50, %v2093_v8 }
 0x5cd   : > { %v1607_v21 = vpop.f32.mrf.mxu1 }
 0x5ce   : > { %v1642_v1 = vpack.c.bf16 %v1631_v36, %v1630_v30  ;;  %v1608_v32 = vadd.f32 %v2093_v8, %v1607_v21  ;;  %v1636_v40 = vadd.f32 %v1616_v59, %v3012_v9  ;;  %v2476_v9 = vld [vmem:[%s1811_s28 + $0x28] sm:$0xff]  }
 0x5cf   : > { %v2339_v6 = vpop.f32.mrf.mxu1 }
 0x5d0   : > { %v1619_v3 = vadd.f32 %v2339_v6, %v2093_v8  ;;  %2364 = vmatprep.mubr.bf16.mxu0 %v1642_v1  ;;  %v1634_v34 = vadd.f32 %v1608_v32, %v3007_v44  ;;  %v2474_v44 = vld [vmem:[%s1811_s28 + $0x38] sm:$0xff]  }
 0x5d1   : > { %v1610_v33 = vpop.f32.mrf.mxu1  ;;  %2365 = vmatmul.mubr.bf16.gmra.mxu0 %v1643_v31  ;;  %2373 = vmatpush3.bf16.msra.mxu1 %v2474_v44 }
 0x5d2   : > { %v1611_v4 = vadd.f32 %v2093_v8, %v1610_v33  ;;  %v1637_v43 = vadd.f32 %v1619_v3, %v3020_v11  ;;  %2374 = vmatprep.subr.bf16.mxu1 %v2586_v7  ;;  %v2477_v11 = vld [vmem:[%s1811_s28 + $0x20] sm:$0xff]  }
 0x5d4   : > { %v1635_v42 = vadd.f32 %v1611_v4, %v3015_v25  ;;  %v1645_v41 = vpack.c.bf16 %v1637_v43, %v1636_v40  ;;  %v2475_v25 = vld [vmem:[%s1811_s28 + $0x30] sm:$0xff]  }
 0x5d5   : > { %2375 = vmatpush3.bf16.msra.mxu1 %v2475_v25 }
 0x5d6   : > { %v1644_v60 = vpack.c.bf16 %v1635_v42, %v1634_v34  ;;  %2376 = vmatprep.subr.bf16.mxu1 %v2586_v7 }
 0x5d8   : > { %2368 = vmatprep.mubr.bf16.mxu0 %v1644_v60 }
 0x5d9   : > { %2369 = vmatmul.mubr.bf16.gmra.mxu0 %v1645_v41  ;;  %2377 = vmatpush3.bf16.msra.mxu1 %v2476_v9 }
 0x5da   : > { %2378 = vmatprep.subr.bf16.mxu1 %v2586_v7 }
 0x5dd   : > { %2379 = vmatpush3.bf16.msra.mxu1 %v2477_v11 }
 0x5de   : > { %2380 = vmatprep.subr.bf16.mxu1 %v2586_v7 }
 0x5e1   : > { %2381 = vmatpush3.bf16.msra.mxu1 %v2478_v12 }
 0x5e2   : > { %2382 = vmatprep.subr.bf16.mxu1 %v2586_v7 }
 0x5e5   : > { %2383 = vmatpush3.bf16.msra.mxu1 %v2479_v2 }
 0x5e6   : > { %2384 = vmatprep.subr.bf16.mxu1 %v2586_v7 }
 0x5e9   : > { %2385 = vmatpush3.bf16.msra.mxu1 %v2480_v62 }
 0x5ea   : > { %2386 = vmatprep.subr.bf16.mxu1 %v2586_v7 }
 0x5ed   : > { %2387 = vmatpush3.bf16.msra.mxu1 %v2481_v51 }
 0x681   : > { %v2358_v8 = vpop.f32.mrf.mxu0 }
 0x683   : > { %v1744_v10 = vpop.f32.mrf.mxu0 }
 0x685   : > { %v2359_v45 = vpop.f32.mrf.mxu0 }
 0x686   : > { %v1829_v55 = vpack.c.bf16 %v2359_v45, %v2358_v8 }
 0x687   : > { %v1747_v28 = vpop.f32.mrf.mxu0 }
 0x688   : > { %v1828_v38 = vpack.c.bf16 %v1747_v28, %v1744_v10 }
 0x689   : > { %v2362_v17 = vpop.f32.mrf.mxu0 }
 0x68a   : > { %1836 = vxpose.xlu0.c.b16.start [1/8] (narrow) %v1828_v38, 16 }
 0x68b   : > { %v1760_v49 = vpop.f32.mrf.mxu0 }
 0x68d   : > { %v2363_v26 = vpop.f32.mrf.mxu0 }
 0x68e   : > { %1837 = vxpose.xlu0.c.b16.cont [2/8] (narrow) %v1829_v55, 16  ;;  %v1831_v24 = vpack.c.bf16 %v2363_v26, %v2362_v17 }
 0x68f   : > { %v1763_v47 = vpop.f32.mrf.mxu0 }
 0x690   : > { %v1830_v58 = vpack.c.bf16 %v1763_v47, %v1760_v49 }
 0x691   : > { %v2366_v52 = vpop.f32.mrf.mxu0 }
 0x692   : > { %1838 = vxpose.xlu0.c.b16.cont [3/8] (narrow) %v1830_v58, 16 }
 0x693   : > { %v1776_v53 = vpop.f32.mrf.mxu0 }
 0x695   : > { %v2367_v15 = vpop.f32.mrf.mxu0 }
 0x696   : > { %1839 = vxpose.xlu0.c.b16.cont [4/8] (narrow) %v1831_v24, 16  ;;  %v1833_v61 = vpack.c.bf16 %v2367_v15, %v2366_v52 }
 0x697   : > { %v1779_v54 = vpop.f32.mrf.mxu0 }
 0x698   : > { %v1832_v27 = vpack.c.bf16 %v1779_v54, %v1776_v53 }
 0x699   : > { %v2370_v0 = vpop.f32.mrf.mxu0 }
 0x69a   : > { %1840 = vxpose.xlu0.c.b16.cont [5/8] (narrow) %v1832_v27, 16 }
 0x69b   : > { %v1792_v56 = vpop.f32.mrf.mxu0 }
 0x69d   : > { %v2371_v63 = vpop.f32.mrf.mxu0 }
 0x69e   : > { %1841 = vxpose.xlu0.c.b16.cont [6/8] (narrow) %v1833_v61, 16  ;;  %v1835_v16 = vpack.c.bf16 %v2371_v63, %v2370_v0 }
 0x69f   : > { %v1795_v35 = vpop.f32.mrf.mxu0 }
 0x6a0   : > { %v1834_v22 = vpack.c.bf16 %v1795_v35, %v1792_v56 }
 0x6a2   : > { %1842 = vxpose.xlu0.c.b16.cont [7/8] (narrow) %v1834_v22, 16 }
 0x6a6   : > { %1843 = vxpose.xlu0.c.b16.end [8/8] (narrow) %v1835_v16, 16 }
 0x6ec   : > { %v1844_v23 = vpop.trf.xlu0 }
 0x6ed   : > { %2389 = vmatmul.mubr.bf16.vlgmr.msra.gmra.mxu1 %v1844_v23 }
 0x7ad   : > { %v1934_v20 = vpop.f32.mrf.mxu1 }
 0x7af   : > { %v2390_v37 = vpop.f32.mrf.mxu1  ;;  %1943 = sbr.rel (%p2120_p7) target bundleno = 1974 (0x7b6), region = 64 }
 0x7b1   : > { %v1937_v29 = vpop.f32.mrf.mxu1 }
 0x7b3   : > { %v2391_v5 = vpop.f32.mrf.mxu1 }
 0x7b4   : > { %v1944_v46 = vld [vmem:[%s3322_s9] sm:$0xff] }
 0x7b5   : > { %1945 = vst [vmem:[%s2679_s26] sm:$0xff] %v1944_v46 }
 0x7b6 PF:  {}
 0x7bc   : > { %v1946_v18 = vld [vmem:[%s2679_s26] sm:$0xff] }
 0x7bd   : > { %v1947_v57 = vadd.f32 %v1946_v18, %v1934_v20 }
 0x7bf   : > { %1948 = vst [vmem:[%s2679_s26] sm:$0xff] %v1947_v57 }
 0x7c0 PF: > { %s20_s17 = sadd.s32 1, %s2584_s17   ;;  %s3324_s13 = smov %s2576_s15 }
 0x7c1   : > { %p17_p8 = scmp.ge.s32.totalorder %s20_s17, 6   ;;  %s3325_s14 = smov %s2580_s16 }
 0x7c2   : > { %s3326_s15 = smov %s3329_s18  ;;  %s3327_s16 = smov %s3333_s19 }
 0x7c3   :  { %19 = sbr.rel (!%p17_p8) target bundleno = 3 (0x3), region = 97 }

// kernel: mixvpr_forward.1
= control target key start
LH: loop header
LB: loop body
LE: loop exit
PB: predicated region body
PF: predicated region fallthrough
CT: control target
= control target key end

     0   :  { %s2643_s13 = smov 0   ;;  %s2645_s14 = smov 0   ;;  %s3313_s0 = inlined_call_operand.vmem [shape: f32[2,256,128], index: 0, kind: input, shape index: {}]   ;;  %s3314_s1 = inlined_call_operand.vmem [shape: f32[2,128], index: 1, kind: input, shape index: {}]   ;;  %s3315_s2 = inlined_call_operand.vmem [shape: f32[2,128], index: 2, kind: input, shape index: {}]   ;;  %s3316_s3 = inlined_call_operand.vmem [shape: bf16[2,128,128], index: 3, kind: input, shape index: {}]   ;;  %s3317_s4 = inlined_call_operand.vmem [shape: f32[2,128], index: 4, kind: input, shape index: {}]   ;;  %s3318_s5 = inlined_call_operand.vmem [shape: bf16[2,128,128], index: 5, kind: input, shape index: {}]   ;;  %s3319_s6 = inlined_call_operand.vmem [shape: f32[2,128], index: 6, kind: input, shape index: {}]   ;;  %s3320_s7 = inlined_call_operand.vmem [shape: bf16[128,8], index: 7, kind: input, shape index: {}]   ;;  %s3321_s8 = inlined_call_operand.vmem [shape: bf16[256,128], index: 8, kind: input, shape index: {}]   ;;  %s3322_s9 = inlined_call_operand.vmem [shape: f32[8,128], index: 9, kind: input, shape index: {}]   ;;  %s3323_s10 = inlined_call_operand.vmem [shape: f32[2,8,128], index: 10, kind: output, shape index: {}]  }
   0x1   :  { %s2647_s15 = smov 0   ;;  %s2649_s16 = smov 0  }
   0x2   :  { %s2651_s17 = smov 0  }
   0x3 LB: > { %s29_s18 = sadd.s32 1, %s2576_s15  ;;  %s32_s19 = sadd.s32 1, %s2580_s16  ;;  %s2584_s17 = sphi %s2651_s17, %s20_s17   ;;  %s2580_s16 = sphi %s2649_s16, %s3327_s16   ;;  %s2576_s15 = sphi %s2647_s15, %s3326_s15   ;;  %s2572_s14 = sphi %s2645_s14, %s3325_s14   ;;  %s2568_s13 = sphi %s2643_s13, %s3324_s13  }
   0x4   : > { %p30_p0 = scmp.ge.s32.totalorder %s29_s18, 2  ;;  %p2025_p1 = scmp.ge.s32.totalorder %s2584_s17, 1 }
   0x5   : > { %p331_p2 = scmp.lt.s32.totalorder %s2584_s17, 5 }
   0x6   : > { %s3329_s18 = smov (%p30_p0, %s29_s18), 0  ;;  %s3331_s19 = smov (!%p30_p0, %s32_s19), %s2580_s16 }
   0x7   : > { %p332_p3 = pnand %p2025_p1, %p331_p2  ;;  %p34_p4 = scmp.ge.s32.totalorder %s3331_s19, 2 }
   0x8   : > { %s2026_s20 = sshll.u32 (!%p332_p3), %s2568_s13, 4  ;;  %p373_p5 = scmp.lt.s32.totalorder (!%p332_p3), %s2572_s14, 1 }
   0x9   : > { %s3333_s19 = smov (%p34_p4, %s3331_s19), 0  ;;  %335 = sbr.rel (%p332_p3) target bundleno = 1984 (0x7c0), region = 60 }
   0xa   : > { %p375_p6 = scmp.lt.s32.totalorder (!%p332_p3), %s2026_s20, 31  ;;  %p2120_p7 = scmp.ne.s32.totalorder (!%p332_p3), %s2568_s13, 0 }
   0xe   : > { %s3335_s14 = smov (!%p373_p5, %s2572_s14), 1  ;;  %s3337_s20 = smov (!%p375_p6, %s2026_s20), 31  ;;  %v403_v16 = vlaneseq  ;;  %v2434_v61 = vld [vmem:[%s3316_s3 + $0x38] sm:$0xff]   ;;  %vm2587_vm1 = vmmov 0  }
   0xf   : > { %s2027_s21 = sshll.u32 %s3335_s14, 5  ;;  %s2029_s22 = sshll.u32 %s3335_s14, 3  ;;  %2212 = vmatprep.subr.bf16.mxu0 %v2434_v61 }
  0x10   : > { %s378_s23 = sadd.s32 %s2027_s21, %s3337_s20  ;;  %s2679_s26 = scalar_lea.vmem %s3323_s10, %s2029_s22  ;;  %v2732_v17 = vand.u32 127, %v403_v16  ;;  %2213 = vmatpush3.bf16.msra.mxu0 %v2434_v61 }
  0x11   : > { %s2028_s27 = sshll.u32 %s378_s23, 3  ;;  %s2110_s22 = sshll.u32 %s2568_s13, 7 }
  0x12   : > { %s380_s30 = scalar_lea.vmem %s3313_s0, %s2028_s27  ;;  %vm405_vm0 = vcmp.lt.s32.totalorder %v2732_v17, 16  ;;  %v2457_v17 = vld [vmem:[%s3316_s3 + $0x40] sm:$0xff]   ;;  %s1808_s23 = sshra.s32 %s2110_s22, 3 }
  0x13   : > { %v2684_v0 = vld [vmem:[%s380_s30] sm:$0xff]  ;;  %v2686_v1 = vld [vmem:[%s380_s30 + $0x10] sm:$0xff]  ;;  %v2690_v2 = vld [vmem:[%s380_s30 + $0x8] sm:$0xff]  ;;  %s2111_s24 = sshll.u32 %s1808_s23, 2 }
  0x14   : > { %406 = vadd.xlane.f32.xlu0 %v2684_v0  ;;  %410 = vadd.xlane.f32.xlu1 %v2686_v1  ;;  %v2692_v3 = vld [vmem:[%s380_s30 + $0x18] sm:$0xff]  ;;  %v2694_v4 = vld [vmem:[%s380_s30 + $0x20] sm:$0xff]  ;;  %v2698_v5 = vld [vmem:[%s380_s30 + $0x28] sm:$0xff]  ;;  %s1811_s28 = scalar_lea.vmem %s3321_s8, %s2111_s24 }
  0x15   : > { %v2700_v6 = vld [vmem:[%s380_s30 + $0x30] sm:$0xff]  ;;  %v2702_v7 = vld [vmem:[%s380_s30 + $0x38] sm:$0xff]  ;;  %v2706_v8 = vld [vmem:[%s380_s30 + $0x40] sm:$0xff] }
  0x16   : > { %v2710_v9 = vld [vmem:[%s380_s30 + $0x48] sm:$0xff]  ;;  %v2712_v10 = vld [vmem:[%s380_s30 + $0x50] sm:$0xff]  ;;  %v2714_v11 = vld [vmem:[%s380_s30 + $0x58] sm:$0xff] }
  0x17   : > { %v2718_v12 = vld [vmem:[%s380_s30 + $0x60] sm:$0xff]  ;;  %v2720_v13 = vld [vmem:[%s380_s30 + $0x68] sm:$0xff]  ;;  %v2724_v14 = vld [vmem:[%s380_s30 + $0x70] sm:$0xff] }
  0x18   : > { %408 = vadd.xlane.f32.xlu0 %v2690_v2  ;;  %412 = vadd.xlane.f32.xlu1 %v2692_v3  ;;  %v2728_v15 = vld [vmem:[%s380_s30 + $0x78] sm:$0xff] }
  0x1c   : > { %414 = vadd.xlane.f32.xlu0 %v2694_v4  ;;  %416 = vadd.xlane.f32.xlu1 %v2698_v5 }
  0x20   : > { %418 = vadd.xlane.f32.xlu0 %v2700_v6  ;;  %420 = vadd.xlane.f32.xlu1 %v2702_v7 }
  0x24   : > { %422 = vadd.xlane.f32.xlu0 %v2706_v8  ;;  %424 = vadd.xlane.f32.xlu1 %v2710_v9 }
  0x28   : > { %426 = vadd.xlane.f32.xlu0 %v2712_v10  ;;  %428 = vadd.xlane.f32.xlu1 %v2714_v11 }
  0x2c   : > { %430 = vadd.xlane.f32.xlu0 %v2718_v12  ;;  %432 = vadd.xlane.f32.xlu1 %v2720_v13 }
  0x30   : > { %434 = vadd.xlane.f32.xlu0 %v2724_v14  ;;  %436 = vadd.xlane.f32.xlu1 %v2728_v15 }
  0x9d   : > { %v407_v18 = vpop.xlane.xlu0 %406  ;;  %v411_v19 = vpop.xlane.xlu1 %410 }
  0x9e   : > { %v438_v20 = vmul.f32 0.0625, %v407_v18  ;;  %v440_v21 = vmul.f32 0.0625, %v411_v19 }
  0xa0   : > { %v454_v22 = vsub.f32 %v2684_v0, %v438_v20  ;;  %v456_v23 = vsub.f32 %v2686_v1, %v440_v21 }
  0xa1   : > { %v409_v24 = vpop.xlane.xlu0 %408  ;;  %v413_v25 = vpop.xlane.xlu1 %412 }
  0xa2   : > { %v439_v26 = vmul.f32 0.0625, %v409_v24  ;;  %v441_v27 = vmul.f32 0.0625, %v413_v25  ;;  %v2739_v28 = vsel %vm405_vm0, %v454_v22, 0.0  ;;  %v2743_v29 = vsel %vm405_vm0, %v456_v23, 0.0 }
  0xa3   : > { %v488_v30 = vmul.f32 %v2739_v28, %v2739_v28  ;;  %v490_v35 = vmul.f32 %v2743_v29, %v2743_v29 }
  0xa4   : > { %v455_v31 = vsub.f32 %v2690_v2, %v439_v26  ;;  %v457_v32 = vsub.f32 %v2692_v3, %v441_v27  ;;  %v2435_v27 = vld [vmem:[%s3316_s3 + $0x30] sm:$0xff]  }
  0xa5   : > { %504 = vadd.xlane.f32.xlu0 %v488_v30  ;;  %v415_v33 = vpop.xlane.xlu0 %414  ;;  %v417_v34 = vpop.xlane.xlu1 %416  ;;  %2214 = vmatprep.subr.bf16.mxu0 %v2435_v27 }
  0xa6   : > { %v442_v36 = vmul.f32 0.0625, %v415_v33  ;;  %v443_v37 = vmul.f32 0.0625, %v417_v34  ;;  %v2753_v38 = vsel %vm405_vm0, %v455_v31, 0.0  ;;  %v2757_v39 = vsel %vm405_vm0, %v457_v32, 0.0  ;;  %2215 = vmatpush3.bf16.msra.mxu0 %v2435_v27 }
  0xa7   : > { %v489_v40 = vmul.f32 %v2753_v38, %v2753_v38  ;;  %v491_v45 = vmul.f32 %v2757_v39, %v2757_v39 }
  0xa8   : > { %v458_v41 = vsub.f32 %v2694_v4, %v442_v36  ;;  %v459_v42 = vsub.f32 %v2698_v5, %v443_v37 }
  0xa9   : > { %508 = vadd.xlane.f32.xlu0 %v490_v35  ;;  %506 = vadd.xlane.f32.xlu1 %v489_v40  ;;  %v419_v43 = vpop.xlane.xlu0 %418  ;;  %v421_v44 = vpop.xlane.xlu1 %420 }
  0xaa   : > { %v444_v46 = vmul.f32 0.0625, %v419_v43  ;;  %v445_v47 = vmul.f32 0.0625, %v421_v44  ;;  %v2767_v48 = vsel %vm405_vm0, %v458_v41, 0.0  ;;  %v2771_v49 = vsel %vm405_vm0, %v459_v42, 0.0  ;;  %v2436_v42 = vld [vmem:[%s3316_s3 + $0x28] sm:$0xff]  }
  0xab   : > { %v492_v50 = vmul.f32 %v2767_v48, %v2767_v48  ;;  %v493_v55 = vmul.f32 %v2771_v49, %v2771_v49  ;;  %2216 = vmatprep.subr.bf16.mxu0 %v2436_v42 }
  0xac   : > { %v460_v51 = vsub.f32 %v2700_v6, %v444_v46  ;;  %v461_v52 = vsub.f32 %v2702_v7, %v445_v47  ;;  %2217 = vmatpush3.bf16.msra.mxu0 %v2436_v42 }
  0xad   : > { %510 = vadd.xlane.f32.xlu1 %v491_v45  ;;  %512 = vadd.xlane.f32.xlu0 %v492_v50  ;;  %v423_v53 = vpop.xlane.xlu0 %422  ;;  %v425_v54 = vpop.xlane.xlu1 %424 }
  0xae   : > { %v446_v56 = vmul.f32 0.0625, %v423_v53  ;;  %v447_v57 = vmul.f32 0.0625, %v425_v54  ;;  %v2781_v58 = vsel %vm405_vm0, %v460_v51, 0.0  ;;  %v2785_v59 = vsel %vm405_vm0, %v461_v52, 0.0 }
  0xaf   : > { %v494_v60 = vmul.f32 %v2781_v58, %v2781_v58  ;;  %v495_v19 = vmul.f32 %v2785_v59, %v2785_v59 }
  0xb0   : > { %v462_v62 = vsub.f32 %v2706_v8, %v446_v56  ;;  %v463_v63 = vsub.f32 %v2710_v9, %v447_v57 }
  0xb1   : > { %514 = vadd.xlane.f32.xlu1 %v493_v55  ;;  %516 = vadd.xlane.f32.xlu0 %v494_v60  ;;  %v427_v16 = vpop.xlane.xlu0 %426  ;;  %v429_v18 = vpop.xlane.xlu1 %428  ;;  %v2437_v55 = vld [vmem:[%s3316_s3 + $0x20] sm:$0xff]  }
  0xb2   : > { %v448_v20 = vmul.f32 0.0625, %v427_v16  ;;  %v449_v21 = vmul.f32 0.0625, %v429_v18  ;;  %v2798_v22 = vsel %vm405_vm0, %v462_v62, 0.0  ;;  %v2802_v23 = vsel %vm405_vm0, %v463_v63, 0.0  ;;  %2218 = vmatprep.subr.bf16.mxu0 %v2437_v55  ;;  %v2438_v62 = vld [vmem:[%s3316_s3 + $0x18] sm:$0xff]   ;;  %v2439_v16 = vld [vmem:[%s3316_s3 + $0x10] sm:$0xff]  }
  0xb3   : > { %v496_v24 = vmul.f32 %v2798_v22, %v2798_v22  ;;  %v497_v32 = vmul.f32 %v2802_v23, %v2802_v23  ;;  %2219 = vmatpush3.bf16.msra.mxu0 %v2437_v55  ;;  %v2440_v18 = vld [vmem:[%s3316_s3 + $0x8] sm:$0xff]  }
  0xb4   : > { %v464_v25 = vsub.f32 %v2712_v10, %v448_v20  ;;  %v465_v26 = vsub.f32 %v2714_v11, %v449_v21  ;;  %2220 = vmatprep.subr.bf16.mxu0 %v2438_v62  ;;  %v2442_v20 = vld [vmem:[%s3318_s5 + $0x38] sm:$0xff]   ;;  %v2443_v21 = vld [vmem:[%s3318_s5 + $0x30] sm:$0xff]  }
  0xb5   : > { %518 = vadd.xlane.f32.xlu1 %v495_v19  ;;  %520 = vadd.xlane.f32.xlu0 %v496_v24  ;;  %v431_v30 = vpop.xlane.xlu0 %430  ;;  %v433_v31 = vpop.xlane.xlu1 %432  ;;  %v2441_v19 = vld [vmem:[%s3316_s3] sm:$0xff]   ;;  %v2444_v24 = vld [vmem:[%s3318_s5 + $0x28] sm:$0xff]  }
  0xb6   : > { %v450_v33 = vmul.f32 0.0625, %v431_v30  ;;  %v451_v34 = vmul.f32 0.0625, %v433_v31  ;;  %v2815_v35 = vsel %vm405_vm0, %v464_v25, 0.0  ;;  %v2819_v36 = vsel %vm405_vm0, %v465_v26, 0.0  ;;  %2244 = vmatprep.subr.bf16.mxu1 %v2442_v20  ;;  %v2445_v25 = vld [vmem:[%s3318_s5 + $0x20] sm:$0xff]   ;;  %v2446_v26 = vld [vmem:[%s3318_s5 + $0x18] sm:$0xff]  }
  0xb7   : > { %v498_v37 = vmul.f32 %v2815_v35, %v2815_v35  ;;  %v499_v45 = vmul.f32 %v2819_v36, %v2819_v36  ;;  %2221 = vmatpush3.bf16.msra.mxu0 %v2438_v62  ;;  %2245 = vmatpush3.bf16.msra.mxu1 %v2442_v20 }
  0xb8   : > { %v466_v40 = vsub.f32 %v2718_v12, %v450_v33  ;;  %v467_v41 = vsub.f32 %v2720_v13, %v451_v34  ;;  %2222 = vmatprep.subr.bf16.mxu0 %v2439_v16  ;;  %2246 = vmatprep.subr.bf16.mxu1 %v2443_v21 }
  0xb9   : > { %522 = vadd.xlane.f32.xlu1 %v497_v32  ;;  %524 = vadd.xlane.f32.xlu0 %v498_v37  ;;  %v435_v43 = vpop.xlane.xlu0 %434  ;;  %v437_v44 = vpop.xlane.xlu1 %436 }
  0xba   : > { %v452_v46 = vmul.f32 0.0625, %v435_v43  ;;  %v453_v47 = vmul.f32 0.0625, %v437_v44  ;;  %v2832_v50 = vsel %vm405_vm0, %v466_v40, 0.0  ;;  %v2836_v51 = vsel %vm405_vm0, %v467_v41, 0.0 }
  0xbb   : > { %v500_v52 = vmul.f32 %v2832_v50, %v2832_v50  ;;  %v501_v56 = vmul.f32 %v2836_v51, %v2836_v51  ;;  %2223 = vmatpush3.bf16.msra.mxu0 %v2439_v16  ;;  %2247 = vmatpush3.bf16.msra.mxu1 %v2443_v21 }
  0xbc   : > { %v468_v53 = vsub.f32 %v2724_v14, %v452_v46  ;;  %v469_v54 = vsub.f32 %v2728_v15, %v453_v47  ;;  %2224 = vmatprep.subr.bf16.mxu0 %v2440_v18  ;;  %2248 = vmatprep.subr.bf16.mxu1 %v2444_v24 }
  0xbd   : > { %526 = vadd.xlane.f32.xlu1 %v499_v45  ;;  %528 = vadd.xlane.f32.xlu0 %v500_v52 }
  0xbe   : > { %v2849_v57 = vsel %vm405_vm0, %v468_v53, 0.0  ;;  %v2853_v60 = vsel %vm405_vm0, %v469_v54, 0.0 }
  0xbf   : > { %v502_v61 = vmul.f32 %v2849_v57, %v2849_v57  ;;  %v503_v63 = vmul.f32 %v2853_v60, %v2853_v60  ;;  %2225 = vmatpush3.bf16.msra.mxu0 %v2440_v18  ;;  %2249 = vmatpush3.bf16.msra.mxu1 %v2444_v24 }
  0xc0   : > { %2226 = vmatprep.subr.bf16.mxu0 %v2441_v19  ;;  %2250 = vmatprep.subr.bf16.mxu1 %v2445_v25 }
  0xc1   : > { %530 = vadd.xlane.f32.xlu1 %v501_v56  ;;  %532 = vadd.xlane.f32.xlu0 %v502_v61 }
  0xc3   : > { %2227 = vmatpush3.bf16.msra.mxu0 %v2441_v19  ;;  %2251 = vmatpush3.bf16.msra.mxu1 %v2445_v25  ;;  %v2890_v25 = vld [vmem:[%s3314_s1] ss:$0 sm:$0xff] }
  0xc4   : > { %2252 = vmatprep.subr.bf16.mxu1 %v2446_v26 }
  0xc5   : > { %534 = vadd.xlane.f32.xlu1 %v503_v63 }
  0xc7   : > { %2253 = vmatpush3.bf16.msra.mxu1 %v2446_v26 }
 0x12e   : > { %v505_v27 = vpop.xlane.xlu0 %504 }
 0x12f   : > { %v536_v30 = vmul.f32 0.0625, %v505_v27 }
 0x131   : > { %v552_v31 = vadd.f32 1e-05, %v536_v30 }
 0x132   : > { %v507_v32 = vpop.xlane.xlu1 %506  ;;  %v509_v33 = vpop.xlane.xlu0 %508 }
 0x133   : > { %2482 = vrsqrt.f32 %v552_v31  ;;  %v537_v34 = vmul.f32 0.0625, %v507_v32  ;;  %v538_v37 = vmul.f32 0.0625, %v509_v33 }
 0x135   : > { %v553_v40 = vadd.f32 1e-05, %v537_v34  ;;  %v554_v41 = vadd.f32 1e-05, %v538_v37 }
 0x136   : > { %v511_v42 = vpop.xlane.xlu1 %510  ;;  %v513_v43 = vpop.xlane.xlu0 %512 }
 0x137   : > { %2484 = vrsqrt.f32 %v553_v40  ;;  %v539_v44 = vmul.f32 0.0625, %v511_v42  ;;  %v540_v45 = vmul.f32 0.0625, %v513_v43 }
 0x138   : > { %2486 = vrsqrt.f32 %v554_v41 }
 0x139   : > { %v555_v46 = vadd.f32 1e-05, %v539_v44  ;;  %v556_v47 = vadd.f32 1e-05, %v540_v45 }
 0x13a   : > { %v515_v52 = vpop.xlane.xlu1 %514  ;;  %v517_v53 = vpop.xlane.xlu0 %516 }
 0x13b   : > { %2488 = vrsqrt.f32 %v555_v46  ;;  %v541_v54 = vmul.f32 0.0625, %v515_v52  ;;  %v542_v55 = vmul.f32 0.0625, %v517_v53 }
 0x13c   : > { %2490 = vrsqrt.f32 %v556_v47 }
 0x13d   : > { %v557_v56 = vadd.f32 1e-05, %v541_v54  ;;  %v558_v61 = vadd.f32 1e-05, %v542_v55 }
 0x13e   : > { %v519_v62 = vpop.xlane.xlu1 %518  ;;  %v521_v63 = vpop.xlane.xlu0 %520 }
 0x13f   : > { %2492 = vrsqrt.f32 %v557_v56  ;;  %v543_v16 = vmul.f32 0.0625, %v519_v62  ;;  %v544_v18 = vmul.f32 0.0625, %v521_v63 }
 0x140   : > { %v2483_v19 = vpop.eup %2482  ;;  %2494 = vrsqrt.f32 %v558_v61 }
 0x141   : > { %v559_v20 = vadd.f32 1e-05, %v543_v16  ;;  %v560_v21 = vadd.f32 1e-05, %v544_v18  ;;  %v584_v24 = vmul.f32 %v2483_v19, %v2739_v28  ;;  %v2897_v28 = vld [vmem:[%s3315_s2] ss:$0 sm:$0xff] }
 0x142   : > { %v523_v26 = vpop.xlane.xlu1 %522  ;;  %v525_v27 = vpop.xlane.xlu0 %524 }
 0x143   : > { %2496 = vrsqrt.f32 %v559_v20  ;;  %v545_v30 = vmul.f32 0.0625, %v523_v26  ;;  %v546_v31 = vmul.f32 0.0625, %v525_v27  ;;  %v605_v33 = vmul.f32 %v2890_v25, %v584_v24 }
 0x144   : > { %v2485_v32 = vpop.eup %2484  ;;  %2498 = vrsqrt.f32 %v560_v21 }
 0x145   : > { %v2487_v34 = vpop.eup %2486  ;;  %v561_v37 = vadd.f32 1e-05, %v545_v30  ;;  %v562_v40 = vadd.f32 1e-05, %v546_v31  ;;  %v585_v41 = vmul.f32 %v2485_v32, %v2753_v38  ;;  %v626_v53 = vadd.f32 %v2897_v28, %v605_v33 }
 0x146   : > { %v527_v42 = vpop.xlane.xlu1 %526  ;;  %v529_v43 = vpop.xlane.xlu0 %528  ;;  %v586_v44 = vmul.f32 %v2487_v34, %v2743_v29 }
 0x147   : > { %2500 = vrsqrt.f32 %v561_v37  ;;  %v547_v45 = vmul.f32 0.0625, %v527_v42  ;;  %v548_v46 = vmul.f32 0.0625, %v529_v43  ;;  %v606_v47 = vmul.f32 %v2890_v25, %v585_v41 }
 0x148   : > { %v2489_v52 = vpop.eup %2488  ;;  %2502 = vrsqrt.f32 %v562_v40  ;;  %v607_v29 = vmul.f32 %v2890_v25, %v586_v44 }
 0x149   : > { %v2491_v54 = vpop.eup %2490  ;;  %v563_v38 = vadd.f32 1e-05, %v547_v45  ;;  %v564_v55 = vadd.f32 1e-05, %v548_v46  ;;  %v627_v56 = vadd.f32 %v2897_v28, %v606_v47  ;;  %v587_v61 = vmul.f32 %v2489_v52, %v2757_v39 }
 0x14a   : > { %v531_v62 = vpop.xlane.xlu1 %530  ;;  %v533_v63 = vpop.xlane.xlu0 %532  ;;  %v588_v16 = vmul.f32 %v2491_v54, %v2767_v48  ;;  %v628_v33 = vadd.f32 %v2897_v28, %v607_v29 }
 0x14b   : > { %2504 = vrsqrt.f32 %v563_v38  ;;  %v549_v18 = vmul.f32 0.0625, %v531_v62  ;;  %v550_v19 = vmul.f32 0.0625, %v533_v63  ;;  %v642_v20 = vpack.c.bf16 %v627_v56, %v626_v53 }
 0x14c   : > { %v2493_v21 = vpop.eup %2492  ;;  %2506 = vrsqrt.f32 %v564_v55  ;;  %v608_v24 = vmul.f32 %v2890_v25, %v587_v61  ;;  %v609_v26 = vmul.f32 %v2890_v25, %v588_v16 }
 0x14d   : > { %v2495_v27 = vpop.eup %2494  ;;  %v565_v30 = vadd.f32 1e-05, %v549_v18  ;;  %v566_v31 = vadd.f32 1e-05, %v550_v19  ;;  %2228 = vmatprep.mubr.bf16.mxu0 %v642_v20  ;;  %v589_v39 = vmul.f32 %v2493_v21, %v2771_v49 }
 0x14e   : > { %v535_v32 = vpop.xlane.xlu1 %534  ;;  %v629_v48 = vadd.f32 %v2897_v28, %v608_v24  ;;  %v590_v34 = vmul.f32 %v2495_v27, %v2781_v58  ;;  %v630_v43 = vadd.f32 %v2897_v28, %v609_v26 }
 0x14f   : > { %2508 = vrsqrt.f32 %v565_v30  ;;  %v551_v37 = vmul.f32 0.0625, %v535_v32  ;;  %v610_v40 = vmul.f32 %v2890_v25, %v589_v39 }
 0x150   : > { %v2497_v41 = vpop.eup %2496  ;;  %2510 = vrsqrt.f32 %v566_v31  ;;  %v643_v42 = vpack.c.bf16 %v629_v48, %v628_v33  ;;  %v611_v47 = vmul.f32 %v2890_v25, %v590_v34 }
 0x151   : > { %v2499_v44 = vpop.eup %2498  ;;  %v567_v45 = vadd.f32 1e-05, %v551_v37  ;;  %v631_v49 = vadd.f32 %v2897_v28, %v610_v40  ;;  %v591_v46 = vmul.f32 %v2497_v41, %v2785_v59 }
 0x152   : > { %2229 = vmatmul.mubr.bf16.vlgmr.msra.gmra.mxu0 %v643_v42  ;;  %v592_v58 = vmul.f32 %v2499_v44, %v2798_v22  ;;  %v632_v55 = vadd.f32 %v2897_v28, %v611_v47 }
 0x153   : > { %2512 = vrsqrt.f32 %v567_v45  ;;  %v644_v52 = vpack.c.bf16 %v631_v49, %v630_v43  ;;  %v612_v53 = vmul.f32 %v2890_v25, %v591_v46  ;;  %v2447_v45 = vld [vmem:[%s3318_s5 + $0x10] sm:$0xff]   ;;  %v2032_v46 = vld [vmem:[%s3317_s4] ss:$0 sm:$0xff] }
 0x154   : > { %v2501_v54 = vpop.eup %2500  ;;  %v613_v59 = vmul.f32 %v2890_v25, %v592_v58  ;;  %2254 = vmatprep.subr.bf16.mxu1 %v2447_v45 }
 0x155   : > { %v2503_v38 = vpop.eup %2502  ;;  %2232 = vmatprep.mubr.bf16.mxu0 %v644_v52  ;;  %v633_v56 = vadd.f32 %v2897_v28, %v612_v53  ;;  %v593_v61 = vmul.f32 %v2501_v54, %v2802_v23  ;;  %2255 = vmatpush3.bf16.msra.mxu1 %v2447_v45 }
 0x156   : > { %v594_v62 = vmul.f32 %v2503_v38, %v2815_v35  ;;  %v634_v18 = vadd.f32 %v2897_v28, %v613_v59 }
 0x157   : > { %v645_v63 = vpack.c.bf16 %v633_v56, %v632_v55  ;;  %v614_v22 = vmul.f32 %v2890_v25, %v593_v61 }
 0x158   : > { %v2505_v29 = vpop.eup %2504  ;;  %v615_v21 = vmul.f32 %v2890_v25, %v594_v62 }
 0x159   : > { %v2507_v16 = vpop.eup %2506  ;;  %v635_v19 = vadd.f32 %v2897_v28, %v614_v22  ;;  %v595_v20 = vmul.f32 %v2505_v29, %v2819_v36 }
 0x15a   : > { %2233 = vmatmul.mubr.bf16.gmra.mxu0 %v645_v63  ;;  %v596_v23 = vmul.f32 %v2507_v16, %v2832_v50  ;;  %v636_v30 = vadd.f32 %v2897_v28, %v615_v21 }
 0x15b   : > { %v646_v24 = vpack.c.bf16 %v635_v19, %v634_v18  ;;  %v616_v26 = vmul.f32 %v2890_v25, %v595_v20 }
 0x15c   : > { %v2509_v35 = vpop.eup %2508  ;;  %v617_v32 = vmul.f32 %v2890_v25, %v596_v23 }
 0x15d   : > { %v2511_v27 = vpop.eup %2510  ;;  %2236 = vmatprep.mubr.bf16.mxu0 %v646_v24  ;;  %v637_v31 = vadd.f32 %v2897_v28, %v616_v26  ;;  %v597_v39 = vmul.f32 %v2509_v35, %v2836_v51 }
 0x15e   : > { %v598_v36 = vmul.f32 %v2511_v27, %v2849_v57  ;;  %v638_v34 = vadd.f32 %v2897_v28, %v617_v32 }
 0x15f   : > { %v647_v33 = vpack.c.bf16 %v637_v31, %v636_v30  ;;  %v618_v48 = vmul.f32 %v2890_v25, %v597_v39 }
 0x160   : > { %v2513_v50 = vpop.eup %2512  ;;  %v619_v41 = vmul.f32 %v2890_v25, %v598_v36 }
 0x161   : > { %v639_v37 = vadd.f32 %v2897_v28, %v618_v48  ;;  %v599_v40 = vmul.f32 %v2513_v50, %v2853_v60  ;;  %v2448_v60 = vld [vmem:[%s3318_s5 + $0x8] sm:$0xff]  }
 0x162   : > { %2237 = vmatmul.mubr.bf16.gmra.mxu0 %v647_v33  ;;  %v640_v43 = vadd.f32 %v2897_v28, %v619_v41  ;;  %2256 = vmatprep.subr.bf16.mxu1 %v2448_v60 }
 0x163   : > { %v648_v42 = vpack.c.bf16 %v639_v37, %v638_v34  ;;  %v620_v51 = vmul.f32 %v2890_v25, %v599_v40  ;;  %2257 = vmatpush3.bf16.msra.mxu1 %v2448_v60  ;;  %v2449_v25 = vld [vmem:[%s3318_s5] sm:$0xff]  }
 0x164   : > { %2258 = vmatprep.subr.bf16.mxu1 %v2449_v25 }
 0x165   : > { %2240 = vmatprep.mubr.bf16.mxu0 %v648_v42  ;;  %v641_v57 = vadd.f32 %v2897_v28, %v620_v51 }
 0x167   : > { %v649_v44 = vpack.c.bf16 %v641_v57, %v640_v43  ;;  %2259 = vmatpush3.bf16.msra.mxu1 %v2449_v25 }
 0x16a   : > { %2241 = vmatmul.mubr.bf16.gmra.mxu0 %v649_v44 }
 0x212   : > { %v2230_v28 = vpop.f32.mrf.mxu0 }
 0x213   : > { %v762_v53 = vadd.f32 %v2230_v28, %v2032_v46 }
 0x214   : > { %v753_v49 = vpop.f32.mrf.mxu0 }
 0x215   : > { %v754_v58 = vadd.f32 %v2032_v46, %v753_v49  ;;  %v818_v62 = vmax.f32 %v762_v53, 0.0 }
 0x216   : > { %v2231_v47 = vpop.f32.mrf.mxu0 }
 0x217   : > { %v765_v52 = vadd.f32 %v2231_v47, %v2032_v46  ;;  %v816_v61 = vmax.f32 %v754_v58, 0.0 }
 0x218   : > { %v756_v54 = vpop.f32.mrf.mxu0 }
 0x219   : > { %v757_v38 = vadd.f32 %v2032_v46, %v756_v54  ;;  %v819_v55 = vmax.f32 %v765_v52, 0.0 }
 0x21a   : > { %v2234_v56 = vpop.f32.mrf.mxu0 }
 0x21b   : > { %v817_v59 = vmax.f32 %v757_v38, 0.0  ;;  %v833_v29 = vpack.c.bf16 %v819_v55, %v818_v62  ;;  %v778_v20 = vadd.f32 %v2234_v56, %v2032_v46 }
 0x21c   : > { %v769_v63 = vpop.f32.mrf.mxu0 }
 0x21d   : > { %v832_v22 = vpack.c.bf16 %v817_v59, %v816_v61  ;;  %v770_v18 = vadd.f32 %v2032_v46, %v769_v63  ;;  %v822_v30 = vmax.f32 %v778_v20, 0.0  ;;  %v2041_v59 = vld [vmem:[%s3319_s6] ss:$0 sm:$0xff] }
 0x21e   : > { %v2235_v16 = vpop.f32.mrf.mxu0 }
 0x21f   : > { %v781_v19 = vadd.f32 %v2235_v16, %v2032_v46  ;;  %2260 = vmatprep.mubr.bf16.mxu1 %v832_v22  ;;  %v820_v35 = vmax.f32 %v770_v18, 0.0 }
 0x220   : > { %v772_v21 = vpop.f32.mrf.mxu0  ;;  %2261 = vmatmul.mubr.bf16.vlgmr.msra.gmra.mxu1 %v833_v29 }
 0x221   : > { %v773_v23 = vadd.f32 %v2032_v46, %v772_v21  ;;  %v823_v24 = vmax.f32 %v781_v19, 0.0 }
 0x222   : > { %v2238_v26 = vpop.f32.mrf.mxu0 }
 0x223   : > { %v821_v27 = vmax.f32 %v773_v23, 0.0  ;;  %v835_v32 = vpack.c.bf16 %v823_v24, %v822_v30  ;;  %v794_v50 = vadd.f32 %v2238_v26, %v2032_v46 }
 0x224   : > { %v785_v31 = vpop.f32.mrf.mxu0 }
 0x225   : > { %v834_v39 = vpack.c.bf16 %v821_v27, %v820_v35  ;;  %v786_v33 = vadd.f32 %v2032_v46, %v785_v31  ;;  %v826_v43 = vmax.f32 %v794_v50, 0.0 }
 0x226   : > { %v2239_v36 = vpop.f32.mrf.mxu0 }
 0x227   : > { %v797_v48 = vadd.f32 %v2239_v36, %v2032_v46  ;;  %2264 = vmatprep.mubr.bf16.mxu1 %v834_v39  ;;  %v824_v42 = vmax.f32 %v786_v33, 0.0 }
 0x228   : > { %v788_v34 = vpop.f32.mrf.mxu0  ;;  %2265 = vmatmul.mubr.bf16.gmra.mxu1 %v835_v32 }
 0x229   : > { %v789_v37 = vadd.f32 %v2032_v46, %v788_v34  ;;  %v827_v40 = vmax.f32 %v797_v48, 0.0 }
 0x22a   : > { %v2242_v41 = vpop.f32.mrf.mxu0 }
 0x22b   : > { %v825_v51 = vmax.f32 %v789_v37, 0.0  ;;  %v837_v45 = vpack.c.bf16 %v827_v40, %v826_v43  ;;  %v810_v49 = vadd.f32 %v2242_v41, %v2032_v46 }
 0x22c   : > { %v801_v57 = vpop.f32.mrf.mxu0 }
 0x22d   : > { %v836_v44 = vpack.c.bf16 %v825_v51, %v824_v42  ;;  %v802_v25 = vadd.f32 %v2032_v46, %v801_v57  ;;  %v830_v38 = vmax.f32 %v810_v49, 0.0 }
 0x22e   : > { %v2243_v60 = vpop.f32.mrf.mxu0 }
 0x22f   : > { %v813_v28 = vadd.f32 %v2243_v60, %v2032_v46  ;;  %2268 = vmatprep.mubr.bf16.mxu1 %v836_v44  ;;  %v828_v53 = vmax.f32 %v802_v25, 0.0 }
 0x230   : > { %v804_v47 = vpop.f32.mrf.mxu0  ;;  %2269 = vmatmul.mubr.bf16.gmra.mxu1 %v837_v45 }
 0x231   : > { %v805_v58 = vadd.f32 %v2032_v46, %v804_v47  ;;  %v831_v52 = vmax.f32 %v813_v28, 0.0 }
 0x233   : > { %v829_v54 = vmax.f32 %v805_v58, 0.0  ;;  %v839_v56 = vpack.c.bf16 %v831_v52, %v830_v38 }
 0x235   : > { %v838_v55 = vpack.c.bf16 %v829_v54, %v828_v53 }
 0x237   : > { %2272 = vmatprep.mubr.bf16.mxu1 %v838_v55 }
 0x238   : > { %2273 = vmatmul.mubr.bf16.gmra.mxu1 %v839_v56 }
 0x2e0   : > { %v2262_v61 = vpop.f32.mrf.mxu1 }
 0x2e1   : > { %v952_v29 = vadd.f32 %v2262_v61, %v2041_v59 }
 0x2e2   : > { %v943_v62 = vpop.f32.mrf.mxu1 }
 0x2e3   : > { %v944_v63 = vadd.f32 %v2041_v59, %v943_v62  ;;  %v2964_v20 = vadd.f32 %v952_v29, %v2686_v1 }
 0x2e4   : > { %v2263_v22 = vpop.f32.mrf.mxu1 }
 0x2e5   : > { %v2960_v16 = vadd.f32 %v944_v63, %v2684_v0  ;;  %v955_v21 = vadd.f32 %v2263_v22, %v2041_v59 }
 0x2e6   : > { %v946_v46 = vpop.f32.mrf.mxu1 }
 0x2e7   : > { %v947_v18 = vadd.f32 %v2041_v59, %v946_v46  ;;  %1022 = vadd.xlane.f32.xlu0 %v2960_v16  ;;  %v2972_v35 = vadd.f32 %v955_v21, %v2692_v3 }
 0x2e8   : > { %v2266_v19 = vpop.f32.mrf.mxu1 }
 0x2e9   : > { %v2967_v23 = vadd.f32 %v947_v18, %v2690_v2  ;;  %v968_v27 = vadd.f32 %v2266_v19, %v2041_v59 }
 0x2ea   : > { %v959_v24 = vpop.f32.mrf.mxu1 }
 0x2eb   : > { %v960_v26 = vadd.f32 %v2041_v59, %v959_v24  ;;  %1024 = vadd.xlane.f32.xlu1 %v2967_v23  ;;  %1026 = vadd.xlane.f32.xlu0 %v2964_v20  ;;  %v2980_v39 = vadd.f32 %v968_v27, %v2700_v6 }
 0x2ec   : > { %v2267_v0 = vpop.f32.mrf.mxu1 }
 0x2ed   : > { %v2975_v30 = vadd.f32 %v960_v26, %v2694_v4  ;;  %v971_v32 = vadd.f32 %v2267_v0, %v2041_v59 }
 0x2ee   : > { %v962_v1 = vpop.f32.mrf.mxu1 }
 0x2ef   : > { %v963_v31 = vadd.f32 %v2041_v59, %v962_v1  ;;  %1028 = vadd.xlane.f32.xlu1 %v2972_v35  ;;  %1030 = vadd.xlane.f32.xlu0 %v2975_v30  ;;  %v2988_v48 = vadd.f32 %v971_v32, %v2702_v7 }
 0x2f0   : > { %v2270_v2 = vpop.f32.mrf.mxu1 }
 0x2f1   : > { %v2983_v36 = vadd.f32 %v963_v31, %v2698_v5  ;;  %v984_v50 = vadd.f32 %v2270_v2, %v2041_v59 }
 0x2f2   : > { %v975_v3 = vpop.f32.mrf.mxu1 }
 0x2f3   : > { %v976_v33 = vadd.f32 %v2041_v59, %v975_v3  ;;  %1032 = vadd.xlane.f32.xlu1 %v2983_v36  ;;  %1034 = vadd.xlane.f32.xlu0 %v2980_v39  ;;  %v2996_v40 = vadd.f32 %v984_v50, %v2712_v10 }
 0x2f4   : > { %v2271_v4 = vpop.f32.mrf.mxu1 }
 0x2f5   : > { %v2991_v34 = vadd.f32 %v976_v33, %v2706_v8  ;;  %v987_v41 = vadd.f32 %v2271_v4, %v2041_v59 }
 0x2f6   : > { %v978_v6 = vpop.f32.mrf.mxu1 }
 0x2f7   : > { %v979_v37 = vadd.f32 %v2041_v59, %v978_v6  ;;  %1036 = vadd.xlane.f32.xlu1 %v2988_v48  ;;  %1038 = vadd.xlane.f32.xlu0 %v2991_v34  ;;  %v3004_v43 = vadd.f32 %v987_v41, %v2714_v11  ;;  %v2450_v41 = vld [vmem:[%s3316_s3 + $0x78] sm:$0xff]  }
 0x2f8   : > { %v2274_v5 = vpop.f32.mrf.mxu1  ;;  %2276 = vmatprep.subr.bf16.mxu0 %v2450_v41 }
 0x2f9   : > { %v2999_v42 = vadd.f32 %v979_v37, %v2710_v9  ;;  %v1000_v57 = vadd.f32 %v2274_v5, %v2041_v59  ;;  %2277 = vmatpush3.bf16.msra.mxu0 %v2450_v41 }
 0x2fa   : > { %v991_v7 = vpop.f32.mrf.mxu1 }
 0x2fb   : > { %v992_v51 = vadd.f32 %v2041_v59, %v991_v7  ;;  %1040 = vadd.xlane.f32.xlu1 %v2999_v42  ;;  %1042 = vadd.xlane.f32.xlu0 %v2996_v40  ;;  %v3012_v9 = vadd.f32 %v1000_v57, %v2724_v14 }
 0x2fc   : > { %v2275_v8 = vpop.f32.mrf.mxu1 }
 0x2fd   : > { %v3007_v44 = vadd.f32 %v992_v51, %v2718_v12  ;;  %v1003_v60 = vadd.f32 %v2275_v8, %v2041_v59 }
 0x2fe   : > { %v994_v10 = vpop.f32.mrf.mxu1 }
 0x2ff   : > { %v995_v45 = vadd.f32 %v2041_v59, %v994_v10  ;;  %1044 = vadd.xlane.f32.xlu1 %v3004_v43  ;;  %1046 = vadd.xlane.f32.xlu0 %v3007_v44  ;;  %v3020_v11 = vadd.f32 %v1003_v60, %v2728_v15 }
 0x301   : > { %v3015_v25 = vadd.f32 %v995_v45, %v2720_v13 }
 0x303   : > { %1048 = vadd.xlane.f32.xlu1 %v3015_v25  ;;  %1050 = vadd.xlane.f32.xlu0 %v3012_v9 }
 0x307   : > { %1052 = vadd.xlane.f32.xlu1 %v3020_v11 }
 0x370   : > { %v1023_v12 = vpop.xlane.xlu0 %1022 }
 0x371   : > { %v1054_v28 = vmul.f32 0.0625, %v1023_v12 }
 0x373   : > { %v1070_v49 = vsub.f32 %v2960_v16, %v1054_v28 }
 0x374   : > { %v1025_v47 = vpop.xlane.xlu1 %1024  ;;  %v1027_v14 = vpop.xlane.xlu0 %1026 }
 0x375   : > { %v1055_v58 = vmul.f32 0.0625, %v1025_v47  ;;  %v1056_v52 = vmul.f32 0.0625, %v1027_v14  ;;  %v3026_v13 = vsel %vm405_vm0, %v1070_v49, 0.0 }
 0x376   : > { %v1102_v53 = vmul.f32 %v3026_v13, %v3026_v13 }
 0x377   : > { %v1071_v15 = vsub.f32 %v2967_v23, %v1055_v58  ;;  %v1072_v54 = vsub.f32 %v2964_v20, %v1056_v52  ;;  %v2451_v58 = vld [vmem:[%s3316_s3 + $0x70] sm:$0xff]  }
 0x378   : > { %v1029_v38 = vpop.xlane.xlu1 %1028  ;;  %1118 = vadd.xlane.f32.xlu0 %v1102_v53  ;;  %v1031_v55 = vpop.xlane.xlu0 %1030  ;;  %2278 = vmatprep.subr.bf16.mxu0 %v2451_v58 }
 0x379   : > { %v1057_v56 = vmul.f32 0.0625, %v1029_v38  ;;  %v1058_v61 = vmul.f32 0.0625, %v1031_v55  ;;  %v3034_v59 = vsel %vm405_vm0, %v1071_v15, 0.0  ;;  %v3038_v62 = vsel %vm405_vm0, %v1072_v54, 0.0  ;;  %2279 = vmatpush3.bf16.msra.mxu0 %v2451_v58  ;;  %v2461_v58 = vld [vmem:[%s3318_s5 + $0x60] sm:$0xff]  }
 0x37a   : > { %v1103_v63 = vmul.f32 %v3034_v59, %v3034_v59  ;;  %v1104_v22 = vmul.f32 %v3038_v62, %v3038_v62 }
 0x37b   : > { %v1073_v29 = vsub.f32 %v2972_v35, %v1057_v56  ;;  %v1074_v46 = vsub.f32 %v2975_v30, %v1058_v61 }
 0x37c   : > { %v1033_v18 = vpop.xlane.xlu1 %1032  ;;  %1120 = vadd.xlane.f32.xlu1 %v1103_v63  ;;  %1122 = vadd.xlane.f32.xlu0 %v1104_v22  ;;  %v1035_v19 = vpop.xlane.xlu0 %1034 }
 0x37d   : > { %v1059_v21 = vmul.f32 0.0625, %v1033_v18  ;;  %v1060_v24 = vmul.f32 0.0625, %v1035_v19  ;;  %v3048_v26 = vsel %vm405_vm0, %v1073_v29, 0.0  ;;  %v3052_v0 = vsel %vm405_vm0, %v1074_v46, 0.0  ;;  %v2452_v29 = vld [vmem:[%s3316_s3 + $0x68] sm:$0xff]  }
 0x37e   : > { %v1105_v27 = vmul.f32 %v3048_v26, %v3048_v26  ;;  %v1106_v1 = vmul.f32 %v3052_v0, %v3052_v0  ;;  %2280 = vmatprep.subr.bf16.mxu0 %v2452_v29 }
 0x37f   : > { %v1075_v31 = vsub.f32 %v2983_v36, %v1059_v21  ;;  %v1076_v2 = vsub.f32 %v2980_v39, %v1060_v24  ;;  %2281 = vmatpush3.bf16.msra.mxu0 %v2452_v29 }
 0x380   : > { %v1037_v32 = vpop.xlane.xlu1 %1036  ;;  %1124 = vadd.xlane.f32.xlu1 %v1105_v27  ;;  %1126 = vadd.xlane.f32.xlu0 %v1106_v1  ;;  %v1039_v3 = vpop.xlane.xlu0 %1038 }
 0x381   : > { %v1061_v33 = vmul.f32 0.0625, %v1037_v32  ;;  %v1062_v4 = vmul.f32 0.0625, %v1039_v3  ;;  %v3062_v50 = vsel %vm405_vm0, %v1075_v31, 0.0  ;;  %v3066_v6 = vsel %vm405_vm0, %v1076_v2, 0.0  ;;  %v2453_v3 = vld [vmem:[%s3316_s3 + $0x60] sm:$0xff]  }
 0x382   : > { %v1107_v37 = vmul.f32 %v3062_v50, %v3062_v50  ;;  %v1108_v5 = vmul.f32 %v3066_v6, %v3066_v6  ;;  %2282 = vmatprep.subr.bf16.mxu0 %v2453_v3 }
 0x383   : > { %v1077_v7 = vsub.f32 %v2988_v48, %v1061_v33  ;;  %v1078_v51 = vsub.f32 %v2991_v34, %v1062_v4  ;;  %2283 = vmatpush3.bf16.msra.mxu0 %v2453_v3 }
 0x384   : > { %v1041_v8 = vpop.xlane.xlu1 %1040  ;;  %1128 = vadd.xlane.f32.xlu1 %v1107_v37  ;;  %1130 = vadd.xlane.f32.xlu0 %v1108_v5  ;;  %v1043_v57 = vpop.xlane.xlu0 %1042 }
 0x385   : > { %v1063_v10 = vmul.f32 0.0625, %v1041_v8  ;;  %v1064_v45 = vmul.f32 0.0625, %v1043_v57  ;;  %v3079_v60 = vsel %vm405_vm0, %v1077_v7, 0.0  ;;  %v3083_v12 = vsel %vm405_vm0, %v1078_v51, 0.0  ;;  %v2454_v8 = vld [vmem:[%s3316_s3 + $0x58] sm:$0xff]  }
 0x386   : > { %v1109_v28 = vmul.f32 %v3079_v60, %v3079_v60  ;;  %v1110_v49 = vmul.f32 %v3083_v12, %v3083_v12  ;;  %2284 = vmatprep.subr.bf16.mxu0 %v2454_v8 }
 0x387   : > { %v1079_v47 = vsub.f32 %v2999_v42, %v1063_v10  ;;  %v1080_v14 = vsub.f32 %v2996_v40, %v1064_v45  ;;  %2285 = vmatpush3.bf16.msra.mxu0 %v2454_v8  ;;  %v2455_v45 = vld [vmem:[%s3316_s3 + $0x50] sm:$0xff]  }
 0x388   : > { %v1045_v52 = vpop.xlane.xlu1 %1044  ;;  %1132 = vadd.xlane.f32.xlu1 %v1109_v28  ;;  %1134 = vadd.xlane.f32.xlu0 %v1110_v49  ;;  %v1047_v53 = vpop.xlane.xlu0 %1046  ;;  %v2456_v28 = vld [vmem:[%s3316_s3 + $0x48] sm:$0xff]   ;;  %v2458_v49 = vld [vmem:[%s3318_s5 + $0x78] sm:$0xff]  }
 0x389   : > { %v1065_v15 = vmul.f32 0.0625, %v1045_v52  ;;  %v1066_v54 = vmul.f32 0.0625, %v1047_v53  ;;  %v3096_v38 = vsel %vm405_vm0, %v1079_v47, 0.0  ;;  %v3100_v55 = vsel %vm405_vm0, %v1080_v14, 0.0  ;;  %2286 = vmatprep.subr.bf16.mxu0 %v2455_v45  ;;  %v2459_v47 = vld [vmem:[%s3318_s5 + $0x70] sm:$0xff]   ;;  %2308 = vmatprep.subr.bf16.mxu1 %v2458_v49  ;;  %v2460_v14 = vld [vmem:[%s3318_s5 + $0x68] sm:$0xff]  }
 0x38a   : > { %v1111_v56 = vmul.f32 %v3096_v38, %v3096_v38  ;;  %v1112_v61 = vmul.f32 %v3100_v55, %v3100_v55  ;;  %2309 = vmatpush3.bf16.msra.mxu1 %v2458_v49  ;;  %v2462_v52 = vld [vmem:[%s3318_s5 + $0x58] sm:$0xff]  }
 0x38b   : > { %v1081_v63 = vsub.f32 %v3004_v43, %v1065_v15  ;;  %v1082_v22 = vsub.f32 %v3007_v44, %v1066_v54  ;;  %2287 = vmatpush3.bf16.msra.mxu0 %v2455_v45  ;;  %2310 = vmatprep.subr.bf16.mxu1 %v2459_v47 }
 0x38c   : > { %1136 = vadd.xlane.f32.xlu1 %v1111_v56  ;;  %v1049_v46 = vpop.xlane.xlu1 %1048  ;;  %1138 = vadd.xlane.f32.xlu0 %v1112_v61  ;;  %v1051_v18 = vpop.xlane.xlu0 %1050 }
 0x38d   : > { %v1067_v19 = vmul.f32 0.0625, %v1049_v46  ;;  %v1068_v21 = vmul.f32 0.0625, %v1051_v18  ;;  %v3113_v24 = vsel %vm405_vm0, %v1081_v63, 0.0  ;;  %v3117_v27 = vsel %vm405_vm0, %v1082_v22, 0.0  ;;  %2288 = vmatprep.subr.bf16.mxu0 %v2456_v28 }
 0x38e   : > { %v1113_v1 = vmul.f32 %v3113_v24, %v3113_v24  ;;  %v1114_v31 = vmul.f32 %v3117_v27, %v3117_v27  ;;  %2311 = vmatpush3.bf16.msra.mxu1 %v2459_v47 }
 0x38f   : > { %v1083_v2 = vsub.f32 %v3015_v25, %v1067_v19  ;;  %v1084_v32 = vsub.f32 %v3012_v9, %v1068_v21  ;;  %2289 = vmatpush3.bf16.msra.mxu0 %v2456_v28  ;;  %2312 = vmatprep.subr.bf16.mxu1 %v2460_v14 }
 0x390   : > { %1140 = vadd.xlane.f32.xlu1 %v1113_v1  ;;  %v1053_v33 = vpop.xlane.xlu1 %1052  ;;  %1142 = vadd.xlane.f32.xlu0 %v1114_v31 }
 0x391   : > { %v1069_v4 = vmul.f32 0.0625, %v1053_v33  ;;  %v3130_v37 = vsel %vm405_vm0, %v1083_v2, 0.0  ;;  %v3134_v5 = vsel %vm405_vm0, %v1084_v32, 0.0  ;;  %2290 = vmatprep.subr.bf16.mxu0 %v2457_v17 }
 0x392   : > { %v1115_v41 = vmul.f32 %v3130_v37, %v3130_v37  ;;  %v1116_v7 = vmul.f32 %v3134_v5, %v3134_v5  ;;  %2313 = vmatpush3.bf16.msra.mxu1 %v2460_v14  ;;  %v3178_v14 = vld [vmem:[%s3314_s1 + $0x1] ss:$0 sm:$0xff] }
 0x393   : > { %v1085_v51 = vsub.f32 %v3020_v11, %v1069_v4  ;;  %2291 = vmatpush3.bf16.msra.mxu0 %v2457_v17  ;;  %2314 = vmatprep.subr.bf16.mxu1 %v2461_v58 }
 0x394   : > { %1144 = vadd.xlane.f32.xlu1 %v1115_v41  ;;  %1146 = vadd.xlane.f32.xlu0 %v1116_v7 }
 0x395   : > { %v3146_v57 = vsel %vm405_vm0, %v1085_v51, 0.0 }
 0x396   : > { %v1117_v10 = vmul.f32 %v3146_v57, %v3146_v57  ;;  %2315 = vmatpush3.bf16.msra.mxu1 %v2461_v58 }
 0x397   : > { %2316 = vmatprep.subr.bf16.mxu1 %v2462_v52 }
 0x398   : > { %1148 = vadd.xlane.f32.xlu1 %v1117_v10 }
 0x39a   : > { %2317 = vmatpush3.bf16.msra.mxu1 %v2462_v52 }
 0x401   : > { %v1119_v53 = vpop.xlane.xlu0 %1118 }
 0x402   : > { %v1150_v15 = vmul.f32 0.0625, %v1119_v53 }
 0x404   : > { %v1166_v54 = vadd.f32 1e-05, %v1150_v15 }
 0x405   : > { %v1121_v56 = vpop.xlane.xlu1 %1120  ;;  %v1123_v61 = vpop.xlane.xlu0 %1122 }
 0x406   : > { %2514 = vrsqrt.f32 %v1166_v54  ;;  %v1151_v63 = vmul.f32 0.0625, %v1121_v56  ;;  %v1152_v22 = vmul.f32 0.0625, %v1123_v61 }
 0x408   : > { %v1167_v29 = vadd.f32 1e-05, %v1151_v63  ;;  %v1168_v46 = vadd.f32 1e-05, %v1152_v22 }
 0x409   : > { %v1125_v18 = vpop.xlane.xlu1 %1124  ;;  %v1127_v19 = vpop.xlane.xlu0 %1126 }
 0x40a   : > { %2516 = vrsqrt.f32 %v1167_v29  ;;  %v1153_v21 = vmul.f32 0.0625, %v1125_v18  ;;  %v1154_v1 = vmul.f32 0.0625, %v1127_v19 }
 0x40b   : > { %2518 = vrsqrt.f32 %v1168_v46 }
 0x40c   : > { %v1169_v31 = vadd.f32 1e-05, %v1153_v21  ;;  %v1170_v2 = vadd.f32 1e-05, %v1154_v1 }
 0x40d   : > { %v1129_v32 = vpop.xlane.xlu1 %1128  ;;  %v1131_v3 = vpop.xlane.xlu0 %1130 }
 0x40e   : > { %2520 = vrsqrt.f32 %v1169_v31  ;;  %v1155_v33 = vmul.f32 0.0625, %v1129_v32  ;;  %v1156_v4 = vmul.f32 0.0625, %v1131_v3 }
 0x40f   : > { %2522 = vrsqrt.f32 %v1170_v2 }
 0x410   : > { %v1171_v41 = vadd.f32 1e-05, %v1155_v33  ;;  %v1172_v7 = vadd.f32 1e-05, %v1156_v4 }
 0x411   : > { %v1133_v51 = vpop.xlane.xlu1 %1132  ;;  %v1135_v8 = vpop.xlane.xlu0 %1134 }
 0x412   : > { %2524 = vrsqrt.f32 %v1171_v41  ;;  %v1157_v10 = vmul.f32 0.0625, %v1133_v51  ;;  %v1158_v45 = vmul.f32 0.0625, %v1135_v8 }
 0x413   : > { %v2515_v28 = vpop.eup %2514  ;;  %2526 = vrsqrt.f32 %v1172_v7 }
 0x414   : > { %v1173_v17 = vadd.f32 1e-05, %v1157_v10  ;;  %v1174_v49 = vadd.f32 1e-05, %v1158_v45  ;;  %v1198_v47 = vmul.f32 %v2515_v28, %v3026_v13  ;;  %v3185_v13 = vld [vmem:[%s3315_s2 + $0x1] ss:$0 sm:$0xff] }
 0x415   : > { %v1137_v58 = vpop.xlane.xlu1 %1136  ;;  %v1139_v52 = vpop.xlane.xlu0 %1138 }
 0x416   : > { %2528 = vrsqrt.f32 %v1173_v17  ;;  %v1159_v53 = vmul.f32 0.0625, %v1137_v58  ;;  %v1160_v15 = vmul.f32 0.0625, %v1139_v52  ;;  %v1219_v56 = vmul.f32 %v3178_v14, %v1198_v47 }
 0x417   : > { %v2517_v54 = vpop.eup %2516  ;;  %2530 = vrsqrt.f32 %v1174_v49 }
 0x418   : > { %v2519_v61 = vpop.eup %2518  ;;  %v1175_v63 = vadd.f32 1e-05, %v1159_v53  ;;  %v1176_v22 = vadd.f32 1e-05, %v1160_v15  ;;  %v1199_v29 = vmul.f32 %v2517_v54, %v3034_v59  ;;  %v1240_v32 = vadd.f32 %v3185_v13, %v1219_v56 }
 0x419   : > { %v1200_v46 = vmul.f32 %v2519_v61, %v3038_v62  ;;  %v1141_v18 = vpop.xlane.xlu1 %1140  ;;  %v1143_v19 = vpop.xlane.xlu0 %1142 }
 0x41a   : > { %2532 = vrsqrt.f32 %v1175_v63  ;;  %v1161_v21 = vmul.f32 0.0625, %v1141_v18  ;;  %v1162_v1 = vmul.f32 0.0625, %v1143_v19  ;;  %v1220_v31 = vmul.f32 %v3178_v14, %v1199_v29 }
 0x41b   : > { %v2521_v2 = vpop.eup %2520  ;;  %2534 = vrsqrt.f32 %v1176_v22  ;;  %v1221_v51 = vmul.f32 %v3178_v14, %v1200_v46 }
 0x41c   : > { %v2523_v3 = vpop.eup %2522  ;;  %v1201_v59 = vmul.f32 %v2521_v2, %v3048_v26  ;;  %v1177_v33 = vadd.f32 1e-05, %v1161_v21  ;;  %v1178_v4 = vadd.f32 1e-05, %v1162_v1  ;;  %v1241_v41 = vadd.f32 %v3185_v13, %v1220_v31 }
 0x41d   : > { %v1145_v7 = vpop.xlane.xlu1 %1144  ;;  %v1147_v62 = vpop.xlane.xlu0 %1146  ;;  %v1202_v8 = vmul.f32 %v2523_v3, %v3052_v0  ;;  %v1242_v54 = vadd.f32 %v3185_v13, %v1221_v51 }
 0x41e   : > { %2536 = vrsqrt.f32 %v1177_v33  ;;  %v1163_v10 = vmul.f32 0.0625, %v1145_v7  ;;  %v1164_v45 = vmul.f32 0.0625, %v1147_v62  ;;  %v1256_v28 = vpack.c.bf16 %v1241_v41, %v1240_v32 }
 0x41f   : > { %v2525_v17 = vpop.eup %2524  ;;  %2538 = vrsqrt.f32 %v1178_v4  ;;  %v1222_v49 = vmul.f32 %v3178_v14, %v1201_v59  ;;  %v1223_v26 = vmul.f32 %v3178_v14, %v1202_v8 }
 0x420   : > { %v2527_v47 = vpop.eup %2526  ;;  %v1179_v58 = vadd.f32 1e-05, %v1163_v10  ;;  %v1180_v52 = vadd.f32 1e-05, %v1164_v45  ;;  %2292 = vmatprep.mubr.bf16.mxu0 %v1256_v28  ;;  %v1203_v53 = vmul.f32 %v2525_v17, %v3062_v50 }
 0x421   : > { %v1149_v15 = vpop.xlane.xlu1 %1148  ;;  %v1243_v0 = vadd.f32 %v3185_v13, %v1222_v49  ;;  %v1204_v56 = vmul.f32 %v2527_v47, %v3066_v6  ;;  %v1244_v46 = vadd.f32 %v3185_v13, %v1223_v26 }
 0x422   : > { %2540 = vrsqrt.f32 %v1179_v58  ;;  %v1165_v61 = vmul.f32 0.0625, %v1149_v15  ;;  %v1224_v63 = vmul.f32 %v3178_v14, %v1203_v53 }
 0x423   : > { %v2529_v22 = vpop.eup %2528  ;;  %2542 = vrsqrt.f32 %v1180_v52  ;;  %v1257_v29 = vpack.c.bf16 %v1243_v0, %v1242_v54  ;;  %v1225_v1 = vmul.f32 %v3178_v14, %v1204_v56 }
 0x424   : > { %v2531_v18 = vpop.eup %2530  ;;  %v1181_v19 = vadd.f32 1e-05, %v1165_v61  ;;  %v1245_v50 = vadd.f32 %v3185_v13, %v1224_v63  ;;  %v1205_v21 = vmul.f32 %v2529_v22, %v3079_v60 }
 0x425   : > { %2293 = vmatmul.mubr.bf16.vlgmr.msra.gmra.mxu0 %v1257_v29  ;;  %v1206_v6 = vmul.f32 %v2531_v18, %v3083_v12  ;;  %v1246_v59 = vadd.f32 %v3185_v13, %v1225_v1  ;;  %v2463_v18 = vld [vmem:[%s3318_s5 + $0x50] sm:$0xff]   ;;  %v2470_v1 = vld [vmem:[%s3320_s7 + $0x18] sm:$0xff]  }
 0x426   : > { %2544 = vrsqrt.f32 %v1181_v19  ;;  %v1258_v31 = vpack.c.bf16 %v1245_v50, %v1244_v46  ;;  %v1226_v2 = vmul.f32 %v3178_v14, %v1205_v21  ;;  %2318 = vmatprep.subr.bf16.mxu1 %v2463_v18  ;;  %v2467_v19 = vld [vmem:[%s3320_s7 + $0x30] sm:$0xff]   ;;  %v2468_v50 = vld [vmem:[%s3320_s7 + $0x28] sm:$0xff]   ;;  %v2469_v21 = vld [vmem:[%s3320_s7 + $0x20] sm:$0xff]  }
 0x427   : > { %v2533_v32 = vpop.eup %2532  ;;  %v1227_v60 = vmul.f32 %v3178_v14, %v1206_v6  ;;  %2319 = vmatpush3.bf16.msra.mxu1 %v2463_v18 }
 0x428   : > { %v2535_v3 = vpop.eup %2534  ;;  %2296 = vmatprep.mubr.bf16.mxu0 %v1258_v31  ;;  %v1247_v33 = vadd.f32 %v3185_v13, %v1226_v2  ;;  %v1207_v4 = vmul.f32 %v2533_v32, %v3096_v38  ;;  %v2068_v2 = vld [vmem:[%s3317_s4 + $0x1] ss:$0 sm:$0xff] }
 0x429   : > { %v1208_v41 = vmul.f32 %v2535_v3, %v3100_v55  ;;  %v1248_v8 = vadd.f32 %v3185_v13, %v1227_v60 }
 0x42a   : > { %v1259_v7 = vpack.c.bf16 %v1247_v33, %v1246_v59  ;;  %v1228_v12 = vmul.f32 %v3178_v14, %v1207_v4 }
 0x42b   : > { %v2537_v62 = vpop.eup %2536  ;;  %v1229_v28 = vmul.f32 %v3178_v14, %v1208_v41 }
 0x42c   : > { %v2539_v51 = vpop.eup %2538  ;;  %v1249_v10 = vadd.f32 %v3185_v13, %v1228_v12  ;;  %v1209_v45 = vmul.f32 %v2537_v62, %v3113_v24 }
 0x42d   : > { %2297 = vmatmul.mubr.bf16.gmra.mxu0 %v1259_v7  ;;  %v1210_v38 = vmul.f32 %v2539_v51, %v3117_v27  ;;  %v1250_v47 = vadd.f32 %v3185_v13, %v1229_v28 }
 0x42e   : > { %v1260_v17 = vpack.c.bf16 %v1249_v10, %v1248_v8  ;;  %v1230_v49 = vmul.f32 %v3178_v14, %v1209_v45 }
 0x42f   : > { %v2541_v55 = vpop.eup %2540  ;;  %v1231_v53 = vmul.f32 %v3178_v14, %v1210_v38 }
 0x430   : > { %v2543_v26 = vpop.eup %2542  ;;  %2300 = vmatprep.mubr.bf16.mxu0 %v1260_v17  ;;  %v1251_v58 = vadd.f32 %v3185_v13, %v1230_v49  ;;  %v1211_v52 = vmul.f32 %v2541_v55, %v3130_v37 }
 0x431   : > { %v1212_v24 = vmul.f32 %v2543_v26, %v3134_v5  ;;  %v1252_v0 = vadd.f32 %v3185_v13, %v1231_v53 }
 0x432   : > { %v1261_v15 = vpack.c.bf16 %v1251_v58, %v1250_v47  ;;  %v1232_v54 = vmul.f32 %v3178_v14, %v1211_v52 }
 0x433   : > { %v2545_v27 = vpop.eup %2544  ;;  %v1233_v63 = vmul.f32 %v3178_v14, %v1212_v24 }
 0x434   : > { %v1253_v56 = vadd.f32 %v3185_v13, %v1232_v54  ;;  %v1213_v61 = vmul.f32 %v2545_v27, %v3146_v57  ;;  %v2464_v57 = vld [vmem:[%s3318_s5 + $0x48] sm:$0xff]  }
 0x435   : > { %2301 = vmatmul.mubr.bf16.gmra.mxu0 %v1261_v15  ;;  %v1254_v29 = vadd.f32 %v3185_v13, %v1233_v63  ;;  %2320 = vmatprep.subr.bf16.mxu1 %v2464_v57 }
 0x436   : > { %v1262_v22 = vpack.c.bf16 %v1253_v56, %v1252_v0  ;;  %v1234_v37 = vmul.f32 %v3178_v14, %v1213_v61  ;;  %2321 = vmatpush3.bf16.msra.mxu1 %v2464_v57  ;;  %v2465_v14 = vld [vmem:[%s3318_s5 + $0x40] sm:$0xff]  }
 0x437   : > { %2322 = vmatprep.subr.bf16.mxu1 %v2465_v14 }
 0x438   : > { %2304 = vmatprep.mubr.bf16.mxu0 %v1262_v22  ;;  %v1255_v5 = vadd.f32 %v3185_v13, %v1234_v37  ;;  %v2466_v13 = vld [vmem:[%s3320_s7 + $0x38] sm:$0xff]  }
 0x439   : > { %2340 = vmatprep.subr.bf16.mxu0 %v2466_v13 }
 0x43a   : > { %v1263_v46 = vpack.c.bf16 %v1255_v5, %v1254_v29  ;;  %2323 = vmatpush3.bf16.msra.mxu1 %v2465_v14  ;;  %2341 = vmatpush3.bf16.msra.mxu0 %v2466_v13 }
 0x43b   : > { %2342 = vmatprep.subr.bf16.mxu0 %v2467_v19 }
 0x43d   : > { %2305 = vmatmul.mubr.bf16.gmra.mxu0 %v1263_v46 }
 0x43e   : > { %2343 = vmatpush3.bf16.msra.mxu0 %v2467_v19 }
 0x43f   : > { %2344 = vmatprep.subr.bf16.mxu0 %v2468_v50 }
 0x442   : > { %2345 = vmatpush3.bf16.msra.mxu0 %v2468_v50 }
 0x443   : > { %2346 = vmatprep.subr.bf16.mxu0 %v2469_v21 }
 0x446   : > { %2347 = vmatpush3.bf16.msra.mxu0 %v2469_v21 }
 0x447   : > { %2348 = vmatprep.subr.bf16.mxu0 %v2470_v1 }
 0x44a   : > { %2349 = vmatpush3.bf16.msra.mxu0 %v2470_v1 }
 0x4e5   : > { %v2294_v6 = vpop.f32.mrf.mxu0 }
 0x4e6   : > { %v1377_v33 = vadd.f32 %v2294_v6, %v2068_v2 }
 0x4e7   : > { %v1368_v31 = vpop.f32.mrf.mxu0 }
 0x4e8   : > { %v1369_v3 = vadd.f32 %v2068_v2, %v1368_v31  ;;  %v1433_v51 = vmax.f32 %v1377_v33, 0.0 }
 0x4e9   : > { %v2295_v32 = vpop.f32.mrf.mxu0 }
 0x4ea   : > { %v1380_v59 = vadd.f32 %v2295_v32, %v2068_v2  ;;  %v1431_v12 = vmax.f32 %v1369_v3, 0.0 }
 0x4eb   : > { %v1371_v4 = vpop.f32.mrf.mxu0 }
 0x4ec   : > { %v1372_v60 = vadd.f32 %v2068_v2, %v1371_v4  ;;  %v1434_v41 = vmax.f32 %v1380_v59, 0.0 }
 0x4ed   : > { %v2298_v7 = vpop.f32.mrf.mxu0 }
 0x4ee   : > { %v1432_v62 = vmax.f32 %v1372_v60, 0.0  ;;  %v1448_v45 = vpack.c.bf16 %v1434_v41, %v1433_v51  ;;  %v1393_v49 = vadd.f32 %v2298_v7, %v2068_v2  ;;  %v2471_v7 = vld [vmem:[%s3320_s7 + $0x10] sm:$0xff]  }
 0x4ef   : > { %v1384_v8 = vpop.f32.mrf.mxu0  ;;  %2350 = vmatprep.subr.bf16.mxu0 %v2471_v7 }
 0x4f0   : > { %v1447_v10 = vpack.c.bf16 %v1432_v62, %v1431_v12  ;;  %v1385_v38 = vadd.f32 %v2068_v2, %v1384_v8  ;;  %v1437_v24 = vmax.f32 %v1393_v49, 0.0  ;;  %2351 = vmatpush3.bf16.msra.mxu0 %v2471_v7  ;;  %v2472_v12 = vld [vmem:[%s3320_s7 + $0x8] sm:$0xff]   ;;  %v2093_v8 = vld [vmem:[%s3319_s6 + $0x1] ss:$0 sm:$0xff]  ;;  %v2586_v7 = vmov 0.0  }
 0x4f1   : > { %v2299_v28 = vpop.f32.mrf.mxu0  ;;  %2352 = vmatprep.subr.bf16.mxu0 %v2472_v12  ;;  %2372 = vmatprep.subr.bf16.mxu1 %v2586_v7 }
 0x4f2   : > { %v1396_v17 = vadd.f32 %v2299_v28, %v2068_v2  ;;  %2324 = vmatprep.mubr.bf16.mxu1 %v1447_v10  ;;  %v1435_v52 = vmax.f32 %v1385_v38, 0.0 }
 0x4f3   : > { %v1387_v55 = vpop.f32.mrf.mxu0  ;;  %2325 = vmatmul.mubr.bf16.vlgmr.msra.gmra.mxu1 %v1448_v45 }
 0x4f4   : > { %v1388_v26 = vadd.f32 %v2068_v2, %v1387_v55  ;;  %v1438_v47 = vmax.f32 %v1396_v17, 0.0  ;;  %2353 = vmatpush3.bf16.msra.mxu0 %v2472_v12  ;;  %v2478_v12 = vld [vmem:[%s1811_s28 + $0x18] sm:$0xff]  }
 0x4f5   : > { %v2302_v58 = vpop.f32.mrf.mxu0 }
 0x4f6   : > { %v1436_v53 = vmax.f32 %v1388_v26, 0.0  ;;  %v1450_v27 = vpack.c.bf16 %v1438_v47, %v1437_v24  ;;  %v1409_v63 = vadd.f32 %v2302_v58, %v2068_v2 }
 0x4f7   : > { %v1400_v15 = vpop.f32.mrf.mxu0 }
 0x4f8   : > { %v1449_v54 = vpack.c.bf16 %v1436_v53, %v1435_v52  ;;  %v1401_v56 = vadd.f32 %v2068_v2, %v1400_v15  ;;  %v1441_v57 = vmax.f32 %v1409_v63, 0.0 }
 0x4f9   : > { %v2303_v0 = vpop.f32.mrf.mxu0 }
 0x4fa   : > { %v1412_v61 = vadd.f32 %v2303_v0, %v2068_v2  ;;  %2328 = vmatprep.mubr.bf16.mxu1 %v1449_v54  ;;  %v1439_v46 = vmax.f32 %v1401_v56, 0.0 }
 0x4fb   : > { %v1403_v22 = vpop.f32.mrf.mxu0  ;;  %2329 = vmatmul.mubr.bf16.gmra.mxu1 %v1450_v27 }
 0x4fc   : > { %v1404_v37 = vadd.f32 %v2068_v2, %v1403_v22  ;;  %v1442_v29 = vmax.f32 %v1412_v61, 0.0 }
 0x4fd   : > { %v2306_v5 = vpop.f32.mrf.mxu0 }
 0x4fe   : > { %v1440_v18 = vmax.f32 %v1404_v37, 0.0  ;;  %v1452_v19 = vpack.c.bf16 %v1442_v29, %v1441_v57  ;;  %v1425_v6 = vadd.f32 %v2306_v5, %v2068_v2 }
 0x4ff   : > { %v1416_v14 = vpop.f32.mrf.mxu0 }
 0x500   : > { %v1451_v13 = vpack.c.bf16 %v1440_v18, %v1439_v46  ;;  %v1417_v21 = vadd.f32 %v2068_v2, %v1416_v14  ;;  %v1445_v4 = vmax.f32 %v1425_v6, 0.0 }
 0x501   : > { %v2307_v50 = vpop.f32.mrf.mxu0 }
 0x502   : > { %v1428_v1 = vadd.f32 %v2307_v50, %v2068_v2  ;;  %2332 = vmatprep.mubr.bf16.mxu1 %v1451_v13  ;;  %v1443_v59 = vmax.f32 %v1417_v21, 0.0 }
 0x503   : > { %v1419_v31 = vpop.f32.mrf.mxu0  ;;  %2333 = vmatmul.mubr.bf16.gmra.mxu1 %v1452_v19 }
 0x504   : > { %v1420_v32 = vadd.f32 %v2068_v2, %v1419_v31  ;;  %v1446_v3 = vmax.f32 %v1428_v1, 0.0  ;;  %v2473_v2 = vld [vmem:[%s3320_s7] sm:$0xff]  }
 0x505   : > { %2354 = vmatprep.subr.bf16.mxu0 %v2473_v2 }
 0x506   : > { %v1444_v33 = vmax.f32 %v1420_v32, 0.0  ;;  %v1454_v41 = vpack.c.bf16 %v1446_v3, %v1445_v4  ;;  %2355 = vmatpush3.bf16.msra.mxu0 %v2473_v2  ;;  %v2479_v2 = vld [vmem:[%s1811_s28 + $0x10] sm:$0xff]  }
 0x508   : > { %v1453_v60 = vpack.c.bf16 %v1444_v33, %v1443_v59 }
 0x50a   : > { %2336 = vmatprep.mubr.bf16.mxu1 %v1453_v60 }
 0x50b   : > { %2337 = vmatmul.mubr.bf16.gmra.mxu1 %v1454_v41 }
 0x50c   : > { %2388 = vmatprep.mubr.msk.bf16.mxu1 %vm2587_vm1, %v2586_v7 }
 0x5b3   : > { %v2326_v62 = vpop.f32.mrf.mxu1 }
 0x5b4   : > { %v1568_v38 = vadd.f32 %v2326_v62, %v2093_v8  ;;  %v2480_v62 = vld [vmem:[%s1811_s28 + $0x8] sm:$0xff]  }
 0x5b5   : > { %v1559_v51 = vpop.f32.mrf.mxu1 }
 0x5b6   : > { %v1560_v45 = vadd.f32 %v2093_v8, %v1559_v51  ;;  %v1624_v52 = vadd.f32 %v1568_v38, %v2964_v20  ;;  %v2481_v51 = vld [vmem:[%s1811_s28] sm:$0xff]  }
 0x5b7   : > { %v2327_v10 = vpop.f32.mrf.mxu1 }
 0x5b8   : > { %v1571_v28 = vadd.f32 %v2327_v10, %v2093_v8  ;;  %v1622_v47 = vadd.f32 %v1560_v45, %v2960_v16 }
 0x5b9   : > { %v1562_v17 = vpop.f32.mrf.mxu1 }
 0x5ba   : > { %v1563_v49 = vadd.f32 %v2093_v8, %v1562_v17  ;;  %v1625_v55 = vadd.f32 %v1571_v28, %v2972_v35 }
 0x5bb   : > { %v2330_v26 = vpop.f32.mrf.mxu1 }
 0x5bc   : > { %v1623_v58 = vadd.f32 %v1563_v49, %v2967_v23  ;;  %v1639_v15 = vpack.c.bf16 %v1625_v55, %v1624_v52  ;;  %v1584_v56 = vadd.f32 %v2330_v26, %v2093_v8 }
 0x5bd   : > { %v1575_v53 = vpop.f32.mrf.mxu1 }
 0x5be   : > { %v1638_v24 = vpack.c.bf16 %v1623_v58, %v1622_v47  ;;  %v1576_v27 = vadd.f32 %v2093_v8, %v1575_v53  ;;  %v1628_v20 = vadd.f32 %v1584_v56, %v2980_v39 }
 0x5bf   : > { %v2331_v54 = vpop.f32.mrf.mxu1 }
 0x5c0   : > { %v1587_v0 = vadd.f32 %v2331_v54, %v2093_v8  ;;  %2356 = vmatprep.mubr.bf16.mxu0 %v1638_v24  ;;  %v1626_v16 = vadd.f32 %v1576_v27, %v2975_v30 }
 0x5c1   : > { %v1578_v61 = vpop.f32.mrf.mxu1  ;;  %2357 = vmatmul.mubr.bf16.vlgmr.msra.gmra.mxu0 %v1639_v15 }
 0x5c2   : > { %v1579_v63 = vadd.f32 %v2093_v8, %v1578_v61  ;;  %v1629_v35 = vadd.f32 %v1587_v0, %v2988_v48 }
 0x5c3   : > { %v2334_v22 = vpop.f32.mrf.mxu1 }
 0x5c4   : > { %v1627_v23 = vadd.f32 %v1579_v63, %v2983_v36  ;;  %v1641_v46 = vpack.c.bf16 %v1629_v35, %v1628_v20  ;;  %v1600_v14 = vadd.f32 %v2334_v22, %v2093_v8 }
 0x5c5   : > { %v1591_v37 = vpop.f32.mrf.mxu1 }
 0x5c6   : > { %v1640_v29 = vpack.c.bf16 %v1627_v23, %v1626_v16  ;;  %v1592_v18 = vadd.f32 %v2093_v8, %v1591_v37  ;;  %v1632_v39 = vadd.f32 %v1600_v14, %v2996_v40 }
 0x5c7   : > { %v2335_v5 = vpop.f32.mrf.mxu1 }
 0x5c8   : > { %v1603_v57 = vadd.f32 %v2335_v5, %v2093_v8  ;;  %2360 = vmatprep.mubr.bf16.mxu0 %v1640_v29  ;;  %v1630_v30 = vadd.f32 %v1592_v18, %v2991_v34 }
 0x5c9   : > { %v1594_v13 = vpop.f32.mrf.mxu1  ;;  %2361 = vmatmul.mubr.bf16.gmra.mxu0 %v1641_v46 }
 0x5ca   : > { %v1595_v19 = vadd.f32 %v2093_v8, %v1594_v13  ;;  %v1633_v48 = vadd.f32 %v1603_v57, %v3004_v43 }
 0x5cb   : > { %v2338_v50 = vpop.f32.mrf.mxu1 }
 0x5cc   : > { %v1631_v36 = vadd.f32 %v1595_v19, %v2999_v42  ;;  %v1643_v31 = vpack.c.bf16 %v1633_v48, %v1632_v39  ;;  %v1616_v59 = vadd.f32 %v2338_v50, %v2093_v8 }
 0x5cd   : > { %v1607_v21 = vpop.f32.mrf.mxu1 }
 0x5ce   : > { %v1642_v1 = vpack.c.bf16 %v1631_v36, %v1630_v30  ;;  %v1608_v32 = vadd.f32 %v2093_v8, %v1607_v21  ;;  %v1636_v40 = vadd.f32 %v1616_v59, %v3012_v9  ;;  %v2476_v9 = vld [vmem:[%s1811_s28 + $0x28] sm:$0xff]  }
 0x5cf   : > { %v2339_v6 = vpop.f32.mrf.mxu1 }
 0x5d0   : > { %v1619_v3 = vadd.f32 %v2339_v6, %v2093_v8  ;;  %2364 = vmatprep.mubr.bf16.mxu0 %v1642_v1  ;;  %v1634_v34 = vadd.f32 %v1608_v32, %v3007_v44  ;;  %v2474_v44 = vld [vmem:[%s1811_s28 + $0x38] sm:$0xff]  }
 0x5d1   : > { %v1610_v33 = vpop.f32.mrf.mxu1  ;;  %2365 = vmatmul.mubr.bf16.gmra.mxu0 %v1643_v31  ;;  %2373 = vmatpush3.bf16.msra.mxu1 %v2474_v44 }
 0x5d2   : > { %v1611_v4 = vadd.f32 %v2093_v8, %v1610_v33  ;;  %v1637_v43 = vadd.f32 %v1619_v3, %v3020_v11  ;;  %2374 = vmatprep.subr.bf16.mxu1 %v2586_v7  ;;  %v2477_v11 = vld [vmem:[%s1811_s28 + $0x20] sm:$0xff]  }
 0x5d4   : > { %v1635_v42 = vadd.f32 %v1611_v4, %v3015_v25  ;;  %v1645_v41 = vpack.c.bf16 %v1637_v43, %v1636_v40  ;;  %v2475_v25 = vld [vmem:[%s1811_s28 + $0x30] sm:$0xff]  }
 0x5d5   : > { %2375 = vmatpush3.bf16.msra.mxu1 %v2475_v25 }
 0x5d6   : > { %v1644_v60 = vpack.c.bf16 %v1635_v42, %v1634_v34  ;;  %2376 = vmatprep.subr.bf16.mxu1 %v2586_v7 }
 0x5d8   : > { %2368 = vmatprep.mubr.bf16.mxu0 %v1644_v60 }
 0x5d9   : > { %2369 = vmatmul.mubr.bf16.gmra.mxu0 %v1645_v41  ;;  %2377 = vmatpush3.bf16.msra.mxu1 %v2476_v9 }
 0x5da   : > { %2378 = vmatprep.subr.bf16.mxu1 %v2586_v7 }
 0x5dd   : > { %2379 = vmatpush3.bf16.msra.mxu1 %v2477_v11 }
 0x5de   : > { %2380 = vmatprep.subr.bf16.mxu1 %v2586_v7 }
 0x5e1   : > { %2381 = vmatpush3.bf16.msra.mxu1 %v2478_v12 }
 0x5e2   : > { %2382 = vmatprep.subr.bf16.mxu1 %v2586_v7 }
 0x5e5   : > { %2383 = vmatpush3.bf16.msra.mxu1 %v2479_v2 }
 0x5e6   : > { %2384 = vmatprep.subr.bf16.mxu1 %v2586_v7 }
 0x5e9   : > { %2385 = vmatpush3.bf16.msra.mxu1 %v2480_v62 }
 0x5ea   : > { %2386 = vmatprep.subr.bf16.mxu1 %v2586_v7 }
 0x5ed   : > { %2387 = vmatpush3.bf16.msra.mxu1 %v2481_v51 }
 0x681   : > { %v2358_v8 = vpop.f32.mrf.mxu0 }
 0x683   : > { %v1744_v10 = vpop.f32.mrf.mxu0 }
 0x685   : > { %v2359_v45 = vpop.f32.mrf.mxu0 }
 0x686   : > { %v1829_v55 = vpack.c.bf16 %v2359_v45, %v2358_v8 }
 0x687   : > { %v1747_v28 = vpop.f32.mrf.mxu0 }
 0x688   : > { %v1828_v38 = vpack.c.bf16 %v1747_v28, %v1744_v10 }
 0x689   : > { %v2362_v17 = vpop.f32.mrf.mxu0 }
 0x68a   : > { %1836 = vxpose.xlu0.c.b16.start [1/8] (narrow) %v1828_v38, 16 }
 0x68b   : > { %v1760_v49 = vpop.f32.mrf.mxu0 }
 0x68d   : > { %v2363_v26 = vpop.f32.mrf.mxu0 }
 0x68e   : > { %1837 = vxpose.xlu0.c.b16.cont [2/8] (narrow) %v1829_v55, 16  ;;  %v1831_v24 = vpack.c.bf16 %v2363_v26, %v2362_v17 }
 0x68f   : > { %v1763_v47 = vpop.f32.mrf.mxu0 }
 0x690   : > { %v1830_v58 = vpack.c.bf16 %v1763_v47, %v1760_v49 }
 0x691   : > { %v2366_v52 = vpop.f32.mrf.mxu0 }
 0x692   : > { %1838 = vxpose.xlu0.c.b16.cont [3/8] (narrow) %v1830_v58, 16 }
 0x693   : > { %v1776_v53 = vpop.f32.mrf.mxu0 }
 0x695   : > { %v2367_v15 = vpop.f32.mrf.mxu0 }
 0x696   : > { %1839 = vxpose.xlu0.c.b16.cont [4/8] (narrow) %v1831_v24, 16  ;;  %v1833_v61 = vpack.c.bf16 %v2367_v15, %v2366_v52 }
 0x697   : > { %v1779_v54 = vpop.f32.mrf.mxu0 }
 0x698   : > { %v1832_v27 = vpack.c.bf16 %v1779_v54, %v1776_v53 }
 0x699   : > { %v2370_v0 = vpop.f32.mrf.mxu0 }
 0x69a   : > { %1840 = vxpose.xlu0.c.b16.cont [5/8] (narrow) %v1832_v27, 16 }
 0x69b   : > { %v1792_v56 = vpop.f32.mrf.mxu0 }
 0x69d   : > { %v2371_v63 = vpop.f32.mrf.mxu0 }
 0x69e   : > { %1841 = vxpose.xlu0.c.b16.cont [6/8] (narrow) %v1833_v61, 16  ;;  %v1835_v16 = vpack.c.bf16 %v2371_v63, %v2370_v0 }
 0x69f   : > { %v1795_v35 = vpop.f32.mrf.mxu0 }
 0x6a0   : > { %v1834_v22 = vpack.c.bf16 %v1795_v35, %v1792_v56 }
 0x6a2   : > { %1842 = vxpose.xlu0.c.b16.cont [7/8] (narrow) %v1834_v22, 16 }
 0x6a6   : > { %1843 = vxpose.xlu0.c.b16.end [8/8] (narrow) %v1835_v16, 16 }
 0x6ec   : > { %v1844_v23 = vpop.trf.xlu0 }
 0x6ed   : > { %2389 = vmatmul.mubr.bf16.vlgmr.msra.gmra.mxu1 %v1844_v23 }
 0x7ad   : > { %v1934_v20 = vpop.f32.mrf.mxu1 }
 0x7af   : > { %v2390_v37 = vpop.f32.mrf.mxu1  ;;  %1943 = sbr.rel (%p2120_p7) target bundleno = 1974 (0x7b6), region = 64 }
 0x7b1   : > { %v1937_v29 = vpop.f32.mrf.mxu1 }
 0x7b3   : > { %v2391_v5 = vpop.f32.mrf.mxu1 }
 0x7b4   : > { %v1944_v46 = vld [vmem:[%s3322_s9] sm:$0xff] }
 0x7b5   : > { %1945 = vst [vmem:[%s2679_s26] sm:$0xff] %v1944_v46 }
 0x7b6 PF:  {}
 0x7bc   : > { %v1946_v18 = vld [vmem:[%s2679_s26] sm:$0xff] }
 0x7bd   : > { %v1947_v57 = vadd.f32 %v1946_v18, %v1934_v20 }
 0x7bf   : > { %1948 = vst [vmem:[%s2679_s26] sm:$0xff] %v1947_v57 }
 0x7c0 PF: > { %s20_s17 = sadd.s32 1, %s2584_s17   ;;  %s3324_s13 = smov %s2576_s15 }
 0x7c1   : > { %p17_p8 = scmp.ge.s32.totalorder %s20_s17, 6   ;;  %s3325_s14 = smov %s2580_s16 }
 0x7c2   : > { %s3326_s15 = smov %s3329_s18  ;;  %s3327_s16 = smov %s3333_s19 }
 0x7c3   :  { %19 = sbr.rel (!%p17_p8) target bundleno = 3 (0x3), region = 97 }

</bundles_post_ra>
